<compile_context>
chip_gen: v5e
topology: v5e:2x2
jax: 0.10.0
libtpu: 0.0.40
codegen_flags: <defaults>
</compile_context>

<pallas_src>
import functools

import jax
import jax.numpy as jnp
from jax.experimental import pallas as pl
from jax.experimental.pallas import tpu as pltpu


# ----------------------------------------------------------------------------
# Generation-aware budgets (v5e/v6e: 128 MiB VMEM, v7x: 64 MiB; MXU 128 vs 256)
# ----------------------------------------------------------------------------
def _detect_vmem_capacity():
    try:
        info = pltpu.get_tpu_info()
        for name in ("vmem_capacity_bytes", "vmem_bytes", "vmem_size_bytes"):
            v = getattr(info, name, None)
            if v:
                return int(v)
    except Exception:
        pass
    return 128 * 1024 * 1024


def _lane_quantum():
    # v6e / v7x MXU is 2x256^2 -> prefer 256-aligned K/N/I tiles; v2-v5: 128.
    try:
        kind = jax.devices()[0].device_kind.lower()
        for tag in ("v2", "v3", "v4", "v5"):
            if tag in kind:
                return 128
    except Exception:
        pass
    return 256


_VMEM_CAP = _detect_vmem_capacity()
_BIG_VMEM = _VMEM_CAP >= 100 * 1024 * 1024            # v5e / v6e (128 MiB parts)
VMEM_LIMIT = (88 * 1024 * 1024) if _BIG_VMEM else max(
    32 * 1024 * 1024, int(_VMEM_CAP * 0.6))            # ~38 MiB on v7x (64 MiB)
_LANE_Q = _lane_quantum()

_TM_DEF = 512 if _BIG_VMEM else 256
_TN_DEF = 1024 if _BIG_VMEM else 512
_TK_DEF = 512
_TI_DEF = 1024 if _BIG_VMEM else 512


def _fit(dim, cap, quantum):
    """Largest tile <= cap dividing dim, preferring coarse `quantum` multiples."""
    if dim <= cap:
        return dim
    q = quantum
    while q >= 8:
        t = (cap // q) * q
        while t >= q:
            if dim % t == 0:
                return t
            t -= q
        q //= 2
    # TODO(synk): non-divisible dims fall back to a full-dim block; switch to
    # pl.cdiv grids + padded/masked edge tiles if this ever exceeds VMEM_LIMIT.
    return dim


def _split_rows(M, tm):
    """Prefer >=2 row tiles so both v7x TensorCores get work."""
    if M >= 16 and M // tm < 2:
        return _fit(M, max(8, tm // 2), 8)
    return tm


# ----------------------------------------------------------------------------
# Tiled linear:  y = act(x @ W + b)      (K-accumulating, bf16 MXU, f32 acc)
# ----------------------------------------------------------------------------
def _linear_kernel(x_ref, w_ref, b_ref, o_ref, acc_ref, *, act):
    @pl.when(pl.program_id(2) == 0)
    def _():
        acc_ref[...] = jnp.zeros_like(acc_ref)

    acc_ref[...] += jnp.dot(x_ref[...].astype(jnp.bfloat16), w_ref[...],
                            preferred_element_type=jnp.float32)

    @pl.when(pl.program_id(2) == pl.num_programs(2) - 1)
    def _():
        y = acc_ref[...] + b_ref[...]
        if act == "relu":
            y = jnp.maximum(y, 0.0)
        elif act == "tanh":
            y = jnp.tanh(y)
        elif act == "gelu":
            y = jax.nn.gelu(y, approximate=True)
        elif act == "sigmoid":
            y = jax.nn.sigmoid(y)
        o_ref[...] = y.astype(o_ref.dtype)


def linear(x, w, b, act="none", *, tm=None, tn=None, tk=None):
    """x: (M, K) f32, w: (K, N) bf16/f32, b: (N,) f32 -> (M, N) f32."""
    M, K = x.shape
    N = w.shape[1]
    tm = _split_rows(M, _fit(M, tm or _TM_DEF, 8))
    tn = _fit(N, tn or _TN_DEF, _LANE_Q)
    tk = _fit(K, tk or _TK_DEF, _LANE_Q)
    kernel = functools.partial(_linear_kernel, act=act)
    return pl.pallas_call(
        kernel,
        out_shape=jax.ShapeDtypeStruct((M, N), jnp.float32),
        grid=(M // tm, N // tn, K // tk),
        in_specs=[
            pl.BlockSpec((tm, tk), lambda i, j, k: (i, k)),
            pl.BlockSpec((tk, tn), lambda i, j, k: (k, j)),
            pl.BlockSpec((1, tn), lambda i, j, k: (0, j)),
        ],
        out_specs=pl.BlockSpec((tm, tn), lambda i, j, k: (i, j)),
        scratch_shapes=[pltpu.VMEM((tm, tn), jnp.float32)],
        compiler_params=pltpu.CompilerParams(
            dimension_semantics=("parallel", "parallel", "arbitrary"),
            vmem_limit_bytes=VMEM_LIMIT),
    )(x, w, b.reshape(1, N))


# ----------------------------------------------------------------------------
# Row-tiled LayerNorm (eps=1e-12, BERT-style), statistics in f32
# (only used once, for the embedding LayerNorm)
# ----------------------------------------------------------------------------
def _layernorm_kernel(x_ref, g_ref, b_ref, o_ref):
    x = x_ref[...].astype(jnp.float32)
    mu = jnp.mean(x, axis=-1, keepdims=True)
    var = jnp.mean(jnp.square(x - mu), axis=-1, keepdims=True)
    y = (x - mu) * jax.lax.rsqrt(var + 1e-12)
    o_ref[...] = (y * g_ref[...] + b_ref[...]).astype(o_ref.dtype)


def layernorm(x, gamma, beta, *, tm=None):
    M, H = x.shape
    tm = _split_rows(M, _fit(M, tm or _TM_DEF, 8))
    return pl.pallas_call(
        _layernorm_kernel,
        out_shape=jax.ShapeDtypeStruct((M, H), x.dtype),
        grid=(M // tm,),
        in_specs=[
            pl.BlockSpec((tm, H), lambda i: (i, 0)),
            pl.BlockSpec((1, H), lambda i: (0, 0)),
            pl.BlockSpec((1, H), lambda i: (0, 0)),
        ],
        out_specs=pl.BlockSpec((tm, H), lambda i: (i, 0)),
        compiler_params=pltpu.CompilerParams(
            dimension_semantics=("parallel",),
            vmem_limit_bytes=VMEM_LIMIT),
    )(x, gamma.reshape(1, H), beta.reshape(1, H))


# ----------------------------------------------------------------------------
# Fused token-mix sublayer (LN1 fused in, batch-major layout, no transpose):
#   out[b] = x[b] + W_tok @ LN1(x[b]) + b_tok        x: (B, T, H)
# ----------------------------------------------------------------------------
def _token_mix_kernel(x_ref, w_ref, g_ref, bt_ref, tokb_ref, o_ref, *, tb):
    g = g_ref[...]              # (1, H)
    beta = bt_ref[...]          # (1, H)
    w = w_ref[...]              # (T, T) bf16
    tok_b = tokb_ref[:, 0:1]    # (T, 1)  per-token bias
    for b in range(tb):         # static unroll over the small per-step batch
        x = x_ref[b]            # (T, H) f32
        mu = jnp.mean(x, axis=-1, keepdims=True)
        var = jnp.mean(jnp.square(x - mu), axis=-1, keepdims=True)
        h = ((x - mu) * jax.lax.rsqrt(var + 1e-12) * g
             + beta).astype(jnp.bfloat16)
        mixed = jnp.dot(w, h, preferred_element_type=jnp.float32)
        o_ref[b] = (x + mixed + tok_b).astype(o_ref.dtype)


def token_mix(x, w_tok, ln_g, ln_b, tok_b_bc, *, tb_cap=8):
    """x: (B, T, H) f32 -> (B, T, H) f32."""
    B, T, H = x.shape
    # batches per grid step: divisor of B, small (static unroll), ~<=2 MiB of x
    byte_cap = max(1, (2 * 1024 * 1024) // max(1, T * H * 4))
    cap = max(1, min(tb_cap, byte_cap, B))
    tb = 1
    for d in range(cap, 0, -1):
        if B % d == 0:
            tb = d
            break
    if B // tb < 2 and B > 1:          # keep >=2 grid steps for v7x dual-TC
        for d in range(min(B - 1, cap), 0, -1):
            if B % d == 0:
                tb = d
                break
    kernel = functools.partial(_token_mix_kernel, tb=tb)
    return pl.pallas_call(
        kernel,
        out_shape=jax.ShapeDtypeStruct((B, T, H), x.dtype),
        grid=(B // tb,),
        in_specs=[
            pl.BlockSpec((tb, T, H), lambda i: (i, 0, 0)),
            pl.BlockSpec((T, T), lambda i: (0, 0)),
            pl.BlockSpec((1, H), lambda i: (0, 0)),
            pl.BlockSpec((1, H), lambda i: (0, 0)),
            pl.BlockSpec((T, 128), lambda i: (0, 0)),
        ],
        out_specs=pl.BlockSpec((tb, T, H), lambda i: (i, 0, 0)),
        compiler_params=pltpu.CompilerParams(
            dimension_semantics=("parallel",),
            vmem_limit_bytes=VMEM_LIMIT),
    )(x, w_tok, ln_g.reshape(1, H), ln_b.reshape(1, H), tok_b_bc)


# ----------------------------------------------------------------------------
# Fused FFN sublayer:  out = x + FF2(GELU(FF1(LN2(x))))
#   grid = (row tiles, intermediate tiles); LN output (bf16) + f32 accumulator
#   (pre-loaded with the residual) live in VMEM scratch.
# ----------------------------------------------------------------------------
def _ffn_kernel(x_ref, g_ref, bt_ref, w1_ref, b1_ref, w2_ref, b2_ref, o_ref,
                h_scr, acc_scr):
    i = pl.program_id(1)

    @pl.when(i == 0)
    def _():
        xv = x_ref[...]                                    # (tm, H) f32
        mu = jnp.mean(xv, axis=-1, keepdims=True)
        var = jnp.mean(jnp.square(xv - mu), axis=-1, keepdims=True)
        h_scr[...] = ((xv - mu) * jax.lax.rsqrt(var + 1e-12) * g_ref[...]
                      + bt_ref[...]).astype(h_scr.dtype)   # bf16 LN output
        acc_scr[...] = xv                                  # residual in the acc

    # TODO(synk): PyTorch nn.GELU defaults to the exact erf form; tanh approx
    # is used here for a guaranteed Mosaic lowering (EUP-friendly).
    u = jnp.dot(h_scr[...], w1_ref[...],
                preferred_element_type=jnp.float32) + b1_ref[...]
    u = jax.nn.gelu(u, approximate=True)
    acc_scr[...] += jnp.dot(u.astype(jnp.bfloat16), w2_ref[...],
                            preferred_element_type=jnp.float32)

    @pl.when(i == pl.num_programs(1) - 1)
    def _():
        o_ref[...] = (acc_scr[...] + b2_ref[...]).astype(o_ref.dtype)


def ffn_block(x2, ln_g, ln_b, w1, b1, w2, b2, *, tm=None, ti=None):
    """x2: (M, H) f32; w1: (H, I) bf16; w2: (I, H) bf16."""
    M, H = x2.shape
    I = w1.shape[1]
    tm = _split_rows(M, _fit(M, tm or _TM_DEF, 8))
    ti = _fit(I, ti or _TI_DEF, _LANE_Q)
    # TODO(synk): if a profile shows exposed DMA on the intermediate axis,
    # add pipeline_mode=pl.Buffered(3) on the w1/w2 specs (128-MiB parts only).
    return pl.pallas_call(
        _ffn_kernel,
        out_shape=jax.ShapeDtypeStruct((M, H), x2.dtype),
        grid=(M // tm, I // ti),
        in_specs=[
            pl.BlockSpec((tm, H), lambda m, i: (m, 0)),
            pl.BlockSpec((1, H), lambda m, i: (0, 0)),
            pl.BlockSpec((1, H), lambda m, i: (0, 0)),
            pl.BlockSpec((H, ti), lambda m, i: (0, i)),
            pl.BlockSpec((1, ti), lambda m, i: (0, i)),
            pl.BlockSpec((ti, H), lambda m, i: (i, 0)),
            pl.BlockSpec((1, H), lambda m, i: (0, 0)),
        ],
        out_specs=pl.BlockSpec((tm, H), lambda m, i: (m, 0)),
        scratch_shapes=[pltpu.VMEM((tm, H), jnp.bfloat16),
                        pltpu.VMEM((tm, H), jnp.float32)],
        compiler_params=pltpu.CompilerParams(
            dimension_semantics=("parallel", "arbitrary"),
            vmem_limit_bytes=VMEM_LIMIT),
    )(x2, ln_g.reshape(1, H), ln_b.reshape(1, H),
      w1, b1.reshape(1, I), w2, b2.reshape(1, H))


# ----------------------------------------------------------------------------
# Fused heads: pooler(tanh) -> classifier, and 3-layer bbox MLP -> sigmoid.
# One pallas_call; `pooled` and the bbox intermediates never leave VMEM.
# ----------------------------------------------------------------------------
def _head_kernel(x_ref, wp_ref, bp_ref, wc_ref, bc_ref,
                 w1_ref, b1_ref, w2_ref, b2_ref, w3_ref, b3_ref,
                 cls_ref, bbox_ref):
    x = x_ref[...].astype(jnp.bfloat16)
    pooled = jnp.tanh(jnp.dot(x, wp_ref[...],
                              preferred_element_type=jnp.float32) + bp_ref[...])
    p16 = pooled.astype(jnp.bfloat16)

    cls_ref[...] = (jnp.dot(p16, wc_ref[...],
                            preferred_element_type=jnp.float32)
                    + bc_ref[...]).astype(cls_ref.dtype)

    h = jnp.maximum(jnp.dot(p16, w1_ref[...],
                            preferred_element_type=jnp.float32) + b1_ref[...], 0.0)
    h = jnp.maximum(jnp.dot(h.astype(jnp.bfloat16), w2_ref[...],
                            preferred_element_type=jnp.float32) + b2_ref[...], 0.0)
    bbox_ref[...] = jax.nn.sigmoid(
        jnp.dot(h.astype(jnp.bfloat16), w3_ref[...],
                preferred_element_type=jnp.float32) + b3_ref[...]
    ).astype(bbox_ref.dtype)


def heads(x0, p):
    B, H = x0.shape
    num_class = p["cls_w"].shape[1]
    # TODO(synk): at very large H on small-VMEM parts, tile pool_w/bb*_w over N.
    return pl.pallas_call(
        _head_kernel,
        out_shape=(jax.ShapeDtypeStruct((B, num_class), jnp.float32),
                   jax.ShapeDtypeStruct((B, 4), jnp.float32)),
        compiler_params=pltpu.CompilerParams(vmem_limit_bytes=VMEM_LIMIT),
    )(x0,
      p["pool_w"], p["pool_b"].reshape(1, H),
      p["cls_w"], p["cls_b"].reshape(1, num_class),
      p["bb1_w"], p["bb1_b"].reshape(1, H),
      p["bb2_w"], p["bb2_b"].reshape(1, H),
      p["bb3_w"], p["bb3_b"].reshape(1, 4))


# ----------------------------------------------------------------------------
# Parameter construction (deterministic, synthetic).  Matmul weights in bf16.
# ----------------------------------------------------------------------------
def init_params(key, *, vocab_size, hidden, visual_dim, intermediate,
                num_layers, token_size, num_text_tokens, num_class):
    bf16 = jnp.bfloat16

    def nrm(k, shape, scale=0.02, dtype=jnp.float32):
        return (scale * jax.random.normal(k, shape)).astype(dtype)

    keys = iter(jax.random.split(key, 64 + 8 * num_layers))
    p = {
        "word_emb": nrm(next(keys), (vocab_size, hidden)),
        "pos_emb": nrm(next(keys), (num_text_tokens, hidden)),
        "type_emb": nrm(next(keys), (2, hidden)),
        "vis_pos_emb": nrm(next(keys), (token_size - num_text_tokens, hidden)),
        "vis_proj_w": nrm(next(keys), (visual_dim, hidden), dtype=bf16),
        "vis_proj_b": jnp.zeros((hidden,), jnp.float32),
        "emb_ln_g": jnp.ones((hidden,), jnp.float32),
        "emb_ln_b": jnp.zeros((hidden,), jnp.float32),
        "pool_w": nrm(next(keys), (hidden, hidden), dtype=bf16),
        "pool_b": jnp.zeros((hidden,), jnp.float32),
        "cls_w": nrm(next(keys), (hidden, num_class), dtype=bf16),
        "cls_b": jnp.zeros((num_class,), jnp.float32),
        "bb1_w": nrm(next(keys), (hidden, hidden), dtype=bf16),
        "bb1_b": jnp.zeros((hidden,), jnp.float32),
        "bb2_w": nrm(next(keys), (hidden, hidden), dtype=bf16),
        "bb2_b": jnp.zeros((hidden,), jnp.float32),
        "bb3_w": nrm(next(keys), (hidden, 4), dtype=bf16),
        "bb3_b": jnp.zeros((4,), jnp.float32),
        "layers": [],
    }
    for _ in range(num_layers):
        tok_b = jnp.zeros((token_size,), jnp.float32)
        p["layers"].append({
            "ln1_g": jnp.ones((hidden,), jnp.float32),
            "ln1_b": jnp.zeros((hidden,), jnp.float32),
            "tok_w": nrm(next(keys), (token_size, token_size), dtype=bf16),
            # bias pre-broadcast to 128 lanes -> lane-dense BlockSpec in kernel
            "tok_b_bc": jnp.tile(tok_b.reshape(token_size, 1), (1, 128)),
            "ln2_g": jnp.ones((hidden,), jnp.float32),
            "ln2_b": jnp.zeros((hidden,), jnp.float32),
            "ff1_w": nrm(next(keys), (hidden, intermediate), dtype=bf16),
            "ff1_b": jnp.zeros((intermediate,), jnp.float32),
            "ff2_w": nrm(next(keys), (intermediate, hidden), dtype=bf16),
            "ff2_b": jnp.zeros((hidden,), jnp.float32),
        })
    return p


# ----------------------------------------------------------------------------
# Forward pass (mirrors VisualBertResMLPPrediction.forward)
# ----------------------------------------------------------------------------
def visualbert_resmlp_prediction(params, input_ids, token_type_ids,
                                 attention_mask, visual_embeds):
    B, T_text = input_ids.shape
    T_vis = visual_embeds.shape[1]
    T = T_text + T_vis
    H = params["word_emb"].shape[1]

    # ---- embeddings (gathers are XLA glue; projection matmul is Pallas)
    txt = (params["word_emb"][input_ids]
           + params["pos_emb"][:T_text][None]
           + params["type_emb"][token_type_ids])

    visual_token_type_ids = jnp.ones((B, T_vis), dtype=jnp.int32)
    # TODO(synk): attention_mask / visual_attention_mask are all-ones in the
    # reference forward and the ResMLP token mixer has no masking hook; unused.
    del attention_mask

    vis_flat = visual_embeds.reshape(B * T_vis, -1)
    vis_proj = linear(vis_flat, params["vis_proj_w"], params["vis_proj_b"])
    vis = (vis_proj.reshape(B, T_vis, H)
           + params["type_emb"][visual_token_type_ids]
           + params["vis_pos_emb"][:T_vis][None])

    x = jnp.concatenate([txt, vis], axis=1)                  # (B, T, H)
    x = layernorm(x.reshape(B * T, H),
                  params["emb_ln_g"], params["emb_ln_b"])
    xb = x.reshape(B, T, H)    # batch-major throughout; no transpose needed

    # ---- ResMLP encoder blocks
    for lyr in params["layers"]:
        # token-mix sublayer (LN1 fused): x += W_tok @ LN1(x) + b_tok
        xb = token_mix(xb, lyr["tok_w"], lyr["ln1_g"], lyr["ln1_b"],
                       lyr["tok_b_bc"])
        # fused LN2 + FF1 + GELU + FF2 + residual
        xb = ffn_block(xb.reshape(B * T, H), lyr["ln2_g"], lyr["ln2_b"],
                       lyr["ff1_w"], lyr["ff1_b"],
                       lyr["ff2_w"], lyr["ff2_b"]).reshape(B, T, H)

    # ---- fused heads: pooler(tanh) -> classifier + bbox MLP(relu,relu)+sigmoid
    first_token = xb[:, 0, :]                                # (B, H)
    classification_outputs, bbox_outputs = heads(first_token, params)
    return classification_outputs, bbox_outputs


# ----------------------------------------------------------------------------
if __name__ == "__main__":
    # Small shapes consistent with the module (hidden / visual dims scaled
    # down from 2048 / 512 for a fast synthetic run).
    VOCAB = 30
    LAYERS = 2
    NUM_CLASS = 10
    HIDDEN = 256
    VISUAL_DIM = 64
    INTERMEDIATE = 512
    B = 2
    T_TEXT = 12
    T_VIS = 4
    TOKEN_SIZE = T_TEXT + T_VIS  # 16

    key = jax.random.PRNGKey(0)
    k_param, k_ids, k_vis = jax.random.split(key, 3)

    params = init_params(
        k_param, vocab_size=VOCAB, hidden=HIDDEN, visual_dim=VISUAL_DIM,
        intermediate=INTERMEDIATE, num_layers=LAYERS, token_size=TOKEN_SIZE,
        num_text_tokens=T_TEXT, num_class=NUM_CLASS)

    input_ids = jax.random.randint(k_ids, (B, T_TEXT), 0, VOCAB, dtype=jnp.int32)
    token_type_ids = jnp.zeros((B, T_TEXT), dtype=jnp.int32)
    attention_mask = jnp.ones((B, T_TEXT), dtype=jnp.float32)
    visual_embeds = jax.random.normal(k_vis, (B, T_VIS, VISUAL_DIM), jnp.float32)

    fwd = jax.jit(visualbert_resmlp_prediction)
    logits, bbox = fwd(params, input_ids, token_type_ids,
                       attention_mask, visual_embeds)
    jax.block_until_ready((logits, bbox))

    assert logits.shape == (B, NUM_CLASS)
    assert bbox.shape == (B, 4)
    assert bool(jnp.all(jnp.isfinite(logits))) and bool(jnp.all(jnp.isfinite(bbox)))
    assert bool(jnp.all((bbox >= 0.0) & (bbox <= 1.0)))
    print("KERNEL_OK")
</pallas_src>

<mosaic_0001>
module attributes {stable_mosaic.version = 11 : i64} {
  func.func @_ffn_kernel(%arg0: i32, %arg1: i32, %arg2: memref<16x256xf32, #tpu.memory_space<vmem>>, %arg3: memref<1x256xf32, #tpu.memory_space<vmem>>, %arg4: memref<1x256xf32, #tpu.memory_space<vmem>>, %arg5: memref<256x512xbf16, #tpu.memory_space<vmem>>, %arg6: memref<1x512xf32, #tpu.memory_space<vmem>>, %arg7: memref<512x256xbf16, #tpu.memory_space<vmem>>, %arg8: memref<1x256xf32, #tpu.memory_space<vmem>>, %arg9: memref<16x256xf32, #tpu.memory_space<vmem>>, %arg10: memref<16x256xbf16, #tpu.memory_space<vmem>>, %arg11: memref<16x256xf32, #tpu.memory_space<vmem>>) attributes {dimension_semantics = [#tpu.dimension_semantics<parallel>, #tpu.dimension_semantics<arbitrary>], iteration_bounds = array<i64: 2, 1>, scalar_prefetch = 0 : i64, scratch_operands = 2 : i64, tpu.core_type = #tpu.core_type<tc>, window_params = [{transform_indices = @transform_0, window_bounds = array<i64: 16, 256>}, {pipeline_mode = #tpu.pipeline_mode<synchronous>, transform_indices = @transform_1, window_bounds = array<i64: 1, 256>}, {pipeline_mode = #tpu.pipeline_mode<synchronous>, transform_indices = @transform_2, window_bounds = array<i64: 1, 256>}, {transform_indices = @transform_3, window_bounds = array<i64: 256, 512>}, {transform_indices = @transform_4, window_bounds = array<i64: 1, 512>}, {transform_indices = @transform_5, window_bounds = array<i64: 512, 256>}, {pipeline_mode = #tpu.pipeline_mode<synchronous>, transform_indices = @transform_6, window_bounds = array<i64: 1, 256>}, {transform_indices = @transform_7, window_bounds = array<i64: 16, 256>}]} {
    %c0_i32 = arith.constant 0 : i32
    %0 = arith.cmpi eq, %arg1, %c0_i32 : i32
    %1 = arith.extui %0 : i1 to i32
    %c0_i32_0 = arith.constant 0 : i32
    %2 = arith.cmpi ne, %1, %c0_i32_0 : i32
    scf.if %2 {
      %c0_19 = arith.constant 0 : index
      %c0_20 = arith.constant 0 : index
      %31 = vector.load %arg2[%c0_19, %c0_20] : memref<16x256xf32, #tpu.memory_space<vmem>>, vector<16x256xf32>
      %cst_21 = arith.constant dense<0.000000e+00> : vector<16xf32>
      %32 = vector.multi_reduction <add>, %31, %cst_21 [1] : vector<16x256xf32> to vector<16xf32>
      %33 = vector.shape_cast %32 : vector<16xf32> to vector<16x1xf32>
      %cst_22 = arith.constant 2.560000e+02 : f32
      %34 = vector.broadcast %cst_22 : f32 to vector<16x1xf32>
      %35 = arith.divf %33, %34 : vector<16x1xf32>
      %36 = vector.broadcast %35 : vector<16x1xf32> to vector<16x256xf32>
      %37 = arith.subf %31, %36 : vector<16x256xf32>
      %38 = arith.mulf %37, %37 : vector<16x256xf32>
      %cst_23 = arith.constant dense<0.000000e+00> : vector<16xf32>
      %39 = vector.multi_reduction <add>, %38, %cst_23 [1] : vector<16x256xf32> to vector<16xf32>
      %40 = vector.shape_cast %39 : vector<16xf32> to vector<16x1xf32>
      %cst_24 = arith.constant 2.560000e+02 : f32
      %41 = vector.broadcast %cst_24 : f32 to vector<16x1xf32>
      %42 = arith.divf %40, %41 : vector<16x1xf32>
      %43 = vector.broadcast %35 : vector<16x1xf32> to vector<16x256xf32>
      %44 = arith.subf %31, %43 : vector<16x256xf32>
      %cst_25 = arith.constant 9.99999996E-13 : f32
      %45 = vector.broadcast %cst_25 : f32 to vector<16x1xf32>
      %46 = arith.addf %42, %45 : vector<16x1xf32>
      %47 = math.rsqrt %46 : vector<16x1xf32>
      %48 = vector.broadcast %47 : vector<16x1xf32> to vector<16x256xf32>
      %49 = arith.mulf %44, %48 : vector<16x256xf32>
      %c0_26 = arith.constant 0 : index
      %c0_27 = arith.constant 0 : index
      %50 = vector.load %arg3[%c0_26, %c0_27] : memref<1x256xf32, #tpu.memory_space<vmem>>, vector<1x256xf32>
      %51 = vector.broadcast %50 : vector<1x256xf32> to vector<16x256xf32>
      %52 = arith.mulf %49, %51 : vector<16x256xf32>
      %c0_28 = arith.constant 0 : index
      %c0_29 = arith.constant 0 : index
      %53 = vector.load %arg4[%c0_28, %c0_29] : memref<1x256xf32, #tpu.memory_space<vmem>>, vector<1x256xf32>
      %54 = vector.broadcast %53 : vector<1x256xf32> to vector<16x256xf32>
      %55 = arith.addf %52, %54 : vector<16x256xf32>
      %56 = arith.truncf %55 : vector<16x256xf32> to vector<16x256xbf16>
      %c0_30 = arith.constant 0 : index
      %c0_31 = arith.constant 0 : index
      %57 = vector.load %arg10[%c0_30, %c0_31] : memref<16x256xbf16, #tpu.memory_space<vmem>>, vector<16x256xbf16>
      tpu.vector_store %arg10[%c0_30, %c0_31], %56 {strides = array<i32>} : memref<16x256xbf16, #tpu.memory_space<vmem>>, vector<16x256xbf16>,
      %c0_32 = arith.constant 0 : index
      %c0_33 = arith.constant 0 : index
      %58 = vector.load %arg11[%c0_32, %c0_33] : memref<16x256xf32, #tpu.memory_space<vmem>>, vector<16x256xf32>
      tpu.vector_store %arg11[%c0_32, %c0_33], %31 {strides = array<i32>} : memref<16x256xf32, #tpu.memory_space<vmem>>, vector<16x256xf32>,
    } else {
    }
    %c0 = arith.constant 0 : index
    %c0_1 = arith.constant 0 : index
    %3 = vector.load %arg10[%c0, %c0_1] : memref<16x256xbf16, #tpu.memory_space<vmem>>, vector<16x256xbf16>
    %c0_2 = arith.constant 0 : index
    %c0_3 = arith.constant 0 : index
    %4 = vector.load %arg5[%c0_2, %c0_3] : memref<256x512xbf16, #tpu.memory_space<vmem>>, vector<256x512xbf16>
    %cst = arith.constant dense<0.000000e+00> : vector<16x512xf32>
    %5 = tpu.matmul %3, %4, %cst {dimension_numbers = #tpu.dot_dimension_numbers<[1], [0], [0], [1], [0, 0, 1, 1], [], []>} : vector<16x256xbf16>, vector<256x512xbf16>, vector<16x512xf32> -> vector<16x512xf32>
    %c0_4 = arith.constant 0 : index
    %c0_5 = arith.constant 0 : index
    %6 = vector.load %arg6[%c0_4, %c0_5] : memref<1x512xf32, #tpu.memory_space<vmem>>, vector<1x512xf32>
    %7 = vector.broadcast %6 : vector<1x512xf32> to vector<16x512xf32>
    %8 = arith.addf %5, %7 : vector<16x512xf32>
    %9 = arith.mulf %8, %8 : vector<16x512xf32>
    %10 = arith.mulf %8, %9 : vector<16x512xf32>
    %cst_6 = arith.constant 4.471500e-02 : f32
    %11 = vector.broadcast %cst_6 : f32 to vector<16x512xf32>
    %12 = arith.mulf %11, %10 : vector<16x512xf32>
    %13 = arith.addf %8, %12 : vector<16x512xf32>
    %cst_7 = arith.constant 0.797884583 : f32
    %14 = vector.broadcast %cst_7 : f32 to vector<16x512xf32>
    %15 = arith.mulf %14, %13 : vector<16x512xf32>
    %16 = math.tanh %15 : vector<16x512xf32>
    %cst_8 = arith.constant 1.000000e+00 : f32
    %17 = vector.broadcast %cst_8 : f32 to vector<16x512xf32>
    %18 = arith.addf %17, %16 : vector<16x512xf32>
    %cst_9 = arith.constant 5.000000e-01 : f32
    %19 = vector.broadcast %cst_9 : f32 to vector<16x512xf32>
    %20 = arith.mulf %19, %18 : vector<16x512xf32>
    %21 = arith.mulf %8, %20 : vector<16x512xf32>
    %c0_10 = arith.constant 0 : index
    %c0_11 = arith.constant 0 : index
    %22 = vector.load %arg11[%c0_10, %c0_11] : memref<16x256xf32, #tpu.memory_space<vmem>>, vector<16x256xf32>
    %23 = arith.truncf %21 : vector<16x512xf32> to vector<16x512xbf16>
    %c0_12 = arith.constant 0 : index
    %c0_13 = arith.constant 0 : index
    %24 = vector.load %arg7[%c0_12, %c0_13] : memref<512x256xbf16, #tpu.memory_space<vmem>>, vector<512x256xbf16>
    %cst_14 = arith.constant dense<0.000000e+00> : vector<16x256xf32>
    %25 = tpu.matmul %23, %24, %cst_14 {dimension_numbers = #tpu.dot_dimension_numbers<[1], [0], [0], [1], [0, 0, 1, 1], [], []>} : vector<16x512xbf16>, vector<512x256xbf16>, vector<16x256xf32> -> vector<16x256xf32>
    %26 = arith.addf %22, %25 : vector<16x256xf32>
    %c0_15 = arith.constant 0 : index
    %c0_16 = arith.constant 0 : index
    %27 = vector.load %arg11[%c0_15, %c0_16] : memref<16x256xf32, #tpu.memory_space<vmem>>, vector<16x256xf32>
    tpu.vector_store %arg11[%c0_15, %c0_16], %26 {strides = array<i32>} : memref<16x256xf32, #tpu.memory_space<vmem>>, vector<16x256xf32>,
    %c0_i32_17 = arith.constant 0 : i32
    %28 = arith.cmpi eq, %arg1, %c0_i32_17 : i32
    %29 = arith.extui %28 : i1 to i32
    %c0_i32_18 = arith.constant 0 : i32
    %30 = arith.cmpi ne, %29, %c0_i32_18 : i32
    scf.if %30 {
      %c0_19 = arith.constant 0 : index
      %c0_20 = arith.constant 0 : index
      %31 = vector.load %arg11[%c0_19, %c0_20] : memref<16x256xf32, #tpu.memory_space<vmem>>, vector<16x256xf32>
      %c0_21 = arith.constant 0 : index
      %c0_22 = arith.constant 0 : index
      %32 = vector.load %arg8[%c0_21, %c0_22] : memref<1x256xf32, #tpu.memory_space<vmem>>, vector<1x256xf32>
      %33 = vector.broadcast %32 : vector<1x256xf32> to vector<16x256xf32>
      %34 = arith.addf %31, %33 : vector<16x256xf32>
      %c0_23 = arith.constant 0 : index
      %c0_24 = arith.constant 0 : index
      %35 = vector.load %arg9[%c0_23, %c0_24] : memref<16x256xf32, #tpu.memory_space<vmem>>, vector<16x256xf32>
      tpu.vector_store %arg9[%c0_23, %c0_24], %34 {strides = array<i32>} : memref<16x256xf32, #tpu.memory_space<vmem>>, vector<16x256xf32>,
    } else {
    }
    return
  }
  func.func @transform_0(%arg0: i32, %arg1: i32) -> (i32, i32) {
    %c0_i32 = arith.constant 0 : i32
    %c0_i32_0 = arith.constant 0 : i32
    return %arg0, %c0_i32 : i32, i32
  }
  func.func @transform_1(%arg0: i32, %arg1: i32) -> (i32, i32) {
    %c0_i32 = arith.constant 0 : i32
    %c0_i32_0 = arith.constant 0 : i32
    %c0_i32_1 = arith.constant 0 : i32
    return %c0_i32, %c0_i32_0 : i32, i32
  }
  func.func @transform_2(%arg0: i32, %arg1: i32) -> (i32, i32) {
    %c0_i32 = arith.constant 0 : i32
    %c0_i32_0 = arith.constant 0 : i32
    %c0_i32_1 = arith.constant 0 : i32
    return %c0_i32, %c0_i32_0 : i32, i32
  }
  func.func @transform_3(%arg0: i32, %arg1: i32) -> (i32, i32) {
    %c0_i32 = arith.constant 0 : i32
    %c0_i32_0 = arith.constant 0 : i32
    return %c0_i32, %arg1 : i32, i32
  }
  func.func @transform_4(%arg0: i32, %arg1: i32) -> (i32, i32) {
    %c0_i32 = arith.constant 0 : i32
    %c0_i32_0 = arith.constant 0 : i32
    return %c0_i32, %arg1 : i32, i32
  }
  func.func @transform_5(%arg0: i32, %arg1: i32) -> (i32, i32) {
    %c0_i32 = arith.constant 0 : i32
    %c0_i32_0 = arith.constant 0 : i32
    return %arg1, %c0_i32 : i32, i32
  }
  func.func @transform_6(%arg0: i32, %arg1: i32) -> (i32, i32) {
    %c0_i32 = arith.constant 0 : i32
    %c0_i32_0 = arith.constant 0 : i32
    %c0_i32_1 = arith.constant 0 : i32
    return %c0_i32, %c0_i32_0 : i32, i32
  }
  func.func @transform_7(%arg0: i32, %arg1: i32) -> (i32, i32) {
    %c0_i32 = arith.constant 0 : i32
    %c0_i32_0 = arith.constant 0 : i32
    return %arg0, %c0_i32 : i32, i32
  }
}

module attributes {stable_mosaic.version = 11 : i64} {
  func.func @_linear_kernel(%arg0: i32, %arg1: i32, %arg2: i32, %arg3: memref<8x64xf32, #tpu.memory_space<vmem>>, %arg4: memref<64x256xbf16, #tpu.memory_space<vmem>>, %arg5: memref<1x256xf32, #tpu.memory_space<vmem>>, %arg6: memref<8x256xf32, #tpu.memory_space<vmem>>, %arg7: memref<8x256xf32, #tpu.memory_space<vmem>>) attributes {dimension_semantics = [#tpu.dimension_semantics<parallel>, #tpu.dimension_semantics<parallel>, #tpu.dimension_semantics<arbitrary>], iteration_bounds = array<i64: 1, 1, 1>, scalar_prefetch = 0 : i64, scratch_operands = 1 : i64, tpu.core_type = #tpu.core_type<tc>, window_params = [{transform_indices = @transform_0, window_bounds = array<i64: 8, 64>}, {transform_indices = @transform_1, window_bounds = array<i64: 64, 256>}, {transform_indices = @transform_2, window_bounds = array<i64: 1, 256>}, {transform_indices = @transform_3, window_bounds = array<i64: 8, 256>}]} {
    %c0_i32 = arith.constant 0 : i32
    %0 = arith.cmpi eq, %arg2, %c0_i32 : i32
    %1 = arith.extui %0 : i1 to i32
    %c0_i32_0 = arith.constant 0 : i32
    %2 = arith.cmpi ne, %1, %c0_i32_0 : i32
    scf.if %2 {
      %cst_10 = arith.constant 0.000000e+00 : f32
      %13 = vector.broadcast %cst_10 : f32 to vector<8x256xf32>
      %c0_11 = arith.constant 0 : index
      %c0_12 = arith.constant 0 : index
      %14 = vector.load %arg7[%c0_11, %c0_12] : memref<8x256xf32, #tpu.memory_space<vmem>>, vector<8x256xf32>
      tpu.vector_store %arg7[%c0_11, %c0_12], %13 {strides = array<i32>} : memref<8x256xf32, #tpu.memory_space<vmem>>, vector<8x256xf32>,
    } else {
    }
    %c0 = arith.constant 0 : index
    %c0_1 = arith.constant 0 : index
    %3 = vector.load %arg7[%c0, %c0_1] : memref<8x256xf32, #tpu.memory_space<vmem>>, vector<8x256xf32>
    %c0_2 = arith.constant 0 : index
    %c0_3 = arith.constant 0 : index
    %4 = vector.load %arg3[%c0_2, %c0_3] : memref<8x64xf32, #tpu.memory_space<vmem>>, vector<8x64xf32>
    %5 = arith.truncf %4 : vector<8x64xf32> to vector<8x64xbf16>
    %c0_4 = arith.constant 0 : index
    %c0_5 = arith.constant 0 : index
    %6 = vector.load %arg4[%c0_4, %c0_5] : memref<64x256xbf16, #tpu.memory_space<vmem>>, vector<64x256xbf16>
    %cst = arith.constant dense<0.000000e+00> : vector<8x256xf32>
    %7 = tpu.matmul %5, %6, %cst {dimension_numbers = #tpu.dot_dimension_numbers<[1], [0], [0], [1], [0, 0, 1, 1], [], []>} : vector<8x64xbf16>, vector<64x256xbf16>, vector<8x256xf32> -> vector<8x256xf32>
    %8 = arith.addf %3, %7 : vector<8x256xf32>
    %c0_6 = arith.constant 0 : index
    %c0_7 = arith.constant 0 : index
    %9 = vector.load %arg7[%c0_6, %c0_7] : memref<8x256xf32, #tpu.memory_space<vmem>>, vector<8x256xf32>
    tpu.vector_store %arg7[%c0_6, %c0_7], %8 {strides = array<i32>} : memref<8x256xf32, #tpu.memory_space<vmem>>, vector<8x256xf32>,
    %c0_i32_8 = arith.constant 0 : i32
    %10 = arith.cmpi eq, %arg2, %c0_i32_8 : i32
    %11 = arith.extui %10 : i1 to i32
    %c0_i32_9 = arith.constant 0 : i32
    %12 = arith.cmpi ne, %11, %c0_i32_9 : i32
    scf.if %12 {
      %c0_10 = arith.constant 0 : index
      %c0_11 = arith.constant 0 : index
      %13 = vector.load %arg7[%c0_10, %c0_11] : memref<8x256xf32, #tpu.memory_space<vmem>>, vector<8x256xf32>
      %c0_12 = arith.constant 0 : index
      %c0_13 = arith.constant 0 : index
      %14 = vector.load %arg5[%c0_12, %c0_13] : memref<1x256xf32, #tpu.memory_space<vmem>>, vector<1x256xf32>
      %15 = vector.broadcast %14 : vector<1x256xf32> to vector<8x256xf32>
      %16 = arith.addf %13, %15 : vector<8x256xf32>
      %c0_14 = arith.constant 0 : index
      %c0_15 = arith.constant 0 : index
      %17 = vector.load %arg6[%c0_14, %c0_15] : memref<8x256xf32, #tpu.memory_space<vmem>>, vector<8x256xf32>
      tpu.vector_store %arg6[%c0_14, %c0_15], %16 {strides = array<i32>} : memref<8x256xf32, #tpu.memory_space<vmem>>, vector<8x256xf32>,
    } else {
    }
    return
  }
  func.func @transform_0(%arg0: i32, %arg1: i32, %arg2: i32) -> (i32, i32) {
    %c0_i32 = arith.constant 0 : i32
    return %arg0, %arg2 : i32, i32
  }
  func.func @transform_1(%arg0: i32, %arg1: i32, %arg2: i32) -> (i32, i32) {
    %c0_i32 = arith.constant 0 : i32
    return %arg2, %arg1 : i32, i32
  }
  func.func @transform_2(%arg0: i32, %arg1: i32, %arg2: i32) -> (i32, i32) {
    %c0_i32 = arith.constant 0 : i32
    %c0_i32_0 = arith.constant 0 : i32
    return %c0_i32, %arg1 : i32, i32
  }
  func.func @transform_3(%arg0: i32, %arg1: i32, %arg2: i32) -> (i32, i32) {
    %c0_i32 = arith.constant 0 : i32
    return %arg0, %arg1 : i32, i32
  }
}

module attributes {stable_mosaic.version = 11 : i64} {
  func.func @_token_mix_kernel(%arg0: i32, %arg1: memref<1x16x256xf32, #tpu.memory_space<vmem>>, %arg2: memref<16x16xbf16, #tpu.memory_space<vmem>>, %arg3: memref<1x256xf32, #tpu.memory_space<vmem>>, %arg4: memref<1x256xf32, #tpu.memory_space<vmem>>, %arg5: memref<16x128xf32, #tpu.memory_space<vmem>>, %arg6: memref<1x16x256xf32, #tpu.memory_space<vmem>>) attributes {dimension_semantics = [#tpu.dimension_semantics<parallel>], iteration_bounds = array<i64: 2>, scalar_prefetch = 0 : i64, scratch_operands = 0 : i64, tpu.core_type = #tpu.core_type<tc>, window_params = [{transform_indices = @transform_0, window_bounds = array<i64: 1, 16, 256>}, {pipeline_mode = #tpu.pipeline_mode<synchronous>, transform_indices = @transform_1, window_bounds = array<i64: 16, 16>}, {pipeline_mode = #tpu.pipeline_mode<synchronous>, transform_indices = @transform_2, window_bounds = array<i64: 1, 256>}, {pipeline_mode = #tpu.pipeline_mode<synchronous>, transform_indices = @transform_3, window_bounds = array<i64: 1, 256>}, {pipeline_mode = #tpu.pipeline_mode<synchronous>, transform_indices = @transform_4, window_bounds = array<i64: 16, 128>}, {transform_indices = @transform_5, window_bounds = array<i64: 1, 16, 256>}]} {
    %c0 = arith.constant 0 : index
    %c0_0 = arith.constant 0 : index
    %0 = vector.load %arg3[%c0, %c0_0] : memref<1x256xf32, #tpu.memory_space<vmem>>, vector<1x256xf32>
    %c0_1 = arith.constant 0 : index
    %c0_2 = arith.constant 0 : index
    %1 = vector.load %arg4[%c0_1, %c0_2] : memref<1x256xf32, #tpu.memory_space<vmem>>, vector<1x256xf32>
    %c0_3 = arith.constant 0 : index
    %c0_4 = arith.constant 0 : index
    %2 = vector.load %arg2[%c0_3, %c0_4] : memref<16x16xbf16, #tpu.memory_space<vmem>>, vector<16x16xbf16>
    %c0_5 = arith.constant 0 : index
    %c0_6 = arith.constant 0 : index
    %3 = vector.load %arg5[%c0_5, %c0_6] : memref<16x128xf32, #tpu.memory_space<vmem>>, vector<16x1xf32>
    %c0_7 = arith.constant 0 : index
    %c0_8 = arith.constant 0 : index
    %c0_9 = arith.constant 0 : index
    %4 = vector.load %arg1[%c0_7, %c0_8, %c0_9] : memref<1x16x256xf32, #tpu.memory_space<vmem>>, vector<1x16x256xf32>
    %5 = vector.shape_cast %4 : vector<1x16x256xf32> to vector<16x256xf32>
    %cst = arith.constant dense<0.000000e+00> : vector<16xf32>
    %6 = vector.multi_reduction <add>, %5, %cst [1] : vector<16x256xf32> to vector<16xf32>
    %7 = vector.shape_cast %6 : vector<16xf32> to vector<16x1xf32>
    %cst_10 = arith.constant 2.560000e+02 : f32
    %8 = vector.broadcast %cst_10 : f32 to vector<16x1xf32>
    %9 = arith.divf %7, %8 : vector<16x1xf32>
    %10 = vector.broadcast %9 : vector<16x1xf32> to vector<16x256xf32>
    %11 = arith.subf %5, %10 : vector<16x256xf32>
    %12 = arith.mulf %11, %11 : vector<16x256xf32>
    %cst_11 = arith.constant dense<0.000000e+00> : vector<16xf32>
    %13 = vector.multi_reduction <add>, %12, %cst_11 [1] : vector<16x256xf32> to vector<16xf32>
    %14 = vector.shape_cast %13 : vector<16xf32> to vector<16x1xf32>
    %cst_12 = arith.constant 2.560000e+02 : f32
    %15 = vector.broadcast %cst_12 : f32 to vector<16x1xf32>
    %16 = arith.divf %14, %15 : vector<16x1xf32>
    %17 = vector.broadcast %9 : vector<16x1xf32> to vector<16x256xf32>
    %18 = arith.subf %5, %17 : vector<16x256xf32>
    %cst_13 = arith.constant 9.99999996E-13 : f32
    %19 = vector.broadcast %cst_13 : f32 to vector<16x1xf32>
    %20 = arith.addf %16, %19 : vector<16x1xf32>
    %21 = math.rsqrt %20 : vector<16x1xf32>
    %22 = vector.broadcast %21 : vector<16x1xf32> to vector<16x256xf32>
    %23 = arith.mulf %18, %22 : vector<16x256xf32>
    %24 = vector.broadcast %0 : vector<1x256xf32> to vector<16x256xf32>
    %25 = arith.mulf %23, %24 : vector<16x256xf32>
    %26 = vector.broadcast %1 : vector<1x256xf32> to vector<16x256xf32>
    %27 = arith.addf %25, %26 : vector<16x256xf32>
    %28 = arith.truncf %27 : vector<16x256xf32> to vector<16x256xbf16>
    %cst_14 = arith.constant dense<0.000000e+00> : vector<16x256xf32>
    %29 = tpu.matmul %2, %28, %cst_14 {dimension_numbers = #tpu.dot_dimension_numbers<[1], [0], [0], [1], [0, 0, 1, 1], [], []>} : vector<16x16xbf16>, vector<16x256xbf16>, vector<16x256xf32> -> vector<16x256xf32>
    %30 = arith.addf %5, %29 : vector<16x256xf32>
    %31 = vector.broadcast %3 : vector<16x1xf32> to vector<16x256xf32>
    %32 = arith.addf %30, %31 : vector<16x256xf32>
    %c0_15 = arith.constant 0 : index
    %c0_16 = arith.constant 0 : index
    %c0_17 = arith.constant 0 : index
    %33 = vector.load %arg6[%c0_15, %c0_16, %c0_17] : memref<1x16x256xf32, #tpu.memory_space<vmem>>, vector<1x16x256xf32>
    %34 = vector.shape_cast %33 : vector<1x16x256xf32> to vector<16x256xf32>
    %35 = vector.shape_cast %32 : vector<16x256xf32> to vector<1x16x256xf32>
    tpu.vector_store %arg6[%c0_15, %c0_16, %c0_17], %35 {strides = array<i32>} : memref<1x16x256xf32, #tpu.memory_space<vmem>>, vector<1x16x256xf32>,
    return
  }
  func.func @transform_0(%arg0: i32) -> (i32, i32, i32) {
    %c0_i32 = arith.constant 0 : i32
    %c0_i32_0 = arith.constant 0 : i32
    %c0_i32_1 = arith.constant 0 : i32
    return %arg0, %c0_i32, %c0_i32_0 : i32, i32, i32
  }
  func.func @transform_1(%arg0: i32) -> (i32, i32) {
    %c0_i32 = arith.constant 0 : i32
    %c0_i32_0 = arith.constant 0 : i32
    %c0_i32_1 = arith.constant 0 : i32
    return %c0_i32, %c0_i32_0 : i32, i32
  }
  func.func @transform_2(%arg0: i32) -> (i32, i32) {
    %c0_i32 = arith.constant 0 : i32
    %c0_i32_0 = arith.constant 0 : i32
    %c0_i32_1 = arith.constant 0 : i32
    return %c0_i32, %c0_i32_0 : i32, i32
  }
  func.func @transform_3(%arg0: i32) -> (i32, i32) {
    %c0_i32 = arith.constant 0 : i32
    %c0_i32_0 = arith.constant 0 : i32
    %c0_i32_1 = arith.constant 0 : i32
    return %c0_i32, %c0_i32_0 : i32, i32
  }
  func.func @transform_4(%arg0: i32) -> (i32, i32) {
    %c0_i32 = arith.constant 0 : i32
    %c0_i32_0 = arith.constant 0 : i32
    %c0_i32_1 = arith.constant 0 : i32
    return %c0_i32, %c0_i32_0 : i32, i32
  }
  func.func @transform_5(%arg0: i32) -> (i32, i32, i32) {
    %c0_i32 = arith.constant 0 : i32
    %c0_i32_0 = arith.constant 0 : i32
    %c0_i32_1 = arith.constant 0 : i32
    return %arg0, %c0_i32, %c0_i32_0 : i32, i32, i32
  }
}

module attributes {stable_mosaic.version = 11 : i64} {
  func.func @_layernorm_kernel(%arg0: i32, %arg1: memref<16x256xf32, #tpu.memory_space<vmem>>, %arg2: memref<1x256xf32, #tpu.memory_space<vmem>>, %arg3: memref<1x256xf32, #tpu.memory_space<vmem>>, %arg4: memref<16x256xf32, #tpu.memory_space<vmem>>) attributes {dimension_semantics = [#tpu.dimension_semantics<parallel>], iteration_bounds = array<i64: 2>, scalar_prefetch = 0 : i64, scratch_operands = 0 : i64, tpu.core_type = #tpu.core_type<tc>, window_params = [{transform_indices = @transform_0, window_bounds = array<i64: 16, 256>}, {pipeline_mode = #tpu.pipeline_mode<synchronous>, transform_indices = @transform_1, window_bounds = array<i64: 1, 256>}, {pipeline_mode = #tpu.pipeline_mode<synchronous>, transform_indices = @transform_2, window_bounds = array<i64: 1, 256>}, {transform_indices = @transform_3, window_bounds = array<i64: 16, 256>}]} {
    %c0 = arith.constant 0 : index
    %c0_0 = arith.constant 0 : index
    %0 = vector.load %arg1[%c0, %c0_0] : memref<16x256xf32, #tpu.memory_space<vmem>>, vector<16x256xf32>
    %cst = arith.constant dense<0.000000e+00> : vector<16xf32>
    %1 = vector.multi_reduction <add>, %0, %cst [1] : vector<16x256xf32> to vector<16xf32>
    %2 = vector.shape_cast %1 : vector<16xf32> to vector<16x1xf32>
    %cst_1 = arith.constant 2.560000e+02 : f32
    %3 = vector.broadcast %cst_1 : f32 to vector<16x1xf32>
    %4 = arith.divf %2, %3 : vector<16x1xf32>
    %5 = vector.broadcast %4 : vector<16x1xf32> to vector<16x256xf32>
    %6 = arith.subf %0, %5 : vector<16x256xf32>
    %7 = arith.mulf %6, %6 : vector<16x256xf32>
    %cst_2 = arith.constant dense<0.000000e+00> : vector<16xf32>
    %8 = vector.multi_reduction <add>, %7, %cst_2 [1] : vector<16x256xf32> to vector<16xf32>
    %9 = vector.shape_cast %8 : vector<16xf32> to vector<16x1xf32>
    %cst_3 = arith.constant 2.560000e+02 : f32
    %10 = vector.broadcast %cst_3 : f32 to vector<16x1xf32>
    %11 = arith.divf %9, %10 : vector<16x1xf32>
    %12 = vector.broadcast %4 : vector<16x1xf32> to vector<16x256xf32>
    %13 = arith.subf %0, %12 : vector<16x256xf32>
    %cst_4 = arith.constant 9.99999996E-13 : f32
    %14 = vector.broadcast %cst_4 : f32 to vector<16x1xf32>
    %15 = arith.addf %11, %14 : vector<16x1xf32>
    %16 = math.rsqrt %15 : vector<16x1xf32>
    %17 = vector.broadcast %16 : vector<16x1xf32> to vector<16x256xf32>
    %18 = arith.mulf %13, %17 : vector<16x256xf32>
    %c0_5 = arith.constant 0 : index
    %c0_6 = arith.constant 0 : index
    %19 = vector.load %arg2[%c0_5, %c0_6] : memref<1x256xf32, #tpu.memory_space<vmem>>, vector<1x256xf32>
    %20 = vector.broadcast %19 : vector<1x256xf32> to vector<16x256xf32>
    %21 = arith.mulf %18, %20 : vector<16x256xf32>
    %c0_7 = arith.constant 0 : index
    %c0_8 = arith.constant 0 : index
    %22 = vector.load %arg3[%c0_7, %c0_8] : memref<1x256xf32, #tpu.memory_space<vmem>>, vector<1x256xf32>
    %23 = vector.broadcast %22 : vector<1x256xf32> to vector<16x256xf32>
    %24 = arith.addf %21, %23 : vector<16x256xf32>
    %c0_9 = arith.constant 0 : index
    %c0_10 = arith.constant 0 : index
    %25 = vector.load %arg4[%c0_9, %c0_10] : memref<16x256xf32, #tpu.memory_space<vmem>>, vector<16x256xf32>
    tpu.vector_store %arg4[%c0_9, %c0_10], %24 {strides = array<i32>} : memref<16x256xf32, #tpu.memory_space<vmem>>, vector<16x256xf32>,
    return
  }
  func.func @transform_0(%arg0: i32) -> (i32, i32) {
    %c0_i32 = arith.constant 0 : i32
    %c0_i32_0 = arith.constant 0 : i32
    return %arg0, %c0_i32 : i32, i32
  }
  func.func @transform_1(%arg0: i32) -> (i32, i32) {
    %c0_i32 = arith.constant 0 : i32
    %c0_i32_0 = arith.constant 0 : i32
    %c0_i32_1 = arith.constant 0 : i32
    return %c0_i32, %c0_i32_0 : i32, i32
  }
  func.func @transform_2(%arg0: i32) -> (i32, i32) {
    %c0_i32 = arith.constant 0 : i32
    %c0_i32_0 = arith.constant 0 : i32
    %c0_i32_1 = arith.constant 0 : i32
    return %c0_i32, %c0_i32_0 : i32, i32
  }
  func.func @transform_3(%arg0: i32) -> (i32, i32) {
    %c0_i32 = arith.constant 0 : i32
    %c0_i32_0 = arith.constant 0 : i32
    return %arg0, %c0_i32 : i32, i32
  }
}

module attributes {stable_mosaic.version = 11 : i64} {
  func.func @_ffn_kernel(%arg0: i32, %arg1: i32, %arg2: memref<16x256xf32, #tpu.memory_space<vmem>>, %arg3: memref<1x256xf32, #tpu.memory_space<vmem>>, %arg4: memref<1x256xf32, #tpu.memory_space<vmem>>, %arg5: memref<256x512xbf16, #tpu.memory_space<vmem>>, %arg6: memref<1x512xf32, #tpu.memory_space<vmem>>, %arg7: memref<512x256xbf16, #tpu.memory_space<vmem>>, %arg8: memref<1x256xf32, #tpu.memory_space<vmem>>, %arg9: memref<16x256xf32, #tpu.memory_space<vmem>>, %arg10: memref<16x256xbf16, #tpu.memory_space<vmem>>, %arg11: memref<16x256xf32, #tpu.memory_space<vmem>>) attributes {dimension_semantics = [#tpu.dimension_semantics<parallel>, #tpu.dimension_semantics<arbitrary>], iteration_bounds = array<i64: 2, 1>, scalar_prefetch = 0 : i64, scratch_operands = 2 : i64, tpu.core_type = #tpu.core_type<tc>, window_params = [{transform_indices = @transform_0, window_bounds = array<i64: 16, 256>}, {pipeline_mode = #tpu.pipeline_mode<synchronous>, transform_indices = @transform_1, window_bounds = array<i64: 1, 256>}, {pipeline_mode = #tpu.pipeline_mode<synchronous>, transform_indices = @transform_2, window_bounds = array<i64: 1, 256>}, {transform_indices = @transform_3, window_bounds = array<i64: 256, 512>}, {transform_indices = @transform_4, window_bounds = array<i64: 1, 512>}, {transform_indices = @transform_5, window_bounds = array<i64: 512, 256>}, {pipeline_mode = #tpu.pipeline_mode<synchronous>, transform_indices = @transform_6, window_bounds = array<i64: 1, 256>}, {transform_indices = @transform_7, window_bounds = array<i64: 16, 256>}]} {
    %c0_i32 = arith.constant 0 : i32
    %0 = arith.cmpi eq, %arg1, %c0_i32 : i32
    %1 = arith.extui %0 : i1 to i32
    %c0_i32_0 = arith.constant 0 : i32
    %2 = arith.cmpi ne, %1, %c0_i32_0 : i32
    scf.if %2 {
      %c0_19 = arith.constant 0 : index
      %c0_20 = arith.constant 0 : index
      %31 = vector.load %arg2[%c0_19, %c0_20] : memref<16x256xf32, #tpu.memory_space<vmem>>, vector<16x256xf32>
      %cst_21 = arith.constant dense<0.000000e+00> : vector<16xf32>
      %32 = vector.multi_reduction <add>, %31, %cst_21 [1] : vector<16x256xf32> to vector<16xf32>
      %33 = vector.shape_cast %32 : vector<16xf32> to vector<16x1xf32>
      %cst_22 = arith.constant 2.560000e+02 : f32
      %34 = vector.broadcast %cst_22 : f32 to vector<16x1xf32>
      %35 = arith.divf %33, %34 : vector<16x1xf32>
      %36 = vector.broadcast %35 : vector<16x1xf32> to vector<16x256xf32>
      %37 = arith.subf %31, %36 : vector<16x256xf32>
      %38 = arith.mulf %37, %37 : vector<16x256xf32>
      %cst_23 = arith.constant dense<0.000000e+00> : vector<16xf32>
      %39 = vector.multi_reduction <add>, %38, %cst_23 [1] : vector<16x256xf32> to vector<16xf32>
      %40 = vector.shape_cast %39 : vector<16xf32> to vector<16x1xf32>
      %cst_24 = arith.constant 2.560000e+02 : f32
      %41 = vector.broadcast %cst_24 : f32 to vector<16x1xf32>
      %42 = arith.divf %40, %41 : vector<16x1xf32>
      %43 = vector.broadcast %35 : vector<16x1xf32> to vector<16x256xf32>
      %44 = arith.subf %31, %43 : vector<16x256xf32>
      %cst_25 = arith.constant 9.99999996E-13 : f32
      %45 = vector.broadcast %cst_25 : f32 to vector<16x1xf32>
      %46 = arith.addf %42, %45 : vector<16x1xf32>
      %47 = math.rsqrt %46 : vector<16x1xf32>
      %48 = vector.broadcast %47 : vector<16x1xf32> to vector<16x256xf32>
      %49 = arith.mulf %44, %48 : vector<16x256xf32>
      %c0_26 = arith.constant 0 : index
      %c0_27 = arith.constant 0 : index
      %50 = vector.load %arg3[%c0_26, %c0_27] : memref<1x256xf32, #tpu.memory_space<vmem>>, vector<1x256xf32>
      %51 = vector.broadcast %50 : vector<1x256xf32> to vector<16x256xf32>
      %52 = arith.mulf %49, %51 : vector<16x256xf32>
      %c0_28 = arith.constant 0 : index
      %c0_29 = arith.constant 0 : index
      %53 = vector.load %arg4[%c0_28, %c0_29] : memref<1x256xf32, #tpu.memory_space<vmem>>, vector<1x256xf32>
      %54 = vector.broadcast %53 : vector<1x256xf32> to vector<16x256xf32>
      %55 = arith.addf %52, %54 : vector<16x256xf32>
      %56 = arith.truncf %55 : vector<16x256xf32> to vector<16x256xbf16>
      %c0_30 = arith.constant 0 : index
      %c0_31 = arith.constant 0 : index
      %57 = vector.load %arg10[%c0_30, %c0_31] : memref<16x256xbf16, #tpu.memory_space<vmem>>, vector<16x256xbf16>
      tpu.vector_store %arg10[%c0_30, %c0_31], %56 {strides = array<i32>} : memref<16x256xbf16, #tpu.memory_space<vmem>>, vector<16x256xbf16>,
      %c0_32 = arith.constant 0 : index
      %c0_33 = arith.constant 0 : index
      %58 = vector.load %arg11[%c0_32, %c0_33] : memref<16x256xf32, #tpu.memory_space<vmem>>, vector<16x256xf32>
      tpu.vector_store %arg11[%c0_32, %c0_33], %31 {strides = array<i32>} : memref<16x256xf32, #tpu.memory_space<vmem>>, vector<16x256xf32>,
    } else {
    }
    %c0 = arith.constant 0 : index
    %c0_1 = arith.constant 0 : index
    %3 = vector.load %arg10[%c0, %c0_1] : memref<16x256xbf16, #tpu.memory_space<vmem>>, vector<16x256xbf16>
    %c0_2 = arith.constant 0 : index
    %c0_3 = arith.constant 0 : index
    %4 = vector.load %arg5[%c0_2, %c0_3] : memref<256x512xbf16, #tpu.memory_space<vmem>>, vector<256x512xbf16>
    %cst = arith.constant dense<0.000000e+00> : vector<16x512xf32>
    %5 = tpu.matmul %3, %4, %cst {dimension_numbers = #tpu.dot_dimension_numbers<[1], [0], [0], [1], [0, 0, 1, 1], [], []>} : vector<16x256xbf16>, vector<256x512xbf16>, vector<16x512xf32> -> vector<16x512xf32>
    %c0_4 = arith.constant 0 : index
    %c0_5 = arith.constant 0 : index
    %6 = vector.load %arg6[%c0_4, %c0_5] : memref<1x512xf32, #tpu.memory_space<vmem>>, vector<1x512xf32>
    %7 = vector.broadcast %6 : vector<1x512xf32> to vector<16x512xf32>
    %8 = arith.addf %5, %7 : vector<16x512xf32>
    %9 = arith.mulf %8, %8 : vector<16x512xf32>
    %10 = arith.mulf %8, %9 : vector<16x512xf32>
    %cst_6 = arith.constant 4.471500e-02 : f32
    %11 = vector.broadcast %cst_6 : f32 to vector<16x512xf32>
    %12 = arith.mulf %11, %10 : vector<16x512xf32>
    %13 = arith.addf %8, %12 : vector<16x512xf32>
    %cst_7 = arith.constant 0.797884583 : f32
    %14 = vector.broadcast %cst_7 : f32 to vector<16x512xf32>
    %15 = arith.mulf %14, %13 : vector<16x512xf32>
    %16 = math.tanh %15 : vector<16x512xf32>
    %cst_8 = arith.constant 1.000000e+00 : f32
    %17 = vector.broadcast %cst_8 : f32 to vector<16x512xf32>
    %18 = arith.addf %17, %16 : vector<16x512xf32>
    %cst_9 = arith.constant 5.000000e-01 : f32
    %19 = vector.broadcast %cst_9 : f32 to vector<16x512xf32>
    %20 = arith.mulf %19, %18 : vector<16x512xf32>
    %21 = arith.mulf %8, %20 : vector<16x512xf32>
    %c0_10 = arith.constant 0 : index
    %c0_11 = arith.constant 0 : index
    %22 = vector.load %arg11[%c0_10, %c0_11] : memref<16x256xf32, #tpu.memory_space<vmem>>, vector<16x256xf32>
    %23 = arith.truncf %21 : vector<16x512xf32> to vector<16x512xbf16>
    %c0_12 = arith.constant 0 : index
    %c0_13 = arith.constant 0 : index
    %24 = vector.load %arg7[%c0_12, %c0_13] : memref<512x256xbf16, #tpu.memory_space<vmem>>, vector<512x256xbf16>
    %cst_14 = arith.constant dense<0.000000e+00> : vector<16x256xf32>
    %25 = tpu.matmul %23, %24, %cst_14 {dimension_numbers = #tpu.dot_dimension_numbers<[1], [0], [0], [1], [0, 0, 1, 1], [], []>} : vector<16x512xbf16>, vector<512x256xbf16>, vector<16x256xf32> -> vector<16x256xf32>
    %26 = arith.addf %22, %25 : vector<16x256xf32>
    %c0_15 = arith.constant 0 : index
    %c0_16 = arith.constant 0 : index
    %27 = vector.load %arg11[%c0_15, %c0_16] : memref<16x256xf32, #tpu.memory_space<vmem>>, vector<16x256xf32>
    tpu.vector_store %arg11[%c0_15, %c0_16], %26 {strides = array<i32>} : memref<16x256xf32, #tpu.memory_space<vmem>>, vector<16x256xf32>,
    %c0_i32_17 = arith.constant 0 : i32
    %28 = arith.cmpi eq, %arg1, %c0_i32_17 : i32
    %29 = arith.extui %28 : i1 to i32
    %c0_i32_18 = arith.constant 0 : i32
    %30 = arith.cmpi ne, %29, %c0_i32_18 : i32
    scf.if %30 {
      %c0_19 = arith.constant 0 : index
      %c0_20 = arith.constant 0 : index
      %31 = vector.load %arg11[%c0_19, %c0_20] : memref<16x256xf32, #tpu.memory_space<vmem>>, vector<16x256xf32>
      %c0_21 = arith.constant 0 : index
      %c0_22 = arith.constant 0 : index
      %32 = vector.load %arg8[%c0_21, %c0_22] : memref<1x256xf32, #tpu.memory_space<vmem>>, vector<1x256xf32>
      %33 = vector.broadcast %32 : vector<1x256xf32> to vector<16x256xf32>
      %34 = arith.addf %31, %33 : vector<16x256xf32>
      %c0_23 = arith.constant 0 : index
      %c0_24 = arith.constant 0 : index
      %35 = vector.load %arg9[%c0_23, %c0_24] : memref<16x256xf32, #tpu.memory_space<vmem>>, vector<16x256xf32>
      tpu.vector_store %arg9[%c0_23, %c0_24], %34 {strides = array<i32>} : memref<16x256xf32, #tpu.memory_space<vmem>>, vector<16x256xf32>,
    } else {
    }
    return
  }
  func.func @transform_0(%arg0: i32, %arg1: i32) -> (i32, i32) {
    %c0_i32 = arith.constant 0 : i32
    %c0_i32_0 = arith.constant 0 : i32
    return %arg0, %c0_i32 : i32, i32
  }
  func.func @transform_1(%arg0: i32, %arg1: i32) -> (i32, i32) {
    %c0_i32 = arith.constant 0 : i32
    %c0_i32_0 = arith.constant 0 : i32
    %c0_i32_1 = arith.constant 0 : i32
    return %c0_i32, %c0_i32_0 : i32, i32
  }
  func.func @transform_2(%arg0: i32, %arg1: i32) -> (i32, i32) {
    %c0_i32 = arith.constant 0 : i32
    %c0_i32_0 = arith.constant 0 : i32
    %c0_i32_1 = arith.constant 0 : i32
    return %c0_i32, %c0_i32_0 : i32, i32
  }
  func.func @transform_3(%arg0: i32, %arg1: i32) -> (i32, i32) {
    %c0_i32 = arith.constant 0 : i32
    %c0_i32_0 = arith.constant 0 : i32
    return %c0_i32, %arg1 : i32, i32
  }
  func.func @transform_4(%arg0: i32, %arg1: i32) -> (i32, i32) {
    %c0_i32 = arith.constant 0 : i32
    %c0_i32_0 = arith.constant 0 : i32
    return %c0_i32, %arg1 : i32, i32
  }
  func.func @transform_5(%arg0: i32, %arg1: i32) -> (i32, i32) {
    %c0_i32 = arith.constant 0 : i32
    %c0_i32_0 = arith.constant 0 : i32
    return %arg1, %c0_i32 : i32, i32
  }
  func.func @transform_6(%arg0: i32, %arg1: i32) -> (i32, i32) {
    %c0_i32 = arith.constant 0 : i32
    %c0_i32_0 = arith.constant 0 : i32
    %c0_i32_1 = arith.constant 0 : i32
    return %c0_i32, %c0_i32_0 : i32, i32
  }
  func.func @transform_7(%arg0: i32, %arg1: i32) -> (i32, i32) {
    %c0_i32 = arith.constant 0 : i32
    %c0_i32_0 = arith.constant 0 : i32
    return %arg0, %c0_i32 : i32, i32
  }
}

module attributes {stable_mosaic.version = 11 : i64} {
  func.func @_head_kernel(%arg0: memref<2x256xf32, #tpu.memory_space<vmem>>, %arg1: memref<256x256xbf16, #tpu.memory_space<vmem>>, %arg2: memref<1x256xf32, #tpu.memory_space<vmem>>, %arg3: memref<256x10xbf16, #tpu.memory_space<vmem>>, %arg4: memref<1x10xf32, #tpu.memory_space<vmem>>, %arg5: memref<256x256xbf16, #tpu.memory_space<vmem>>, %arg6: memref<1x256xf32, #tpu.memory_space<vmem>>, %arg7: memref<256x256xbf16, #tpu.memory_space<vmem>>, %arg8: memref<1x256xf32, #tpu.memory_space<vmem>>, %arg9: memref<256x4xbf16, #tpu.memory_space<vmem>>, %arg10: memref<1x4xf32, #tpu.memory_space<vmem>>, %arg11: memref<2x10xf32, #tpu.memory_space<vmem>>, %arg12: memref<2x4xf32, #tpu.memory_space<vmem>>) attributes {dimension_semantics = [], scalar_prefetch = 0 : i64, scratch_operands = 0 : i64, tpu.core_type = #tpu.core_type<tc>} {
    %c0 = arith.constant 0 : index
    %c0_0 = arith.constant 0 : index
    %0 = vector.load %arg0[%c0, %c0_0] : memref<2x256xf32, #tpu.memory_space<vmem>>, vector<2x256xf32>
    %1 = arith.truncf %0 : vector<2x256xf32> to vector<2x256xbf16>
    %c0_1 = arith.constant 0 : index
    %c0_2 = arith.constant 0 : index
    %2 = vector.load %arg1[%c0_1, %c0_2] : memref<256x256xbf16, #tpu.memory_space<vmem>>, vector<256x256xbf16>
    %cst = arith.constant dense<0.000000e+00> : vector<2x256xf32>
    %3 = tpu.matmul %1, %2, %cst {dimension_numbers = #tpu.dot_dimension_numbers<[1], [0], [0], [1], [0, 0, 1, 1], [], []>} : vector<2x256xbf16>, vector<256x256xbf16>, vector<2x256xf32> -> vector<2x256xf32>
    %c0_3 = arith.constant 0 : index
    %c0_4 = arith.constant 0 : index
    %4 = vector.load %arg2[%c0_3, %c0_4] : memref<1x256xf32, #tpu.memory_space<vmem>>, vector<1x256xf32>
    %5 = vector.broadcast %4 : vector<1x256xf32> to vector<2x256xf32>
    %6 = arith.addf %3, %5 : vector<2x256xf32>
    %7 = math.tanh %6 : vector<2x256xf32>
    %8 = arith.truncf %7 : vector<2x256xf32> to vector<2x256xbf16>
    %c0_5 = arith.constant 0 : index
    %c0_6 = arith.constant 0 : index
    %9 = vector.load %arg3[%c0_5, %c0_6] : memref<256x10xbf16, #tpu.memory_space<vmem>>, vector<256x10xbf16>
    %cst_7 = arith.constant dense<0.000000e+00> : vector<2x10xf32>
    %10 = tpu.matmul %8, %9, %cst_7 {dimension_numbers = #tpu.dot_dimension_numbers<[1], [0], [0], [1], [0, 0, 1, 1], [], []>} : vector<2x256xbf16>, vector<256x10xbf16>, vector<2x10xf32> -> vector<2x10xf32>
    %c0_8 = arith.constant 0 : index
    %c0_9 = arith.constant 0 : index
    %11 = vector.load %arg4[%c0_8, %c0_9] : memref<1x10xf32, #tpu.memory_space<vmem>>, vector<1x10xf32>
    %12 = vector.broadcast %11 : vector<1x10xf32> to vector<2x10xf32>
    %13 = arith.addf %10, %12 : vector<2x10xf32>
    %c0_10 = arith.constant 0 : index
    %c0_11 = arith.constant 0 : index
    %14 = vector.load %arg11[%c0_10, %c0_11] : memref<2x10xf32, #tpu.memory_space<vmem>>, vector<2x10xf32>
    tpu.vector_store %arg11[%c0_10, %c0_11], %13 {strides = array<i32>} : memref<2x10xf32, #tpu.memory_space<vmem>>, vector<2x10xf32>,
    %c0_12 = arith.constant 0 : index
    %c0_13 = arith.constant 0 : index
    %15 = vector.load %arg5[%c0_12, %c0_13] : memref<256x256xbf16, #tpu.memory_space<vmem>>, vector<256x256xbf16>
    %cst_14 = arith.constant dense<0.000000e+00> : vector<2x256xf32>
    %16 = tpu.matmul %8, %15, %cst_14 {dimension_numbers = #tpu.dot_dimension_numbers<[1], [0], [0], [1], [0, 0, 1, 1], [], []>} : vector<2x256xbf16>, vector<256x256xbf16>, vector<2x256xf32> -> vector<2x256xf32>
    %c0_15 = arith.constant 0 : index
    %c0_16 = arith.constant 0 : index
    %17 = vector.load %arg6[%c0_15, %c0_16] : memref<1x256xf32, #tpu.memory_space<vmem>>, vector<1x256xf32>
    %18 = vector.broadcast %17 : vector<1x256xf32> to vector<2x256xf32>
    %19 = arith.addf %16, %18 : vector<2x256xf32>
    %cst_17 = arith.constant 0.000000e+00 : f32
    %20 = vector.broadcast %cst_17 : f32 to vector<2x256xf32>
    %21 = arith.maximumf %19, %20 : vector<2x256xf32>
    %22 = arith.truncf %21 : vector<2x256xf32> to vector<2x256xbf16>
    %c0_18 = arith.constant 0 : index
    %c0_19 = arith.constant 0 : index
    %23 = vector.load %arg7[%c0_18, %c0_19] : memref<256x256xbf16, #tpu.memory_space<vmem>>, vector<256x256xbf16>
    %cst_20 = arith.constant dense<0.000000e+00> : vector<2x256xf32>
    %24 = tpu.matmul %22, %23, %cst_20 {dimension_numbers = #tpu.dot_dimension_numbers<[1], [0], [0], [1], [0, 0, 1, 1], [], []>} : vector<2x256xbf16>, vector<256x256xbf16>, vector<2x256xf32> -> vector<2x256xf32>
    %c0_21 = arith.constant 0 : index
    %c0_22 = arith.constant 0 : index
    %25 = vector.load %arg8[%c0_21, %c0_22] : memref<1x256xf32, #tpu.memory_space<vmem>>, vector<1x256xf32>
    %26 = vector.broadcast %25 : vector<1x256xf32> to vector<2x256xf32>
    %27 = arith.addf %24, %26 : vector<2x256xf32>
    %cst_23 = arith.constant 0.000000e+00 : f32
    %28 = vector.broadcast %cst_23 : f32 to vector<2x256xf32>
    %29 = arith.maximumf %27, %28 : vector<2x256xf32>
    %30 = arith.truncf %29 : vector<2x256xf32> to vector<2x256xbf16>
    %c0_24 = arith.constant 0 : index
    %c0_25 = arith.constant 0 : index
    %31 = vector.load %arg9[%c0_24, %c0_25] : memref<256x4xbf16, #tpu.memory_space<vmem>>, vector<256x4xbf16>
    %cst_26 = arith.constant dense<0.000000e+00> : vector<2x4xf32>
    %32 = tpu.matmul %30, %31, %cst_26 {dimension_numbers = #tpu.dot_dimension_numbers<[1], [0], [0], [1], [0, 0, 1, 1], [], []>} : vector<2x256xbf16>, vector<256x4xbf16>, vector<2x4xf32> -> vector<2x4xf32>
    %c0_27 = arith.constant 0 : index
    %c0_28 = arith.constant 0 : index
    %33 = vector.load %arg10[%c0_27, %c0_28] : memref<1x4xf32, #tpu.memory_space<vmem>>, vector<1x4xf32>
    %34 = vector.broadcast %33 : vector<1x4xf32> to vector<2x4xf32>
    %35 = arith.addf %32, %34 : vector<2x4xf32>
    %36 = arith.negf %35 : vector<2x4xf32>
    %37 = math.exp %36 : vector<2x4xf32>
    %cst_29 = arith.constant 1.000000e+00 : f32
    %38 = vector.broadcast %cst_29 : f32 to vector<2x4xf32>
    %39 = arith.addf %38, %37 : vector<2x4xf32>
    %40 = arith.divf %38, %39 : vector<2x4xf32>
    %c0_30 = arith.constant 0 : index
    %c0_31 = arith.constant 0 : index
    %41 = vector.load %arg12[%c0_30, %c0_31] : memref<2x4xf32, #tpu.memory_space<vmem>>, vector<2x4xf32>
    tpu.vector_store %arg12[%c0_30, %c0_31], %40 {strides = array<i32>} : memref<2x4xf32, #tpu.memory_space<vmem>>, vector<2x4xf32>,
    return
  }
}

</mosaic_0001>

<bundles_post_ra>
// kernel: visualbert_resmlp_prediction.8
= control target key start
LH: loop header
LB: loop body
LE: loop exit
PB: predicated region body
PF: predicated region fallthrough
CT: control target
= control target key end

     0   :  { %s381_s12 = smov 0   ;;  %s411_s0 = inlined_call_operand.vmem [shape: f32[32,256], index: 0, kind: input, shape index: {}]   ;;  %s412_s1 = inlined_call_operand.vmem [shape: f32[1,256], index: 1, kind: input, shape index: {}]   ;;  %s413_s2 = inlined_call_operand.vmem [shape: f32[1,256], index: 2, kind: input, shape index: {}]   ;;  %s414_s3 = inlined_call_operand.vmem [shape: f32[32,256], index: 3, kind: output, shape index: {}]  }
   0x1 LB: > { %s322_s13 = sadd.s32 4294967295, %s358_s12   ;;  %p326_p0 = scmp.ge.s32.totalorder %s358_s12, 1  ;;  %s358_s12 = sphi %s381_s12, %s13_s12  }
   0x2   : > { %p139_p1 = scmp.lt.s32.totalorder %s358_s12, 3 }
   0x4   : > { %p140_p2 = pnand %p326_p0, %p139_p1 }
   0x5   : > { %s327_s14 = sshll.u32 (!%p140_p2), %s322_s13, 1 }
   0x6   : > { %143 = sbr.rel (%p140_p2) target bundleno = 295 (0x127), region = 32  ;;  %p166_p3 = scmp.lt.s32.totalorder (!%p140_p2), %s327_s14, 3 }
   0xb   : > { %s416_s14 = smov (!%p166_p3, %s327_s14), 3  ;;  %v360_v6 = vmov 256.0   ;;  %v240_v37 = vld [vmem:[%s412_s1] sm:$0x3] }
   0xc   : > { %s335_s15 = sshll.u32 %s416_s14, 4  ;;  %346 = vrcp.f32 %v360_v6  ;;  %v250_v40 = vld [vmem:[%s413_s2] sm:$0x3]  ;;  %v242_v43 = vperm.slane %v240_v37, 0  ;;  %v243_v44 = vperm.slane %v240_v37, 1 }
   0xd   : > { %s170_s18 = scalar_lea.vmem %s411_s0, %s335_s15  ;;  %v252_v47 = vperm.slane %v250_v40, 0  ;;  %v253_v48 = vperm.slane %v250_v40, 1  ;;  %s177_s25 = scalar_lea.vmem %s414_s3, %s335_s15 }
   0xe   : > { %v179_v0 = vld [vmem:[%s170_s18] sm:$0xff]  ;;  %v180_v1 = vld [vmem:[%s170_s18 + $0x8] sm:$0xff]  ;;  %v181_v3 = vld [vmem:[%s170_s18 + $0x10] sm:$0xff] }
   0xf   : > { %v183_v2 = vadd.f32 %v180_v1, %v179_v0  ;;  %v182_v4 = vld [vmem:[%s170_s18 + $0x18] sm:$0xff] }
  0x10   : > { %v186_v5 = vadd.f32 %v182_v4, %v181_v3 }
  0x11   : > { %184 = vadd.xlane.f32.xlu0 %v183_v2 }
  0x12   : > { %v347_v7 = vpop.eup %346 }
  0x13   : > { %v190_v8 = vmul.f32 256.0, %v347_v7  ;;  %vm194_vm0 = vweird.f32 %v347_v7 }
  0x15   : > { %v191_v9 = vsub.f32 1.0, %v190_v8 }
  0x17   : > { %v192_v10 = vmul.f32 %v347_v7, %v191_v9 }
  0x19   : > { %187 = vadd.xlane.f32.xlu0 %v186_v5  ;;  %v193_v11 = vadd.f32 %v347_v7, %v192_v10 }
  0x1b   : > { %v195_v12 = vsel %vm194_vm0, %v347_v7, %v193_v11 }
  0x84   : > { %v185_v13 = vpop.xlane.xlu0 %184 }
  0x85   : > { %v196_v14 = vmul.f32 %v195_v12, %v185_v13 }
  0x87   : > { %v198_v15 = vsub.f32 %v179_v0, %v196_v14  ;;  %v199_v16 = vsub.f32 %v180_v1, %v196_v14 }
  0x89   : > { %v202_v17 = vmul.f32 %v198_v15, %v198_v15  ;;  %v203_v18 = vmul.f32 %v199_v16, %v199_v16 }
  0x8b   : > { %v206_v19 = vadd.f32 %v203_v18, %v202_v17 }
  0x8c   : > { %v188_v20 = vpop.xlane.xlu0 %187 }
  0x8d   : > { %v197_v21 = vmul.f32 %v195_v12, %v188_v20  ;;  %207 = vadd.xlane.f32.xlu1 %v206_v19 }
  0x8f   : > { %v200_v22 = vsub.f32 %v181_v3, %v197_v21  ;;  %v201_v23 = vsub.f32 %v182_v4, %v197_v21 }
  0x91   : > { %v204_v24 = vmul.f32 %v200_v22, %v200_v22  ;;  %v205_v25 = vmul.f32 %v201_v23, %v201_v23 }
  0x93   : > { %v209_v26 = vadd.f32 %v205_v25, %v204_v24 }
  0x95   : > { %210 = vadd.xlane.f32.xlu1 %v209_v26 }
 0x100   : > { %v208_v27 = vpop.xlane.xlu1 %207 }
 0x101   : > { %v212_v28 = vmul.f32 %v208_v27, %v195_v12 }
 0x103   : > { %v214_v29 = vadd.f32 1e-12, %v212_v28 }
 0x105   : > { %348 = vrsqrt.f32 %v214_v29  ;;  %vm222_vm2 = vweird.f32 %v214_v29 }
 0x108   : > { %v211_v30 = vpop.xlane.xlu1 %210 }
 0x109   : > { %v213_v31 = vmul.f32 %v211_v30, %v195_v12 }
 0x10b   : > { %v349_v32 = vpop.eup %348  ;;  %v215_v33 = vadd.f32 1e-12, %v213_v31 }
 0x10c   : > { %v217_v34 = vmul.f32 %v349_v32, %v214_v29  ;;  %vm223_vm1 = vweird.f32 %v349_v32 }
 0x10d   : > { %350 = vrsqrt.f32 %v215_v33  ;;  %vm224_vm3 = vmor %vm222_vm2, %vm223_vm1  ;;  %vm232_vm5 = vweird.f32 %v215_v33 }
 0x10e   : > { %v218_v35 = vmul.f32 %v349_v32, %v217_v34 }
 0x110   : > { %v219_v36 = vmul.f32 0.5, %v218_v35 }
 0x112   : > { %v220_v38 = vsub.f32 1.5, %v219_v36 }
 0x113   : > { %v351_v39 = vpop.eup %350 }
 0x114   : > { %v221_v41 = vmul.f32 %v349_v32, %v220_v38  ;;  %v227_v42 = vmul.f32 %v351_v39, %v215_v33  ;;  %vm233_vm4 = vweird.f32 %v351_v39 }
 0x115   : > { %vm234_vm6 = vmor %vm232_vm5, %vm233_vm4 }
 0x116   : > { %v225_v45 = vsel %vm224_vm3, %v349_v32, %v221_v41  ;;  %v228_v46 = vmul.f32 %v351_v39, %v227_v42 }
 0x117   : > { %v236_v49 = vmul.f32 %v225_v45, %v198_v15  ;;  %v237_v50 = vmul.f32 %v225_v45, %v199_v16 }
 0x118   : > { %v229_v51 = vmul.f32 0.5, %v228_v46 }
 0x119   : > { %v246_v52 = vmul.f32 %v242_v43, %v236_v49  ;;  %v247_v53 = vmul.f32 %v243_v44, %v237_v50 }
 0x11a   : > { %v230_v54 = vsub.f32 1.5, %v229_v51 }
 0x11b   : > { %v256_v55 = vadd.f32 %v252_v47, %v246_v52  ;;  %v257_v56 = vadd.f32 %v253_v48, %v247_v53 }
 0x11c   : > { %v231_v57 = vmul.f32 %v351_v39, %v230_v54 }
 0x11d   : > { %260 = vst [vmem:[%s177_s25] sm:$0xff] %v256_v55 }
 0x11e   : > { %261 = vst [vmem:[%s177_s25 + $0x8] sm:$0xff] %v257_v56  ;;  %v235_v58 = vsel %vm234_vm6, %v351_v39, %v231_v57 }
 0x11f   : > { %v238_v59 = vmul.f32 %v235_v58, %v200_v22  ;;  %v239_v60 = vmul.f32 %v235_v58, %v201_v23 }
 0x121   : > { %v248_v61 = vmul.f32 %v242_v43, %v238_v59  ;;  %v249_v62 = vmul.f32 %v243_v44, %v239_v60 }
 0x123   : > { %v258_v63 = vadd.f32 %v252_v47, %v248_v61  ;;  %v259_v0 = vadd.f32 %v253_v48, %v249_v62 }
 0x125   : > { %262 = vst [vmem:[%s177_s25 + $0x10] sm:$0xff] %v258_v63 }
 0x126   : > { %263 = vst [vmem:[%s177_s25 + $0x18] sm:$0xff] %v259_v0 }
 0x127 PF: > { %s13_s12 = sadd.s32 1, %s358_s12  }
 0x128   : > { %p10_p4 = scmp.ge.s32.totalorder %s13_s12, 4  }
 0x12a   :  { %12 = sbr.rel (!%p10_p4) target bundleno = 1 (0x1), region = 62 }

// kernel: visualbert_resmlp_prediction.7
= control target key start
LH: loop header
LB: loop body
LE: loop exit
PB: predicated region body
PF: predicated region fallthrough
CT: control target
= control target key end

     0   :  { %vm73_vm0 = vcmask 523264   ;;  %s248_s1 = inlined_call_operand.vmem [shape: bf16[64,256], index: 1, kind: input, shape index: {}]   ;;  %s249_s0 = inlined_call_operand.vmem [shape: f32[8,64], index: 0, kind: input, shape index: {}]   ;;  %s250_s2 = inlined_call_operand.vmem [shape: f32[1,256], index: 2, kind: input, shape index: {}]   ;;  %s251_s3 = inlined_call_operand.vmem [shape: f32[8,256], index: 3, kind: output, shape index: {}]  }
   0x1   :  { %v152_v0 = vld [vmem:[%s248_s1 + $0x30] sm:$0xf]  ;;  %v167_v1 = vld [vmem:[%s248_s1 + $0x34] sm:$0xf0]  ;;  %v166_v2 = vld [vmem:[%s248_s1 + $0x34] sm:$0xf] }
   0x2   :  { %v153_v3 = vor.u32 %v167_v1, %v152_v0  ;;  %v154_v4 = vld [vmem:[%s248_s1 + $0x38] sm:$0xf0]  ;;  %v144_v5 = vld [vmem:[%s248_s1 + $0x20] sm:$0xf]  ;;  %v165_v6 = vld [vmem:[%s248_s1 + $0x24] sm:$0xf0] }
   0x3   :  { %v157_v7 = vor.u32 %v166_v2, %v154_v4  ;;  %v164_v8 = vld [vmem:[%s248_s1 + $0x24] sm:$0xf]  ;;  %v146_v9 = vld [vmem:[%s248_s1 + $0x28] sm:$0xf0]  ;;  %v145_v10 = vor.u32 %v165_v6, %v144_v5  ;;  %v136_v12 = vld [vmem:[%s248_s1 + $0x10] sm:$0xf] }
   0x4   :  { %81 = vmatpush.bf16.msra.mxu0 %v153_v3  ;;  %v149_v11 = vor.u32 %v164_v8, %v146_v9  ;;  %v163_v13 = vld [vmem:[%s248_s1 + $0x14] sm:$0xf0]  ;;  %v162_v14 = vld [vmem:[%s248_s1 + $0x14] sm:$0xf]  ;;  %v138_v15 = vld [vmem:[%s248_s1 + $0x18] sm:$0xf0] }
   0x5   :  { %94 = vmatpush.bf16.msra.mxu1 %v157_v7  ;;  %v137_v16 = vor.u32 %v163_v13, %v136_v12  ;;  %v141_v17 = vor.u32 %v162_v14, %v138_v15  ;;  %v128_v18 = vld [vmem:[%s248_s1] sm:$0xf]  ;;  %v161_v19 = vld [vmem:[%s248_s1 + $0x4] sm:$0xf0]  ;;  %v160_v20 = vld [vmem:[%s248_s1 + $0x4] sm:$0xf] }
   0x6   :  { %v130_v21 = vld [vmem:[%s248_s1 + $0x8] sm:$0xf0]  ;;  %v129_v22 = vor.u32 %v161_v19, %v128_v18  ;;  %v23_v23 = vld [vmem:[%s249_s0] sm:$0xff] }
   0x7   :  { %v133_v24 = vor.u32 %v160_v20, %v130_v21  ;;  %v24_v25 = vpack.c.bf16 %v23_v23, %v23_v23  ;;  %v112_v26 = vld [vmem:[%s250_s2] sm:$0x3] }
   0x8   :  { %82 = vmatpush.bf16.msra.mxu0 %v145_v10  ;;  %v114_v27 = vperm.slane %v112_v26, 0  ;;  %v115_v28 = vperm.slane %v112_v26, 1 }
   0x9   :  { %95 = vmatpush.bf16.msra.mxu1 %v149_v11 }
   0xc   :  { %83 = vmatpush.bf16.msra.mxu0 %v137_v16 }
   0xd   :  { %96 = vmatpush.bf16.msra.mxu1 %v141_v17 }
  0x10   :  { %84 = vmatpush.bf16.msra.mxu0 %v129_v22 }
  0x11   :  { %97 = vmatpush.bf16.msra.mxu1 %v133_v24 }
  0x13   :  { %158 = vmatmul.msk.bf16.vlgmr.msra.gmra.mxu0 %vm73_vm0, %v24_v25 }
  0x14   :  { %159 = vmatmul.msk.bf16.vlgmr.msra.gmra.mxu1 %vm73_vm0, %v24_v25 }
  0x90   :  { %v86_v29 = vpop.f32.mrf.mxu0 }
  0x91   :  { %v118_v30 = vadd.f32 %v114_v27, %v86_v29  ;;  %v99_v31 = vpop.f32.mrf.mxu1 }
  0x92   :  { %v119_v32 = vadd.f32 %v115_v28, %v99_v31 }
  0x93   :  { %120 = vst [vmem:[%s251_s3] sm:$0xff] %v118_v30 }
  0x94   :  { %121 = vst [vmem:[%s251_s3 + $0x8] sm:$0xff] %v119_v32 }
  0x98   :  { %v88_v33 = vpop.f32.mrf.mxu0 }
  0x99   :  { %v101_v34 = vpop.f32.mrf.mxu1 }

// kernel: visualbert_resmlp_prediction.9
= control target key start
LH: loop header
LB: loop body
LE: loop exit
PB: predicated region body
PF: predicated region fallthrough
CT: control target
= control target key end

     0   :  { %s505_s18 = smov 0   ;;  %s564_s0 = inlined_call_operand.vmem [shape: f32[2,16,256], index: 0, kind: input, shape index: {}]   ;;  %s565_s1 = inlined_call_operand.vmem [shape: bf16[16,16], index: 1, kind: input, shape index: {}]   ;;  %s566_s2 = inlined_call_operand.vmem [shape: f32[1,256], index: 2, kind: input, shape index: {}]   ;;  %s567_s3 = inlined_call_operand.vmem [shape: f32[1,256], index: 3, kind: input, shape index: {}]   ;;  %s568_s4 = inlined_call_operand.vmem [shape: f32[16,128], index: 4, kind: input, shape index: {}]   ;;  %s569_s5 = inlined_call_operand.vmem [shape: f32[2,16,256], index: 5, kind: output, shape index: {}]  }
   0x1 LB: > { %s427_s19 = sadd.s32 4294967295, %s471_s18   ;;  %p431_p0 = scmp.ge.s32.totalorder %s471_s18, 1  ;;  %s471_s18 = sphi %s505_s18, %s15_s18  }
   0x2   : > { %p187_p1 = scmp.lt.s32.totalorder %s471_s18, 3 }
   0x4   : > { %p188_p2 = pnand %p431_p0, %p187_p1 }
   0x5   : > { %p215_p3 = scmp.lt.s32.totalorder (!%p188_p2), %s427_s19, 1 }
   0x6   : > { %191 = sbr.rel (%p188_p2) target bundleno = 438 (0x1b6), region = 40 }
   0xb   : > { %s571_s19 = smov (!%p215_p3, %s427_s19), 1  ;;  %v473_v6 = vmov 256.0   ;;  %v230_v32 = vld [vmem:[%s568_s4] sm:$0xff]  ;;  %v474_v35 = vmov 0   ;;  %v231_v39 = vld [vmem:[%s568_s4 + $0x8] sm:$0xff]  ;;  %vm318_vm7 = vcmask 130048  }
   0xc   : > { %s444_s20 = sshll.u32 %s571_s19, 5  ;;  %459 = vrcp.f32 %v473_v6  ;;  %457 = vset.pattern.permute.xlu2 %v474_v35  ;;  %458 = vset.pattern.permute.xlu0 %v474_v35  ;;  %v226_v46 = vld [vmem:[%s566_s2] sm:$0x3] }
   0xd   : > { %s219_s23 = scalar_lea.vmem %s564_s0, %s444_s20  ;;  %356 = vperm.xlu2 %457, %v230_v32   ;;  %v227_v49 = vld [vmem:[%s567_s3] sm:$0x3]  ;;  %v294_v51 = vperm.slane %v226_v46, 0  ;;  %v295_v53 = vperm.slane %v226_v46, 1  ;;  %s224_s11 = scalar_lea.vmem %s569_s5, %s444_s20 }
   0xe   : > { %v521_v0 = vld [vmem:[%s219_s23] sm:$0xff]  ;;  %v523_v1 = vld [vmem:[%s219_s23 + $0x8] sm:$0xff]  ;;  %v527_v3 = vld [vmem:[%s219_s23 + $0x10] sm:$0xff]  ;;  %v303_v56 = vperm.slane %v227_v49, 0  ;;  %v304_v57 = vperm.slane %v227_v49, 1 }
   0xf   : > { %v236_v2 = vadd.f32 %v523_v1, %v521_v0  ;;  %v529_v4 = vld [vmem:[%s219_s23 + $0x18] sm:$0xff] }
  0x10   : > { %v239_v5 = vadd.f32 %v529_v4, %v527_v3 }
  0x11   : > { %237 = vadd.xlane.f32.xlu0 %v236_v2 }
  0x12   : > { %v460_v7 = vpop.eup %459 }
  0x13   : > { %v243_v8 = vmul.f32 256.0, %v460_v7  ;;  %vm247_vm0 = vweird.f32 %v460_v7 }
  0x15   : > { %v244_v9 = vsub.f32 1.0, %v243_v8  ;;  %361 = vperm.xlu2 %457, %v231_v39  }
  0x17   : > { %v245_v10 = vmul.f32 %v460_v7, %v244_v9 }
  0x19   : > { %240 = vadd.xlane.f32.xlu0 %v239_v5  ;;  %v246_v11 = vadd.f32 %v460_v7, %v245_v10  ;;  %v446_v10 = vld [vmem:[%s565_s1] sm:$0xff] }
  0x1b   : > { %v248_v12 = vsel %vm247_vm0, %v460_v7, %v246_v11 }
  0x67   : > { %v357_v11 = vpop.permute.xlu2 %356 }
  0x84   : > { %v238_v13 = vpop.xlane.xlu0 %237 }
  0x85   : > { %v249_v14 = vmul.f32 %v248_v12, %v238_v13 }
  0x87   : > { %v251_v15 = vsub.f32 %v521_v0, %v249_v14  ;;  %v252_v16 = vsub.f32 %v523_v1, %v249_v14 }
  0x89   : > { %v255_v17 = vmul.f32 %v251_v15, %v251_v15  ;;  %v256_v18 = vmul.f32 %v252_v16, %v252_v16 }
  0x8b   : > { %v259_v19 = vadd.f32 %v256_v18, %v255_v17 }
  0x8c   : > { %v241_v20 = vpop.xlane.xlu0 %240 }
  0x8d   : > { %v250_v21 = vmul.f32 %v248_v12, %v241_v20  ;;  %260 = vadd.xlane.f32.xlu1 %v259_v19 }
  0x8f   : > { %v253_v22 = vsub.f32 %v527_v3, %v250_v21  ;;  %v254_v23 = vsub.f32 %v529_v4, %v250_v21 }
  0x91   : > { %v257_v24 = vmul.f32 %v253_v22, %v253_v22  ;;  %v258_v25 = vmul.f32 %v254_v23, %v254_v23 }
  0x93   : > { %v262_v26 = vadd.f32 %v258_v25, %v257_v24 }
  0x95   : > { %263 = vadd.xlane.f32.xlu1 %v262_v26 }
 0x100   : > { %v261_v27 = vpop.xlane.xlu1 %260 }
 0x101   : > { %v265_v28 = vmul.f32 %v261_v27, %v248_v12 }
 0x103   : > { %v267_v29 = vadd.f32 1e-12, %v265_v28 }
 0x105   : > { %461 = vrsqrt.f32 %v267_v29  ;;  %vm275_vm2 = vweird.f32 %v267_v29 }
 0x108   : > { %v264_v30 = vpop.xlane.xlu1 %263 }
 0x109   : > { %v266_v31 = vmul.f32 %v264_v30, %v248_v12 }
 0x10b   : > { %v462_v33 = vpop.eup %461  ;;  %v268_v34 = vadd.f32 1e-12, %v266_v31 }
 0x10c   : > { %v270_v36 = vmul.f32 %v462_v33, %v267_v29  ;;  %vm276_vm1 = vweird.f32 %v462_v33 }
 0x10d   : > { %463 = vrsqrt.f32 %v268_v34  ;;  %vm277_vm3 = vmor %vm275_vm2, %vm276_vm1  ;;  %vm285_vm5 = vweird.f32 %v268_v34 }
 0x10e   : > { %v271_v37 = vmul.f32 %v462_v33, %v270_v36 }
 0x110   : > { %v272_v38 = vmul.f32 0.5, %v271_v37 }
 0x112   : > { %v273_v40 = vsub.f32 1.5, %v272_v38 }
 0x113   : > { %v464_v41 = vpop.eup %463 }
 0x114   : > { %v274_v42 = vmul.f32 %v462_v33, %v273_v40  ;;  %v280_v43 = vmul.f32 %v464_v41, %v268_v34  ;;  %vm286_vm4 = vweird.f32 %v464_v41 }
 0x115   : > { %vm287_vm6 = vmor %vm285_vm5, %vm286_vm4 }
 0x116   : > { %v281_v44 = vmul.f32 %v464_v41, %v280_v43  ;;  %v278_v47 = vsel %vm277_vm3, %v462_v33, %v274_v42 }
 0x117   : > { %v289_v50 = vmul.f32 %v278_v47, %v251_v15  ;;  %v290_v52 = vmul.f32 %v278_v47, %v252_v16 }
 0x118   : > { %v282_v45 = vmul.f32 0.5, %v281_v44 }
 0x119   : > { %v298_v59 = vmul.f32 %v294_v51, %v289_v50  ;;  %v299_v61 = vmul.f32 %v295_v53, %v290_v52 }
 0x11a   : > { %v283_v48 = vsub.f32 1.5, %v282_v45 }
 0x11b   : > { %v307_v2 = vadd.f32 %v303_v56, %v298_v59  ;;  %v308_v6 = vadd.f32 %v304_v57, %v299_v61 }
 0x11c   : > { %v284_v54 = vmul.f32 %v464_v41, %v283_v48 }
 0x11e   : > { %v288_v55 = vsel %vm287_vm6, %v464_v41, %v284_v54 }
 0x11f   : > { %v291_v58 = vmul.f32 %v288_v55, %v253_v22  ;;  %v292_v60 = vmul.f32 %v288_v55, %v254_v23  ;;  %v362_v22 = vpop.permute.xlu2 %361 }
 0x121   : > { %v300_v62 = vmul.f32 %v294_v51, %v291_v58  ;;  %v301_v63 = vmul.f32 %v295_v53, %v292_v60 }
 0x123   : > { %v309_v5 = vadd.f32 %v303_v56, %v300_v62  ;;  %v310_v7 = vadd.f32 %v304_v57, %v301_v63 }
 0x125   : > { %v311_v8 = vpack.c.bf16 %v309_v5, %v307_v2  ;;  %v312_v9 = vpack.c.bf16 %v310_v7, %v308_v6 }
 0x127   : > { %329 = vmatpush.bf16.msra.mxu0 %v311_v8  ;;  %343 = vmatpush.bf16.msra.mxu1 %v312_v9 }
 0x12a   : > { %440 = vmatmul.msk.bf16.vlgmr.msra.gmra.mxu0 %vm318_vm7, %v446_v10  ;;  %441 = vmatmul.msk.bf16.vlgmr.msra.gmra.mxu1 %vm318_vm7, %v446_v10 }
 0x1a7   : > { %v331_v12 = vpop.f32.mrf.mxu0  ;;  %v345_v13 = vpop.f32.mrf.mxu1 }
 0x1a8   : > { %v350_v14 = vadd.f32 %v331_v12, %v521_v0  ;;  %v351_v15 = vadd.f32 %v345_v13, %v523_v1 }
 0x1aa   : > { %v364_v16 = vadd.f32 %v357_v11, %v350_v14  ;;  %v365_v17 = vadd.f32 %v357_v11, %v351_v15 }
 0x1ac   : > { %368 = vst [vmem:[%s224_s11] sm:$0xff] %v364_v16 }
 0x1ad   : > { %369 = vst [vmem:[%s224_s11 + $0x8] sm:$0xff] %v365_v17 }
 0x1af   : > { %v333_v18 = vpop.f32.mrf.mxu0  ;;  %v347_v19 = vpop.f32.mrf.mxu1 }
 0x1b0   : > { %v352_v20 = vadd.f32 %v333_v18, %v527_v3  ;;  %v353_v21 = vadd.f32 %v347_v19, %v529_v4 }
 0x1b2   : > { %v366_v23 = vadd.f32 %v362_v22, %v352_v20  ;;  %v367_v0 = vadd.f32 %v362_v22, %v353_v21 }
 0x1b4   : > { %370 = vst [vmem:[%s224_s11 + $0x10] sm:$0xff] %v366_v23 }
 0x1b5   : > { %371 = vst [vmem:[%s224_s11 + $0x18] sm:$0xff] %v367_v0 }
 0x1b6 PF: > { %s15_s18 = sadd.s32 1, %s471_s18  }
 0x1b7   : > { %p12_p4 = scmp.ge.s32.totalorder %s15_s18, 4  }
 0x1b9   :  { %14 = sbr.rel (!%p12_p4) target bundleno = 1 (0x1), region = 70 }

// kernel: visualbert_resmlp_prediction.10
= control target key start
LH: loop header
LB: loop body
LE: loop exit
PB: predicated region body
PF: predicated region fallthrough
CT: control target
= control target key end

     0   :  { %s2474_s24 = smov 0   ;;  %s2476_s25 = smov 0   ;;  %s3451_s0 = inlined_call_operand.vmem [shape: f32[32,256], index: 0, kind: input, shape index: {}]   ;;  %s3452_s1 = inlined_call_operand.vmem [shape: f32[1,256], index: 1, kind: input, shape index: {}]   ;;  %s3453_s2 = inlined_call_operand.vmem [shape: f32[1,256], index: 2, kind: input, shape index: {}]   ;;  %s3454_s3 = inlined_call_operand.vmem [shape: bf16[256,512], index: 3, kind: input, shape index: {}]   ;;  %s3455_s4 = inlined_call_operand.vmem [shape: f32[1,512], index: 4, kind: input, shape index: {}]   ;;  %s3456_s5 = inlined_call_operand.vmem [shape: bf16[512,256], index: 5, kind: input, shape index: {}]   ;;  %s3457_s6 = inlined_call_operand.vmem [shape: f32[1,256], index: 6, kind: input, shape index: {}]   ;;  %s3458_s7 = inlined_call_operand.vmem [shape: f32[32,256], index: 7, kind: output, shape index: {}]  }
   0x1   :  { %s2478_s26 = smov 0  }
   0x2 LB: > { %s29_s27 = sadd.s32 1, %s2427_s25  ;;  %p1697_p0 = scmp.ge.s32.totalorder %s2431_s26, 1  ;;  %s2431_s26 = sphi %s2478_s26, %s17_s26   ;;  %s2427_s25 = sphi %s2476_s25, %s3460_s25   ;;  %s2423_s24 = sphi %s2474_s24, %s3459_s24  }
   0x3   : > { %p31_p1 = scmp.ge.s32.totalorder %s29_s27, 2  ;;  %p284_p2 = scmp.lt.s32.totalorder %s2431_s26, 3 }
   0x5   : > { %s3462_s27 = smov (%p31_p1, %s29_s27), 0  ;;  %p285_p3 = pnand %p1697_p0, %p284_p2 }
   0x6   : > { %s1698_s28 = sshll.u32 (!%p285_p3), %s2423_s24, 1 }
   0x7   : > { %288 = sbr.rel (%p285_p3) target bundleno = 655 (0x28f), region = 48  ;;  %p334_p4 = scmp.lt.s32.totalorder (!%p285_p3), %s1698_s28, 3 }
   0xc   : > { %s3464_s28 = smov (!%p334_p4, %s1698_s28), 3  ;;  %v2433_v6 = vmov 256.0   ;;  %v1826_v27 = vld [vmem:[%s3454_s3 + $0xe0] sm:$0xf]  ;;  %v2260_v28 = vld [vmem:[%s3454_s3 + $0xec] sm:$0xf0] }
   0xd   : > { %s2226_s29 = sshll.u32 %s3464_s28, 4  ;;  %2383 = vrcp.f32 %v2433_v6  ;;  %v1954_v29 = vld [vmem:[%s3454_s3 + $0x1e0] sm:$0xf]  ;;  %v1827_v30 = vor.u32 %v2260_v28, %v1826_v27  ;;  %v2292_v31 = vld [vmem:[%s3454_s3 + $0x1ec] sm:$0xf0] }
   0xe   : > { %s2500_s9 = scalar_lea.vmem %s3451_s0, %s2226_s29  ;;  %v2258_v32 = vld [vmem:[%s3454_s3 + $0xe4] sm:$0xf]  ;;  %v1828_v33 = vld [vmem:[%s3454_s3 + $0xf0] sm:$0xf0]  ;;  %v1955_v34 = vor.u32 %v2292_v31, %v1954_v29  ;;  %v1810_v39 = vld [vmem:[%s3454_s3 + $0xc0] sm:$0xf]  ;;  %s3433_s22 = scalar_lea.vmem %s3458_s7, %s2226_s29 }
   0xf   : > { %v369_v0 = vld [vmem:[%s2500_s9] sm:$0xff]  ;;  %v370_v1 = vld [vmem:[%s2500_s9 + $0x8] sm:$0xff]  ;;  %v371_v3 = vld [vmem:[%s2500_s9 + $0x10] sm:$0xff]  ;;  %v1831_v35 = vor.u32 %v2258_v32, %v1828_v33  ;;  %864 = vmatpush.bf16.msra.mxu0 %v1827_v30 }
  0x10   : > { %v373_v2 = vadd.f32 %v370_v1, %v369_v0  ;;  %v372_v4 = vld [vmem:[%s2500_s9 + $0x18] sm:$0xff]  ;;  %v2290_v36 = vld [vmem:[%s3454_s3 + $0x1e4] sm:$0xf]  ;;  %v1956_v37 = vld [vmem:[%s3454_s3 + $0x1f0] sm:$0xf0]  ;;  %878 = vmatpush.bf16.msra.mxu1 %v1955_v34 }
  0x11   : > { %v376_v5 = vadd.f32 %v372_v4, %v371_v3  ;;  %v1959_v38 = vor.u32 %v2290_v36, %v1956_v37  ;;  %892 = vmatpush.bf16.msra.mxu2 %v1831_v35  ;;  %v2256_v40 = vld [vmem:[%s3454_s3 + $0xcc] sm:$0xf0]  ;;  %v1938_v41 = vld [vmem:[%s3454_s3 + $0x1c0] sm:$0xf]  ;;  %v2254_v44 = vld [vmem:[%s3454_s3 + $0xc4] sm:$0xf] }
  0x12   : > { %374 = vadd.xlane.f32.xlu0 %v373_v2  ;;  %v1811_v42 = vor.u32 %v2256_v40, %v1810_v39  ;;  %v2288_v43 = vld [vmem:[%s3454_s3 + $0x1cc] sm:$0xf0]  ;;  %v1812_v45 = vld [vmem:[%s3454_s3 + $0xd0] sm:$0xf0]  ;;  %v2286_v48 = vld [vmem:[%s3454_s3 + $0x1c4] sm:$0xf] }
  0x13   : > { %v2384_v7 = vpop.eup %2383  ;;  %906 = vmatpush.bf16.msra.mxu3 %v1959_v38  ;;  %v1939_v46 = vor.u32 %v2288_v43, %v1938_v41  ;;  %v1815_v47 = vor.u32 %v2254_v44, %v1812_v45  ;;  %v1940_v49 = vld [vmem:[%s3454_s3 + $0x1d0] sm:$0xf0]  ;;  %v1794_v51 = vld [vmem:[%s3454_s3 + $0xa0] sm:$0xf]  ;;  %v2252_v52 = vld [vmem:[%s3454_s3 + $0xac] sm:$0xf0] }
  0x14   : > { %v380_v8 = vmul.f32 256.0, %v2384_v7  ;;  %vm384_vm0 = vweird.f32 %v2384_v7  ;;  %865 = vmatpush.bf16.msra.mxu0 %v1811_v42  ;;  %v1943_v50 = vor.u32 %v2286_v48, %v1940_v49  ;;  %v1922_v53 = vld [vmem:[%s3454_s3 + $0x1a0] sm:$0xf]  ;;  %v1795_v54 = vor.u32 %v2252_v52, %v1794_v51  ;;  %v2284_v55 = vld [vmem:[%s3454_s3 + $0x1ac] sm:$0xf0] }
  0x15   : > { %879 = vmatpush.bf16.msra.mxu1 %v1939_v46  ;;  %893 = vmatpush.bf16.msra.mxu2 %v1815_v47  ;;  %v2250_v56 = vld [vmem:[%s3454_s3 + $0xa4] sm:$0xf]  ;;  %v1796_v57 = vld [vmem:[%s3454_s3 + $0xb0] sm:$0xf0]  ;;  %v1923_v58 = vor.u32 %v2284_v55, %v1922_v53  ;;  %v1778_v63 = vld [vmem:[%s3454_s3 + $0x80] sm:$0xf] }
  0x16   : > { %v381_v9 = vsub.f32 1.0, %v380_v8  ;;  %v1799_v59 = vor.u32 %v2250_v56, %v1796_v57  ;;  %v2282_v60 = vld [vmem:[%s3454_s3 + $0x1a4] sm:$0xf]  ;;  %v1924_v61 = vld [vmem:[%s3454_s3 + $0x1b0] sm:$0xf0] }
  0x17   : > { %907 = vmatpush.bf16.msra.mxu3 %v1943_v50  ;;  %v1927_v62 = vor.u32 %v2282_v60, %v1924_v61  ;;  %v2278_v8 = vld [vmem:[%s3454_s3 + $0x184] sm:$0xf]  ;;  %v1746_v28 = vld [vmem:[%s3454_s3 + $0x40] sm:$0xf]  ;;  %v2240_v29 = vld [vmem:[%s3454_s3 + $0x4c] sm:$0xf0] }
  0x18   : > { %v382_v10 = vmul.f32 %v2384_v7, %v381_v9  ;;  %866 = vmatpush.bf16.msra.mxu0 %v1795_v54  ;;  %v1908_v9 = vld [vmem:[%s3454_s3 + $0x190] sm:$0xf0]  ;;  %v1874_v30 = vld [vmem:[%s3454_s3 + $0x140] sm:$0xf]  ;;  %v1747_v31 = vor.u32 %v2240_v29, %v1746_v28  ;;  %v2272_v32 = vld [vmem:[%s3454_s3 + $0x14c] sm:$0xf0] }
  0x19   : > { %880 = vmatpush.bf16.msra.mxu1 %v1923_v58  ;;  %894 = vmatpush.bf16.msra.mxu2 %v1799_v59  ;;  %v2238_v33 = vld [vmem:[%s3454_s3 + $0x44] sm:$0xf]  ;;  %v1748_v34 = vld [vmem:[%s3454_s3 + $0x50] sm:$0xf0]  ;;  %v1875_v35 = vor.u32 %v2272_v32, %v1874_v30  ;;  %v1730_v40 = vld [vmem:[%s3454_s3 + $0x20] sm:$0xf] }
  0x1a   : > { %377 = vadd.xlane.f32.xlu0 %v376_v5  ;;  %v383_v11 = vadd.f32 %v2384_v7, %v382_v10  ;;  %v1780_v5 = vld [vmem:[%s3454_s3 + $0x90] sm:$0xf0]  ;;  %v1911_v10 = vor.u32 %v2278_v8, %v1908_v9  ;;  %v1751_v36 = vor.u32 %v2238_v33, %v1748_v34  ;;  %v2270_v37 = vld [vmem:[%s3454_s3 + $0x144] sm:$0xf]  ;;  %v2236_v41 = vld [vmem:[%s3454_s3 + $0x2c] sm:$0xf0] }
  0x1b   : > { %908 = vmatpush.bf16.msra.mxu3 %v1927_v62  ;;  %v1876_v38 = vld [vmem:[%s3454_s3 + $0x150] sm:$0xf0]  ;;  %v1858_v42 = vld [vmem:[%s3454_s3 + $0x120] sm:$0xf]  ;;  %v1731_v43 = vor.u32 %v2236_v41, %v1730_v40  ;;  %v2268_v44 = vld [vmem:[%s3454_s3 + $0x12c] sm:$0xf0] }
  0x1c   : > { %v2506_v12 = vsel %vm384_vm0, %v2384_v7, %v383_v11  ;;  %v1762_v11 = vld [vmem:[%s3454_s3 + $0x60] sm:$0xf]  ;;  %v1879_v39 = vor.u32 %v2270_v37, %v1876_v38  ;;  %v2234_v45 = vld [vmem:[%s3454_s3 + $0x24] sm:$0xf]  ;;  %v1732_v46 = vld [vmem:[%s3454_s3 + $0x30] sm:$0xf0]  ;;  %v1859_v47 = vor.u32 %v2268_v44, %v1858_v42 }
  0x1d   : > { %v1735_v48 = vor.u32 %v2234_v45, %v1732_v46  ;;  %v2266_v49 = vld [vmem:[%s3454_s3 + $0x124] sm:$0xf]  ;;  %v1860_v50 = vld [vmem:[%s3454_s3 + $0x130] sm:$0xf0]  ;;  %v1714_v52 = vld [vmem:[%s3454_s3] sm:$0xf] }
  0x1e   : > { %v1863_v51 = vor.u32 %v2266_v49, %v1860_v50  ;;  %v2232_v53 = vld [vmem:[%s3454_s3 + $0xc] sm:$0xf0]  ;;  %v1842_v54 = vld [vmem:[%s3454_s3 + $0x100] sm:$0xf]  ;;  %v2230_v57 = vld [vmem:[%s3454_s3 + $0x4] sm:$0xf] }
  0x1f   : > { %909 = vmatpush.bf16.msra.mxu3 %v1911_v10  ;;  %v1715_v55 = vor.u32 %v2232_v53, %v1714_v52  ;;  %v2264_v56 = vld [vmem:[%s3454_s3 + $0x10c] sm:$0xf0]  ;;  %v1716_v58 = vld [vmem:[%s3454_s3 + $0x10] sm:$0xf0]  ;;  %v2262_v62 = vld [vmem:[%s3454_s3 + $0x104] sm:$0xf] }
  0x20   : > { %v1843_v60 = vor.u32 %v2264_v56, %v1842_v54  ;;  %v1719_v61 = vor.u32 %v2230_v57, %v1716_v58  ;;  %v2259_v8 = vld [vmem:[%s3454_s3 + $0xec] sm:$0xf]  ;;  %v1836_v9 = vld [vmem:[%s3454_s3 + $0xf8] sm:$0xf0]  ;;  %v1802_v32 = vld [vmem:[%s3454_s3 + $0xa8] sm:$0xf] }
  0x21   : > { %v2291_v10 = vld [vmem:[%s3454_s3 + $0x1ec] sm:$0xf]  ;;  %v1948_v30 = vld [vmem:[%s3454_s3 + $0x1d8] sm:$0xf0]  ;;  %v2253_v33 = vld [vmem:[%s3454_s3 + $0xb4] sm:$0xf0] }
  0x22   : > { %v2287_v28 = vld [vmem:[%s3454_s3 + $0x1cc] sm:$0xf]  ;;  %v1930_v34 = vld [vmem:[%s3454_s3 + $0x1a8] sm:$0xf]  ;;  %v2285_v37 = vld [vmem:[%s3454_s3 + $0x1b4] sm:$0xf0] }
  0x23   : > { %v2251_v38 = vld [vmem:[%s3454_s3 + $0xac] sm:$0xf]  ;;  %v1931_v41 = vor.u32 %v2285_v37, %v1930_v34  ;;  %v1932_v44 = vld [vmem:[%s3454_s3 + $0x1b8] sm:$0xf0]  ;;  %v1786_v45 = vld [vmem:[%s3454_s3 + $0x88] sm:$0xf] }
  0x24   : > { %v1788_v52 = vld [vmem:[%s3454_s3 + $0x98] sm:$0xf0]  ;;  %v2279_v56 = vld [vmem:[%s3454_s3 + $0x18c] sm:$0xf]  ;;  %v2825_v58 = vld [vmem:[%s3452_s1] sm:$0x3] }
  0x25   : > { %v1916_v57 = vld [vmem:[%s3454_s3 + $0x198] sm:$0xf0] }
  0x26   : > { %v1884_v37 = vld [vmem:[%s3454_s3 + $0x158] sm:$0xf0] }
  0x85   : > { %v375_v13 = vpop.xlane.xlu0 %374 }
  0x86   : > { %v386_v14 = vmul.f32 %v2506_v12, %v375_v13  ;;  %v2244_v13 = vld [vmem:[%s3454_s3 + $0x6c] sm:$0xf0] }
  0x88   : > { %v2509_v15 = vsub.f32 %v369_v0, %v386_v14  ;;  %v2511_v16 = vsub.f32 %v370_v1, %v386_v14  ;;  %v2248_v0 = vld [vmem:[%s3454_s3 + $0x8c] sm:$0xf0]  ;;  %v1906_v1 = vld [vmem:[%s3454_s3 + $0x180] sm:$0xf] }
  0x89   : > { %v1779_v2 = vor.u32 %v2248_v0, %v1778_v63  ;;  %v1890_v14 = vld [vmem:[%s3454_s3 + $0x160] sm:$0xf]  ;;  %v1844_v63 = vld [vmem:[%s3454_s3 + $0x110] sm:$0xf0]  ;;  %v1834_v0 = vld [vmem:[%s3454_s3 + $0xe8] sm:$0xf] }
  0x8a   : > { %v392_v17 = vmul.f32 %v2509_v15, %v2509_v15  ;;  %v393_v18 = vmul.f32 %v2511_v16, %v2511_v16 }
  0x8b   : > { %867 = vmatpush.bf16.msra.mxu0 %v1779_v2  ;;  %v1847_v2 = vor.u32 %v2262_v62, %v1844_v63  ;;  %v432_v62 = vperm.slane %v2825_v58, 0  ;;  %v2832_v63 = vld [vmem:[%s3453_s2] sm:$0x3] }
  0x8c   : > { %v396_v19 = vadd.f32 %v393_v18, %v392_v17  ;;  %v1763_v17 = vor.u32 %v2244_v13, %v1762_v11  ;;  %v2276_v18 = vld [vmem:[%s3454_s3 + $0x16c] sm:$0xf0]  ;;  %v1839_v13 = vor.u32 %v2259_v8, %v1836_v9 }
  0x8d   : > { %v378_v20 = vpop.xlane.xlu0 %377 }
  0x8e   : > { %v387_v21 = vmul.f32 %v2506_v12, %v378_v20  ;;  %397 = vadd.xlane.f32.xlu1 %v396_v19  ;;  %v2242_v19 = vld [vmem:[%s3454_s3 + $0x64] sm:$0xf]  ;;  %v1764_v20 = vld [vmem:[%s3454_s3 + $0x70] sm:$0xf0] }
  0x8f   : > { %868 = vmatpush.bf16.msra.mxu0 %v1763_v17  ;;  %v1818_v17 = vld [vmem:[%s3454_s3 + $0xc8] sm:$0xf] }
  0x90   : > { %v2518_v22 = vsub.f32 %v371_v3, %v387_v21  ;;  %v2520_v23 = vsub.f32 %v372_v4, %v387_v21  ;;  %v2280_v3 = vld [vmem:[%s3454_s3 + $0x18c] sm:$0xf0]  ;;  %v2246_v4 = vld [vmem:[%s3454_s3 + $0x84] sm:$0xf]  ;;  %v1891_v21 = vor.u32 %v2276_v18, %v1890_v14  ;;  %v1964_v14 = vld [vmem:[%s3454_s3 + $0x1f8] sm:$0xf0] }
  0x91   : > { %v1907_v6 = vor.u32 %v2280_v3, %v1906_v1  ;;  %v1783_v7 = vor.u32 %v2246_v4, %v1780_v5  ;;  %v2261_v3 = vld [vmem:[%s3454_s3 + $0xf4] sm:$0xf0]  ;;  %v1962_v4 = vld [vmem:[%s3454_s3 + $0x1e8] sm:$0xf]  ;;  %v1967_v18 = vor.u32 %v2291_v10, %v1964_v14  ;;  %v1772_v10 = vld [vmem:[%s3454_s3 + $0x78] sm:$0xf0] }
  0x92   : > { %v394_v24 = vmul.f32 %v2518_v22, %v2518_v22  ;;  %v395_v25 = vmul.f32 %v2520_v23, %v2520_v23  ;;  %v2293_v5 = vld [vmem:[%s3454_s3 + $0x1f4] sm:$0xf0] }
  0x93   : > { %881 = vmatpush.bf16.msra.mxu1 %v1907_v6  ;;  %895 = vmatpush.bf16.msra.mxu2 %v1783_v7  ;;  %v1835_v6 = vor.u32 %v2261_v3, %v1834_v0  ;;  %v1963_v7 = vor.u32 %v2293_v5, %v1962_v4  ;;  %v1898_v4 = vld [vmem:[%s3454_s3 + $0x168] sm:$0xf]  ;;  %v2277_v5 = vld [vmem:[%s3454_s3 + $0x174] sm:$0xf0] }
  0x94   : > { %v399_v26 = vadd.f32 %v395_v25, %v394_v24  ;;  %v1767_v24 = vor.u32 %v2242_v19, %v1764_v20  ;;  %v2274_v25 = vld [vmem:[%s3454_s3 + $0x164] sm:$0xf]  ;;  %869 = vmatpush.bf16.msra.mxu0 %v1747_v31  ;;  %v2257_v19 = vld [vmem:[%s3454_s3 + $0xd4] sm:$0xf0]  ;;  %v1946_v20 = vld [vmem:[%s3454_s3 + $0x1c8] sm:$0xf]  ;;  %v1951_v31 = vor.u32 %v2287_v28, %v1948_v30  ;;  %v1899_v9 = vor.u32 %v2277_v5, %v1898_v4 }
  0x95   : > { %v2239_v28 = vld [vmem:[%s3454_s3 + $0x4c] sm:$0xf] }
  0x96   : > { %400 = vadd.xlane.f32.xlu1 %v399_v26  ;;  %v1892_v26 = vld [vmem:[%s3454_s3 + $0x170] sm:$0xf0] }
  0x97   : > { %v1895_v27 = vor.u32 %v2274_v25, %v1892_v26  ;;  %882 = vmatpush.bf16.msra.mxu1 %v1891_v21  ;;  %896 = vmatpush.bf16.msra.mxu2 %v1767_v24  ;;  %v2289_v21 = vld [vmem:[%s3454_s3 + $0x1d4] sm:$0xf0]  ;;  %v1819_v24 = vor.u32 %v2257_v19, %v1818_v17  ;;  %v2255_v26 = vld [vmem:[%s3454_s3 + $0xcc] sm:$0xf]  ;;  %v1754_v19 = vld [vmem:[%s3454_s3 + $0x48] sm:$0xf] }
  0x98   : > { %870 = vmatpush.bf16.msra.mxu0 %v1731_v43  ;;  %v1947_v25 = vor.u32 %v2289_v21, %v1946_v20  ;;  %v2283_v43 = vld [vmem:[%s3454_s3 + $0x1ac] sm:$0xf]  ;;  %v2241_v20 = vld [vmem:[%s3454_s3 + $0x54] sm:$0xf0] }
  0x99   : > { %910 = vmatpush.bf16.msra.mxu3 %v1895_v27  ;;  %v1820_v27 = vld [vmem:[%s3454_s3 + $0xd8] sm:$0xf0]  ;;  %v1935_v46 = vor.u32 %v2283_v43, %v1932_v44  ;;  %v1755_v30 = vor.u32 %v2241_v20, %v1754_v19  ;;  %v1866_v43 = vld [vmem:[%s3454_s3 + $0x128] sm:$0xf]  ;;  %v2269_v44 = vld [vmem:[%s3454_s3 + $0x134] sm:$0xf0] }
  0x9a   : > { %v1823_v29 = vor.u32 %v2255_v26, %v1820_v27  ;;  %v1882_v26 = vld [vmem:[%s3454_s3 + $0x148] sm:$0xf]  ;;  %v2273_v27 = vld [vmem:[%s3454_s3 + $0x154] sm:$0xf0] }
  0x9b   : > { %883 = vmatpush.bf16.msra.mxu1 %v1875_v35  ;;  %897 = vmatpush.bf16.msra.mxu2 %v1751_v36  ;;  %v1803_v36 = vor.u32 %v2253_v33, %v1802_v32  ;;  %v1756_v32 = vld [vmem:[%s3454_s3 + $0x58] sm:$0xf0]  ;;  %v2271_v33 = vld [vmem:[%s3454_s3 + $0x14c] sm:$0xf] }
  0x9c   : > { %871 = vmatpush.bf16.msra.mxu0 %v1715_v55 }
  0x9d   : > { %911 = vmatpush.bf16.msra.mxu3 %v1879_v39  ;;  %v1804_v39 = vld [vmem:[%s3454_s3 + $0xb8] sm:$0xf0] }
  0x9e   : > { %v1807_v42 = vor.u32 %v2251_v38, %v1804_v39  ;;  %v1738_v38 = vld [vmem:[%s3454_s3 + $0x28] sm:$0xf]  ;;  %v2237_v39 = vld [vmem:[%s3454_s3 + $0x34] sm:$0xf0] }
  0x9f   : > { %884 = vmatpush.bf16.msra.mxu1 %v1859_v47  ;;  %898 = vmatpush.bf16.msra.mxu2 %v1735_v48  ;;  %v1914_v47 = vld [vmem:[%s3454_s3 + $0x188] sm:$0xf]  ;;  %v2281_v48 = vld [vmem:[%s3454_s3 + $0x194] sm:$0xf0] }
  0xa0   : > { %920 = vmatpush.bf16.msrb.mxu0 %v1835_v6  ;;  %v1915_v55 = vor.u32 %v2281_v48, %v1914_v47  ;;  %v2243_v6 = vld [vmem:[%s3454_s3 + $0x6c] sm:$0xf] }
  0xa1   : > { %912 = vmatpush.bf16.msra.mxu3 %v1863_v51  ;;  %v2247_v51 = vld [vmem:[%s3454_s3 + $0x8c] sm:$0xf]  ;;  %v1775_v17 = vor.u32 %v2243_v6, %v1772_v10  ;;  %v1852_v6 = vld [vmem:[%s3454_s3 + $0x118] sm:$0xf0] }
  0xa2   : > { %v2267_v47 = vld [vmem:[%s3454_s3 + $0x12c] sm:$0xf] }
  0xa3   : > { %885 = vmatpush.bf16.msra.mxu1 %v1843_v60  ;;  %899 = vmatpush.bf16.msra.mxu2 %v1719_v61  ;;  %v1919_v61 = vor.u32 %v2279_v56, %v1916_v57  ;;  %v1850_v57 = vld [vmem:[%s3454_s3 + $0x108] sm:$0xf] }
  0xa4   : > { %921 = vmatpush.bf16.msrb.mxu0 %v1819_v24 }
  0xa5   : > { %913 = vmatpush.bf16.msra.mxu3 %v1847_v2  ;;  %v2245_v2 = vld [vmem:[%s3454_s3 + $0x74] sm:$0xf0] }
  0xa7   : > { %934 = vmatpush.bf16.msrb.mxu1 %v1963_v7  ;;  %948 = vmatpush.bf16.msrb.mxu2 %v1839_v13  ;;  %v433_v7 = vperm.slane %v2825_v58, 1  ;;  %v2275_v13 = vld [vmem:[%s3454_s3 + $0x16c] sm:$0xf] }
  0xa8   : > { %922 = vmatpush.bf16.msrb.mxu0 %v1803_v36  ;;  %v1759_v36 = vor.u32 %v2239_v28, %v1756_v32  ;;  %v2307_v28 = vld [vmem:[%s3456_s5 + $0x64] sm:$0xf0]  ;;  %v2010_v32 = vld [vmem:[%s3456_s5 + $0x50] sm:$0xf] }
  0xa9   : > { %962 = vmatpush.bf16.msrb.mxu3 %v1967_v18  ;;  %v1900_v18 = vld [vmem:[%s3454_s3 + $0x178] sm:$0xf0] }
  0xab   : > { %935 = vmatpush.bf16.msrb.mxu1 %v1947_v25  ;;  %949 = vmatpush.bf16.msrb.mxu2 %v1823_v29  ;;  %v1903_v25 = vor.u32 %v2275_v13, %v1900_v18  ;;  %v443_v29 = vperm.slane %v2832_v63, 1 }
  0xad   : > { %963 = vmatpush.bf16.msrb.mxu3 %v1951_v31  ;;  %v1883_v31 = vor.u32 %v2273_v27, %v1882_v26 }
  0xaf   : > { %936 = vmatpush.bf16.msrb.mxu1 %v1931_v41  ;;  %950 = vmatpush.bf16.msrb.mxu2 %v1807_v42  ;;  %v1887_v42 = vor.u32 %v2271_v33, %v1884_v37  ;;  %v2305_v33 = vld [vmem:[%s3456_s5 + $0x54] sm:$0xf0] }
  0xb1   : > { %964 = vmatpush.bf16.msrb.mxu3 %v1935_v46 }
  0xb3   : > { %937 = vmatpush.bf16.msrb.mxu1 %v1915_v55 }
  0xb5   : > { %965 = vmatpush.bf16.msrb.mxu3 %v1919_v61 }
  0xb7   : > { %938 = vmatpush.bf16.msrb.mxu1 %v1899_v9 }
  0xb9   : > { %966 = vmatpush.bf16.msrb.mxu3 %v1903_v25 }
  0xbb   : > { %939 = vmatpush.bf16.msrb.mxu1 %v1883_v31 }
  0xbd   : > { %967 = vmatpush.bf16.msrb.mxu3 %v1887_v42  ;;  %v2321_v42 = vld [vmem:[%s3456_s5 + $0xd4] sm:$0xf0] }
 0x101   : > { %v398_v59 = vpop.xlane.xlu1 %397 }
 0x102   : > { %v402_v1 = vmul.f32 %v398_v59, %v2506_v12  ;;  %v1791_v59 = vor.u32 %v2247_v51, %v1788_v52  ;;  %v1868_v52 = vld [vmem:[%s3454_s3 + $0x138] sm:$0xf0] }
 0x103   : > { %v1871_v56 = vor.u32 %v2267_v47, %v1868_v52  ;;  %v2066_v47 = vld [vmem:[%s3456_s5 + $0xc0] sm:$0xf]  ;;  %v2299_v52 = vld [vmem:[%s3456_s5 + $0x24] sm:$0xf0] }
 0x104   : > { %v2740_v11 = vadd.f32 1e-12, %v402_v1  ;;  %v1770_v1 = vld [vmem:[%s3454_s3 + $0x68] sm:$0xf]  ;;  %951 = vmatpush.bf16.msrb.mxu2 %v1791_v59  ;;  %v2265_v59 = vld [vmem:[%s3454_s3 + $0x114] sm:$0xf0] }
 0x105   : > { %v1771_v3 = vor.u32 %v2245_v2, %v1770_v1  ;;  %v1724_v1 = vld [vmem:[%s3454_s3 + $0x18] sm:$0xf0]  ;;  %v2263_v2 = vld [vmem:[%s3454_s3 + $0x10c] sm:$0xf]  ;;  %v1851_v5 = vor.u32 %v2265_v59, %v1850_v57  ;;  %968 = vmatpush.bf16.msrb.mxu3 %v1871_v56  ;;  %v2058_v57 = vld [vmem:[%s3456_s5 + $0xb0] sm:$0xf] }
 0x106   : > { %2385 = vrsqrt.f32 %v2740_v11  ;;  %vm412_vm2 = vweird.f32 %v2740_v11  ;;  %v1855_v13 = vor.u32 %v2263_v2, %v1852_v6  ;;  %v2317_v59 = vld [vmem:[%s3456_s5 + $0xb4] sm:$0xf0]  ;;  %v1978_v2 = vld [vmem:[%s3456_s5 + $0x10] sm:$0xf] }
 0x107   : > { %v2337_v6 = vld [vmem:[%s3456_s5 + $0x154] sm:$0xf0] }
 0x108   : > { %952 = vmatpush.bf16.msrb.mxu2 %v1775_v17 }
 0x109   : > { %v401_v35 = vpop.xlane.xlu1 %400  ;;  %969 = vmatpush.bf16.msrb.mxu3 %v1855_v13  ;;  %v2210_v13 = vld [vmem:[%s3456_s5 + $0x1e0] sm:$0xf] }
 0x10a   : > { %v403_v40 = vmul.f32 %v401_v35, %v2506_v12  ;;  %v2249_v12 = vld [vmem:[%s3454_s3 + $0x94] sm:$0xf0] }
 0x10b   : > { %v1787_v54 = vor.u32 %v2249_v12, %v1786_v45  ;;  %v2235_v45 = vld [vmem:[%s3454_s3 + $0x2c] sm:$0xf]  ;;  %v1739_v12 = vor.u32 %v2237_v39, %v1738_v38  ;;  %v2002_v38 = vld [vmem:[%s3456_s5 + $0x40] sm:$0xf]  ;;  %v2303_v39 = vld [vmem:[%s3456_s5 + $0x44] sm:$0xf0] }
 0x10c   : > { %v2386_v49 = vpop.eup %2385  ;;  %v2807_v50 = vadd.f32 1e-12, %v403_v40  ;;  %953 = vmatpush.bf16.msrb.mxu2 %v1759_v36  ;;  %v2323_v36 = vld [vmem:[%s3456_s5 + $0xe4] sm:$0xf0] }
 0x10d   : > { %v407_v53 = vmul.f32 %v2386_v49, %v2740_v11  ;;  %923 = vmatpush.bf16.msrb.mxu0 %v1787_v54  ;;  %vm413_vm1 = vweird.f32 %v2386_v49  ;;  %v442_v11 = vperm.slane %v2832_v63, 0  ;;  %v2233_v54 = vld [vmem:[%s3454_s3 + $0x14] sm:$0xf0]  ;;  %v2018_v63 = vld [vmem:[%s3456_s5 + $0x60] sm:$0xf] }
 0x10e   : > { %2387 = vrsqrt.f32 %v2807_v50  ;;  %vm414_vm3 = vmor %vm412_vm2, %vm413_vm1  ;;  %vm422_vm5 = vweird.f32 %v2807_v50 }
 0x10f   : > { %v408_v60 = vmul.f32 %v2386_v49, %v407_v53  ;;  %v1722_v53 = vld [vmem:[%s3454_s3 + $0x8] sm:$0xf] }
 0x110   : > { %v1723_v4 = vor.u32 %v2233_v54, %v1722_v53  ;;  %v2146_v53 = vld [vmem:[%s3456_s5 + $0x160] sm:$0xf] }
 0x111   : > { %v409_v0 = vmul.f32 0.5, %v408_v60  ;;  %924 = vmatpush.bf16.msrb.mxu0 %v1771_v3 }
 0x113   : > { %v410_v8 = vsub.f32 1.5, %v409_v0  ;;  %v2231_v0 = vld [vmem:[%s3454_s3 + $0xc] sm:$0xf] }
 0x114   : > { %v2856_v14 = vpop.eup %2387  ;;  %v1727_v9 = vor.u32 %v2231_v0, %v1724_v1  ;;  %v2357_v0 = vld [vmem:[%s3456_s5 + $0x1f4] sm:$0xf0] }
 0x115   : > { %v411_v21 = vmul.f32 %v2386_v49, %v410_v8  ;;  %v417_v24 = vmul.f32 %v2856_v14, %v2807_v50  ;;  %925 = vmatpush.bf16.msrb.mxu0 %v1755_v30  ;;  %vm423_vm4 = vweird.f32 %v2856_v14  ;;  %v2325_v30 = vld [vmem:[%s3456_s5 + $0xf4] sm:$0xf0] }
 0x116   : > { %vm424_vm6 = vmor %vm422_vm5, %vm423_vm4 }
 0x117   : > { %v415_v34 = vsel %vm414_vm3, %v2386_v49, %v411_v21  ;;  %v418_v35 = vmul.f32 %v2856_v14, %v417_v24 }
 0x118   : > { %v426_v40 = vmul.f32 %v415_v34, %v2509_v15  ;;  %v427_v41 = vmul.f32 %v415_v34, %v2511_v16  ;;  %v1867_v15 = vor.u32 %v2269_v44, %v1866_v43  ;;  %v1740_v16 = vld [vmem:[%s3454_s3 + $0x38] sm:$0xf0]  ;;  %v2011_v34 = vor.u32 %v2305_v33, %v2010_v32  ;;  %v1994_v44 = vld [vmem:[%s3456_s5 + $0x30] sm:$0xf]  ;;  %v2306_v32 = vld [vmem:[%s3456_s5 + $0x64] sm:$0xf] }
 0x119   : > { %v419_v46 = vmul.f32 0.5, %v418_v35  ;;  %v1743_v51 = vor.u32 %v2235_v45, %v1740_v16  ;;  %926 = vmatpush.bf16.msrb.mxu0 %v1739_v12  ;;  %v2082_v35 = vld [vmem:[%s3456_s5 + $0xe0] sm:$0xf]  ;;  %v2301_v45 = vld [vmem:[%s3456_s5 + $0x34] sm:$0xf0] }
 0x11a   : > { %v436_v48 = vmul.f32 %v432_v62, %v426_v40  ;;  %v437_v49 = vmul.f32 %v433_v7, %v427_v41  ;;  %940 = vmatpush.bf16.msrb.mxu1 %v1867_v15  ;;  %v2083_v37 = vor.u32 %v2323_v36, %v2082_v35  ;;  %v2003_v40 = vor.u32 %v2303_v39, %v2002_v38  ;;  %v2074_v41 = vld [vmem:[%s3456_s5 + $0xd0] sm:$0xf]  ;;  %v2341_v15 = vld [vmem:[%s3456_s5 + $0x174] sm:$0xf0]  ;;  %v2020_v33 = vld [vmem:[%s3456_s5 + $0x68] sm:$0xf0] }
 0x11b   : > { %v420_v55 = vsub.f32 1.5, %v419_v46  ;;  %954 = vmatpush.bf16.msrb.mxu2 %v1743_v51  ;;  %v2075_v43 = vor.u32 %v2321_v42, %v2074_v41  ;;  %v2154_v46 = vld [vmem:[%s3456_s5 + $0x170] sm:$0xf]  ;;  %v1995_v12 = vor.u32 %v2301_v45, %v1994_v44  ;;  %v1986_v51 = vld [vmem:[%s3456_s5 + $0x20] sm:$0xf] }
 0x11c   : > { %v446_v60 = vadd.f32 %v442_v11, %v436_v48  ;;  %v447_v61 = vadd.f32 %v443_v29, %v437_v49  ;;  %v2155_v16 = vor.u32 %v2341_v15, %v2154_v46  ;;  %v2319_v48 = vld [vmem:[%s3456_s5 + $0xc4] sm:$0xf0]  ;;  %v1987_v54 = vor.u32 %v2299_v52, %v1986_v51  ;;  %v2034_v35 = vld [vmem:[%s3456_s5 + $0x80] sm:$0xf]  ;;  %v2092_v41 = vld [vmem:[%s3456_s5 + $0xf8] sm:$0xf0] }
 0x11d   : > { %v421_v3 = vmul.f32 %v2856_v14, %v420_v55  ;;  %927 = vmatpush.bf16.msrb.mxu0 %v1723_v4  ;;  %v2067_v49 = vor.u32 %v2319_v48, %v2066_v47  ;;  %v2339_v55 = vld [vmem:[%s3456_s5 + $0x164] sm:$0xf0]  ;;  %v2114_v44 = vld [vmem:[%s3456_s5 + $0x120] sm:$0xf]  ;;  %v2304_v15 = vld [vmem:[%s3456_s5 + $0x54] sm:$0xf] }
 0x11e   : > { %v450_v8 = vpack.c.bf16 %v447_v61, %v446_v60  ;;  %941 = vmatpush.bf16.msrb.mxu1 %v1851_v5  ;;  %v2147_v56 = vor.u32 %v2339_v55, %v2146_v53  ;;  %v2218_v60 = vld [vmem:[%s3456_s5 + $0x1f0] sm:$0xf]  ;;  %v2059_v61 = vor.u32 %v2317_v59, %v2058_v57  ;;  %v2311_v36 = vld [vmem:[%s3456_s5 + $0x84] sm:$0xf0]  ;;  %v2322_v52 = vld [vmem:[%s3456_s5 + $0xe4] sm:$0xf] }
 0x11f   : > { %v425_v10 = vsel %vm424_vm6, %v2856_v14, %v421_v3  ;;  %955 = vmatpush.bf16.msrb.mxu2 %v1727_v9  ;;  %v2219_v1 = vor.u32 %v2357_v0, %v2218_v60  ;;  %v2297_v3 = vld [vmem:[%s3456_s5 + $0x14] sm:$0xf0]  ;;  %v2138_v5 = vld [vmem:[%s3456_s5 + $0x150] sm:$0xf]  ;;  %v2050_v9 = vld [vmem:[%s3456_s5 + $0xa0] sm:$0xf]  ;;  %v2035_v38 = vor.u32 %v2311_v36, %v2034_v35 }
 0x120   : > { %452 = vst [vmem:[#allocation2] sm:$0xff] %v450_v8  ;;  %v428_v50 = vmul.f32 %v425_v10, %v2518_v22  ;;  %v429_v17 = vmul.f32 %v425_v10, %v2520_v23  ;;  %v2026_v22 = vld [vmem:[%s3456_s5 + $0x70] sm:$0xf]  ;;  %v2309_v23 = vld [vmem:[%s3456_s5 + $0x74] sm:$0xf0]  ;;  %v1979_v4 = vor.u32 %v2297_v3, %v1978_v2  ;;  %v2139_v8 = vor.u32 %v2337_v6, %v2138_v5 }
 0x121   : > { %v2027_v27 = vor.u32 %v2309_v23, %v2026_v22  ;;  %v2315_v10 = vld [vmem:[%s3456_s5 + $0xa4] sm:$0xf0]  ;;  %v2308_v23 = vld [vmem:[%s3456_s5 + $0x74] sm:$0xf]  ;;  %v2186_v48 = vld [vmem:[%s3456_s5 + $0x1b0] sm:$0xf] }
 0x122   : > { %v438_v18 = vmul.f32 %v432_v62, %v428_v50  ;;  %v439_v19 = vmul.f32 %v433_v7, %v429_v17  ;;  %v2051_v50 = vor.u32 %v2315_v10, %v2050_v9  ;;  %v2355_v17 = vld [vmem:[%s3456_s5 + $0x1e4] sm:$0xf0]  ;;  %v2084_v53 = vld [vmem:[%s3456_s5 + $0xe8] sm:$0xf0]  ;;  %v2106_v57 = vld [vmem:[%s3456_s5 + $0x110] sm:$0xf] }
 0x123   : > { %v2335_v22 = vld [vmem:[%s3456_s5 + $0x144] sm:$0xf0]  ;;  %v2329_v59 = vld [vmem:[%s3456_s5 + $0x114] sm:$0xf0]  ;;  %v2302_v0 = vld [vmem:[%s3456_s5 + $0x44] sm:$0xf] }
 0x124   : > { %v448_v14 = vadd.f32 %v442_v11, %v438_v18  ;;  %v449_v20 = vadd.f32 %v443_v29, %v439_v19  ;;  %v2019_v11 = vor.u32 %v2307_v28, %v2018_v63  ;;  %v2090_v29 = vld [vmem:[%s3456_s5 + $0xf0] sm:$0xf]  ;;  %v2211_v18 = vor.u32 %v2355_v17, %v2210_v13  ;;  %v1970_v19 = vld [vmem:[%s3456_s5] sm:$0xf]  ;;  %v2353_v63 = vld [vmem:[%s3456_s5 + $0x1d4] sm:$0xf0] }
 0x125   : > { %v2091_v31 = vor.u32 %v2325_v30, %v2090_v29  ;;  %v2333_v29 = vld [vmem:[%s3456_s5 + $0x134] sm:$0xf0]  ;;  %v3113_v30 = vld [vmem:[%s3455_s4] sm:$0xf]  ;;  %v2351_v39 = vld [vmem:[%s3456_s5 + $0x1c4] sm:$0xf0] }
 0x126   : > { %v451_v21 = vpack.c.bf16 %v449_v20, %v448_v14  ;;  %v2295_v14 = vld [vmem:[%s3456_s5 + $0x4] sm:$0xf0]  ;;  %v2130_v20 = vld [vmem:[%s3456_s5 + $0x140] sm:$0xf]  ;;  %v526_v46 = vperm.slane %v3113_v30, 0  ;;  %v527_v10 = vperm.slane %v3113_v30, 1 }
 0x127   : > { %v1706_v58 = vld [vmem:[#allocation2] sm:$0xf]  ;;  %v2228_v7 = vld [vmem:[#allocation2 + $0x4] sm:$0xf]  ;;  %v2331_v45 = vld [vmem:[%s3456_s5 + $0x124] sm:$0xf0] }
 0x128   : > { %453 = vst [vmem:[#allocation2 + $0x8] sm:$0xff] %v451_v21  ;;  %v1971_v21 = vor.u32 %v2295_v14, %v1970_v19  ;;  %v2178_v3 = vld [vmem:[%s3456_s5 + $0x1a0] sm:$0xf]  ;;  %v2076_v9 = vld [vmem:[%s3456_s5 + $0xd8] sm:$0xf0] }
 0x129   : > { %v2327_v17 = vld [vmem:[%s3456_s5 + $0x104] sm:$0xf0]  ;;  %v2300_v14 = vld [vmem:[%s3456_s5 + $0x34] sm:$0xf]  ;;  %v2298_v35 = vld [vmem:[%s3456_s5 + $0x24] sm:$0xf] }
 0x12a   : > { %v1988_v36 = vld [vmem:[%s3456_s5 + $0x28] sm:$0xf0] }
 0x12f   : > { %v2229_v62 = vld [vmem:[#allocation2 + $0x4] sm:$0xf0]  ;;  %v1708_v24 = vld [vmem:[#allocation2 + $0x8] sm:$0xf0] }
 0x130   : > { %v1707_v25 = vor.u32 %v2229_v62, %v1706_v58  ;;  %v1711_v26 = vor.u32 %v2228_v7, %v1708_v24  ;;  %v2028_v58 = vld [vmem:[%s3456_s5 + $0x78] sm:$0xf0]  ;;  %v2131_v62 = vor.u32 %v2335_v22, %v2130_v20  ;;  %v2042_v24 = vld [vmem:[%s3456_s5 + $0x90] sm:$0xf] }
 0x131   : > { %v2031_v7 = vor.u32 %v2308_v23, %v2028_v58  ;;  %v1996_v20 = vld [vmem:[%s3456_s5 + $0x38] sm:$0xf0]  ;;  %v2170_v58 = vld [vmem:[%s3456_s5 + $0x190] sm:$0xf] }
 0x132   : > { %872 = vmatmul.bf16.vlgmr.msra.gmra.mxu0 %v1707_v25  ;;  %886 = vmatmul.bf16.vlgmr.msra.gmra.mxu1 %v1711_v26  ;;  %v1999_v22 = vor.u32 %v2300_v14, %v1996_v20  ;;  %v2156_v23 = vld [vmem:[%s3456_s5 + $0x178] sm:$0xf0] }
 0x133   : > { %900 = vmatmul.bf16.vlgmr.msra.gmra.mxu2 %v1707_v25  ;;  %914 = vmatmul.bf16.vlgmr.msra.gmra.mxu3 %v1711_v26 }
 0x134   : > { %1440 = vmatpush.bf16.msra.mxu0 %v2027_v27  ;;  %1454 = vmatpush.bf16.msra.mxu1 %v2091_v31  ;;  %v2202_v27 = vld [vmem:[%s3456_s5 + $0x1d0] sm:$0xf] }
 0x135   : > { %1468 = vmatpush.bf16.msra.mxu2 %v2155_v16  ;;  %1482 = vmatpush.bf16.msra.mxu3 %v2219_v1  ;;  %v2203_v28 = vor.u32 %v2353_v63, %v2202_v27  ;;  %v2012_v16 = vld [vmem:[%s3456_s5 + $0x58] sm:$0xf0]  ;;  %v2004_v1 = vld [vmem:[%s3456_s5 + $0x48] sm:$0xf0]  ;;  %v2318_v63 = vld [vmem:[%s3456_s5 + $0xc4] sm:$0xf] }
 0x136   : > { %v2015_v47 = vor.u32 %v2304_v15, %v2012_v16  ;;  %v2007_v2 = vor.u32 %v2302_v0, %v2004_v1  ;;  %v528_v16 = vperm.slane %v3113_v30, 2 }
 0x138   : > { %1441 = vmatpush.bf16.msra.mxu0 %v2019_v11  ;;  %1455 = vmatpush.bf16.msra.mxu1 %v2083_v37  ;;  %v2122_v11 = vld [vmem:[%s3456_s5 + $0x130] sm:$0xf]  ;;  %v2194_v37 = vld [vmem:[%s3456_s5 + $0x1c0] sm:$0xf] }
 0x139   : > { %1469 = vmatpush.bf16.msra.mxu2 %v2147_v56  ;;  %1483 = vmatpush.bf16.msra.mxu3 %v2211_v18  ;;  %v2123_v31 = vor.u32 %v2333_v29, %v2122_v11  ;;  %v2195_v42 = vor.u32 %v2351_v39, %v2194_v37  ;;  %v2087_v56 = vor.u32 %v2322_v52, %v2084_v53  ;;  %v2338_v39 = vld [vmem:[%s3456_s5 + $0x164] sm:$0xf] }
 0x13c   : > { %1442 = vmatpush.bf16.msra.mxu0 %v2011_v34  ;;  %1456 = vmatpush.bf16.msra.mxu1 %v2075_v43  ;;  %v2023_v34 = vor.u32 %v2306_v32, %v2020_v33 }
 0x13d   : > { %1470 = vmatpush.bf16.msra.mxu2 %v2139_v8  ;;  %1484 = vmatpush.bf16.msra.mxu3 %v2203_v28  ;;  %v2320_v8 = vld [vmem:[%s3456_s5 + $0xd4] sm:$0xf]  ;;  %v2068_v28 = vld [vmem:[%s3456_s5 + $0xc8] sm:$0xf0] }
 0x13e   : > { %v2079_v13 = vor.u32 %v2320_v8, %v2076_v9  ;;  %v2071_v32 = vor.u32 %v2318_v63, %v2068_v28  ;;  %v2354_v8 = vld [vmem:[%s3456_s5 + $0x1e4] sm:$0xf]  ;;  %v2312_v63 = vld [vmem:[%s3456_s5 + $0x94] sm:$0xf]  ;;  %v2044_v28 = vld [vmem:[%s3456_s5 + $0x98] sm:$0xf0] }
 0x140   : > { %1443 = vmatpush.bf16.msra.mxu0 %v2003_v40  ;;  %1457 = vmatpush.bf16.msra.mxu1 %v2067_v49  ;;  %v2324_v40 = vld [vmem:[%s3456_s5 + $0xf4] sm:$0xf]  ;;  %v2349_v49 = vld [vmem:[%s3456_s5 + $0x1b4] sm:$0xf0] }
 0x141   : > { %1471 = vmatpush.bf16.msra.mxu2 %v2131_v62  ;;  %v2095_v43 = vor.u32 %v2324_v40, %v2092_v41  ;;  %1485 = vmatpush.bf16.msra.mxu3 %v2195_v42  ;;  %v2187_v51 = vor.u32 %v2349_v49, %v2186_v48  ;;  %v2345_v62 = vld [vmem:[%s3456_s5 + $0x194] sm:$0xf0]  ;;  %v2148_v40 = vld [vmem:[%s3456_s5 + $0x168] sm:$0xf0]  ;;  %v2162_v41 = vld [vmem:[%s3456_s5 + $0x180] sm:$0xf] }
 0x142   : > { %928 = vmatmul.bf16.vlgmr.msrb.gmra.mxu0 %v1707_v25  ;;  %942 = vmatmul.bf16.vlgmr.msrb.gmra.mxu1 %v1711_v26  ;;  %v2171_v27 = vor.u32 %v2345_v62, %v2170_v58  ;;  %v2356_v49 = vld [vmem:[%s3456_s5 + $0x1f4] sm:$0xf] }
 0x143   : > { %956 = vmatmul.bf16.vlgmr.msrb.gmra.mxu2 %v1707_v25  ;;  %970 = vmatmul.bf16.vlgmr.msrb.gmra.mxu3 %v1711_v26  ;;  %v2313_v25 = vld [vmem:[%s3456_s5 + $0x94] sm:$0xf0] }
 0x144   : > { %1444 = vmatpush.bf16.msra.mxu0 %v1995_v12  ;;  %1458 = vmatpush.bf16.msra.mxu1 %v2059_v61  ;;  %v2043_v26 = vor.u32 %v2313_v25, %v2042_v24  ;;  %v2115_v12 = vor.u32 %v2331_v45, %v2114_v44  ;;  %v2107_v61 = vor.u32 %v2329_v59, %v2106_v57  ;;  %v2343_v45 = vld [vmem:[%s3456_s5 + $0x184] sm:$0xf0] }
 0x145   : > { %1472 = vmatpush.bf16.msra.mxu2 %v2123_v31  ;;  %1486 = vmatpush.bf16.msra.mxu3 %v2187_v51  ;;  %v2151_v44 = vor.u32 %v2338_v39, %v2148_v40  ;;  %v2220_v51 = vld [vmem:[%s3456_s5 + $0x1f8] sm:$0xf0]  ;;  %v2332_v39 = vld [vmem:[%s3456_s5 + $0x134] sm:$0xf] }
 0x146   : > { %v2124_v40 = vld [vmem:[%s3456_s5 + $0x138] sm:$0xf0] }
 0x148   : > { %1445 = vmatpush.bf16.msra.mxu0 %v1987_v54  ;;  %1459 = vmatpush.bf16.msra.mxu1 %v2051_v50  ;;  %v2098_v50 = vld [vmem:[%s3456_s5 + $0x100] sm:$0xf] }
 0x149   : > { %1473 = vmatpush.bf16.msra.mxu2 %v2115_v12  ;;  %v2099_v19 = vor.u32 %v2327_v17, %v2098_v50  ;;  %v2060_v12 = vld [vmem:[%s3456_s5 + $0xb8] sm:$0xf0] }
 0x14c   : > { %1446 = vmatpush.bf16.msra.mxu0 %v1979_v4  ;;  %1460 = vmatpush.bf16.msra.mxu1 %v2043_v26  ;;  %v2347_v4 = vld [vmem:[%s3456_s5 + $0x1a4] sm:$0xf0] }
 0x14d   : > { %v2179_v6 = vor.u32 %v2347_v4, %v2178_v3  ;;  %1474 = vmatpush.bf16.msra.mxu2 %v2107_v61  ;;  %v2140_v61 = vld [vmem:[%s3456_s5 + $0x158] sm:$0xf0]  ;;  %v2314_v4 = vld [vmem:[%s3456_s5 + $0xa4] sm:$0xf] }
 0x14f   : > { %1487 = vmatpush.bf16.msra.mxu3 %v2179_v6  ;;  %v2052_v6 = vld [vmem:[%s3456_s5 + $0xa8] sm:$0xf0] }
 0x150   : > { %1447 = vmatpush.bf16.msra.mxu0 %v1971_v21  ;;  %1461 = vmatpush.bf16.msra.mxu1 %v2035_v38  ;;  %v2340_v21 = vld [vmem:[%s3456_s5 + $0x174] sm:$0xf]  ;;  %v1991_v38 = vor.u32 %v2298_v35, %v1988_v36 }
 0x151   : > { %v2159_v26 = vor.u32 %v2340_v21, %v2156_v23  ;;  %1475 = vmatpush.bf16.msra.mxu2 %v2099_v19  ;;  %v2212_v19 = vld [vmem:[%s3456_s5 + $0x1e8] sm:$0xf0] }
 0x152   : > { %v2215_v21 = vor.u32 %v2354_v8, %v2212_v19  ;;  %v2188_v8 = vld [vmem:[%s3456_s5 + $0x1b8] sm:$0xf0] }
 0x153   : > { %1488 = vmatpush.bf16.msra.mxu3 %v2171_v27 }
 0x154   : > { %1496 = vmatpush.bf16.msrb.mxu0 %v2031_v7  ;;  %1510 = vmatpush.bf16.msrb.mxu1 %v2095_v43 }
 0x155   : > { %1524 = vmatpush.bf16.msrb.mxu2 %v2159_v26 }
 0x158   : > { %1497 = vmatpush.bf16.msrb.mxu0 %v2023_v34  ;;  %1511 = vmatpush.bf16.msrb.mxu1 %v2087_v56  ;;  %v1980_v56 = vld [vmem:[%s3456_s5 + $0x18] sm:$0xf0] }
 0x159   : > { %1525 = vmatpush.bf16.msrb.mxu2 %v2151_v44 }
 0x15c   : > { %1498 = vmatpush.bf16.msrb.mxu0 %v2015_v47  ;;  %1512 = vmatpush.bf16.msrb.mxu1 %v2079_v13  ;;  %v2163_v47 = vor.u32 %v2343_v45, %v2162_v41 }
 0x15e   : > { %1489 = vmatpush.bf16.msra.mxu3 %v2163_v47  ;;  %v2036_v47 = vld [vmem:[%s3456_s5 + $0x88] sm:$0xf0] }
 0x160   : > { %1499 = vmatpush.bf16.msrb.mxu0 %v2007_v2  ;;  %1513 = vmatpush.bf16.msrb.mxu1 %v2071_v32  ;;  %v529_v32 = vperm.slane %v3113_v30, 3 }
 0x164   : > { %1500 = vmatpush.bf16.msrb.mxu0 %v1999_v22  ;;  %v2294_v22 = vld [vmem:[%s3456_s5 + $0x4] sm:$0xf] }
 0x168   : > { %1501 = vmatpush.bf16.msrb.mxu0 %v1991_v38 }
 0x1af   : > { %v873_v54 = vpop.f32.mrf.mxu0  ;;  %v887_v55 = vpop.f32.mrf.mxu1 }
 0x1b0   : > { %v874_v60 = vadd.f32 %v873_v54, %v526_v46  ;;  %v2223_v54 = vor.u32 %v2356_v49, %v2220_v51 }
 0x1b2   : > { %v3184_v5 = vadd.f32 %v887_v55, %v874_v60  ;;  %v2296_v55 = vld [vmem:[%s3456_s5 + $0x14] sm:$0xf]  ;;  %1538 = vmatpush.bf16.msrb.mxu3 %v2223_v54  ;;  %v2196_v54 = vld [vmem:[%s3456_s5 + $0x1c8] sm:$0xf0] }
 0x1b3   : > { %v1983_v59 = vor.u32 %v2296_v55, %v1980_v56  ;;  %v2336_v60 = vld [vmem:[%s3456_s5 + $0x154] sm:$0xf] }
 0x1b4   : > { %v976_v18 = vmul.f32 %v3184_v5, %v3184_v5  ;;  %v2143_v3 = vor.u32 %v2336_v60, %v2140_v61  ;;  %v2116_v60 = vld [vmem:[%s3456_s5 + $0x128] sm:$0xf0] }
 0x1b5   : > { %1502 = vmatpush.bf16.msrb.mxu0 %v1983_v59  ;;  %v2330_v59 = vld [vmem:[%s3456_s5 + $0x124] sm:$0xf] }
 0x1b6   : > { %v984_v7 = vmul.f32 %v976_v18, %v3184_v5  ;;  %v901_v24 = vpop.f32.mrf.mxu2  ;;  %v915_v25 = vpop.f32.mrf.mxu3  ;;  %v2055_v18 = vor.u32 %v2314_v4, %v2052_v6  ;;  %1526 = vmatpush.bf16.msrb.mxu2 %v2143_v3  ;;  %1539 = vmatpush.bf16.msrb.mxu3 %v2215_v21  ;;  %v2119_v3 = vor.u32 %v2330_v59, %v2116_v60  ;;  %v2348_v6 = vld [vmem:[%s3456_s5 + $0x1b4] sm:$0xf] }
 0x1b7   : > { %v902_v11 = vadd.f32 %v901_v24, %v527_v10  ;;  %v875_v29 = vpop.f32.mrf.mxu0  ;;  %v889_v31 = vpop.f32.mrf.mxu1  ;;  %v2132_v24 = vld [vmem:[%s3456_s5 + $0x148] sm:$0xf0] }
 0x1b8   : > { %v992_v33 = vmul.f32 0.044715, %v984_v7  ;;  %v876_v34 = vadd.f32 %v875_v29, %v526_v46  ;;  %v2316_v46 = vld [vmem:[%s3456_s5 + $0xb4] sm:$0xf]  ;;  %v2334_v7 = vld [vmem:[%s3456_s5 + $0x144] sm:$0xf] }
 0x1b9   : > { %v3236_v37 = vadd.f32 %v915_v25, %v902_v11  ;;  %v2063_v48 = vor.u32 %v2316_v46, %v2060_v12  ;;  %v2135_v27 = vor.u32 %v2334_v7, %v2132_v24  ;;  %v2352_v11 = vld [vmem:[%s3456_s5 + $0x1d4] sm:$0xf] }
 0x1ba   : > { %v1000_v42 = vadd.f32 %v992_v33, %v3184_v5  ;;  %v3248_v43 = vadd.f32 %v889_v31, %v876_v34  ;;  %v2047_v33 = vor.u32 %v2312_v63, %v2044_v28  ;;  %v2204_v34 = vld [vmem:[%s3456_s5 + $0x1d8] sm:$0xf0]  ;;  %v2180_v63 = vld [vmem:[%s3456_s5 + $0x1a8] sm:$0xf0]  ;;  %v2326_v28 = vld [vmem:[%s3456_s5 + $0x104] sm:$0xf] }
 0x1bb   : > { %v977_v15 = vmul.f32 %v3236_v37, %v3236_v37  ;;  %1514 = vmatpush.bf16.msrb.mxu1 %v2063_v48  ;;  %1527 = vmatpush.bf16.msrb.mxu2 %v2135_v27  ;;  %v2207_v38 = vor.u32 %v2352_v11, %v2204_v34  ;;  %v2350_v48 = vld [vmem:[%s3456_s5 + $0x1c4] sm:$0xf]  ;;  %v2100_v34 = vld [vmem:[%s3456_s5 + $0x108] sm:$0xf0] }
 0x1bc   : > { %v1008_v52 = vmul.f32 0.7978846, %v1000_v42  ;;  %v980_v53 = vmul.f32 %v3248_v43, %v3248_v43  ;;  %v2127_v42 = vor.u32 %v2332_v39, %v2124_v40  ;;  %v2344_v39 = vld [vmem:[%s3456_s5 + $0x194] sm:$0xf]  ;;  %v2172_v40 = vld [vmem:[%s3456_s5 + $0x198] sm:$0xf0] }
 0x1bd   : > { %v985_v57 = vmul.f32 %v977_v15, %v3236_v37  ;;  %1540 = vmatpush.bf16.msrb.mxu3 %v2207_v38  ;;  %v2310_v15 = vld [vmem:[%s3456_s5 + $0x84] sm:$0xf]  ;;  %v2103_v38 = vor.u32 %v2326_v28, %v2100_v34 }
 0x1be   : > { %v988_v0 = vmul.f32 %v980_v53, %v3248_v43  ;;  %v903_v1 = vpop.f32.mrf.mxu2  ;;  %v917_v2 = vpop.f32.mrf.mxu3  ;;  %2389 = vtanh.f32 %v1008_v52  ;;  %v2039_v53 = vor.u32 %v2310_v15, %v2036_v47 }
 0x1bf   : > { %v993_v9 = vmul.f32 0.044715, %v985_v57  ;;  %v904_v13 = vadd.f32 %v903_v1, %v527_v10  ;;  %v929_v50 = vpop.f32.mrf.mxu0  ;;  %v943_v17 = vpop.f32.mrf.mxu1  ;;  %v1972_v10 = vld [vmem:[%s3456_s5 + $0x8] sm:$0xf0]  ;;  %1515 = vmatpush.bf16.msrb.mxu1 %v2055_v18  ;;  %1528 = vmatpush.bf16.msrb.mxu2 %v2127_v42  ;;  %v2199_v57 = vor.u32 %v2350_v48, %v2196_v54 }
 0x1c0   : > { %v996_v14 = vmul.f32 0.044715, %v988_v0  ;;  %v930_v20 = vadd.f32 %v929_v50, %v528_v16  ;;  %v1975_v62 = vor.u32 %v2294_v22, %v1972_v10 }
 0x1c1   : > { %v1001_v23 = vadd.f32 %v993_v9, %v3236_v37  ;;  %v3307_v58 = vadd.f32 %v917_v2, %v904_v13  ;;  %1541 = vmatpush.bf16.msrb.mxu3 %v2199_v57 }
 0x1c2   : > { %v1004_v25 = vadd.f32 %v996_v14, %v3248_v43  ;;  %v3316_v26 = vadd.f32 %v943_v17, %v930_v20  ;;  %1503 = vmatpush.bf16.msrb.mxu0 %v1975_v62  ;;  %v2191_v17 = vor.u32 %v2348_v6, %v2188_v8  ;;  %v2328_v20 = vld [vmem:[%s3456_s5 + $0x114] sm:$0xf]  ;;  %v2346_v62 = vld [vmem:[%s3456_s5 + $0x1a4] sm:$0xf] }
 0x1c3   : > { %v1009_v29 = vmul.f32 0.7978846, %v1001_v23  ;;  %v981_v31 = vmul.f32 %v3307_v58, %v3307_v58  ;;  %1516 = vmatpush.bf16.msrb.mxu1 %v2047_v33  ;;  %1529 = vmatpush.bf16.msrb.mxu2 %v2119_v3  ;;  %v2108_v23 = vld [vmem:[%s3456_s5 + $0x118] sm:$0xf0]  ;;  %v2183_v33 = vor.u32 %v2346_v62, %v2180_v63 }
 0x1c4   : > { %v1012_v35 = vmul.f32 0.7978846, %v1004_v25  ;;  %v978_v36 = vmul.f32 %v3316_v26, %v3316_v26  ;;  %v2390_v44 = vpop.eup %2389  ;;  %v2111_v27 = vor.u32 %v2328_v20, %v2108_v23 }
 0x1c5   : > { %2391 = vtanh.f32 %v1009_v29  ;;  %v989_v41 = vmul.f32 %v981_v31, %v3307_v58  ;;  %v1024_v61 = vadd.f32 1.0, %v2390_v44  ;;  %1542 = vmatpush.bf16.msrb.mxu3 %v2191_v17 }
 0x1c6   : > { %2393 = vtanh.f32 %v1012_v35  ;;  %v986_v45 = vmul.f32 %v978_v36, %v3316_v26  ;;  %v957_v46 = vpop.f32.mrf.mxu2  ;;  %v971_v12 = vpop.f32.mrf.mxu3 }
 0x1c7   : > { %v997_v49 = vmul.f32 0.044715, %v989_v41  ;;  %v958_v51 = vadd.f32 %v957_v46, %v529_v32  ;;  %v931_v52 = vpop.f32.mrf.mxu0  ;;  %v945_v2 = vpop.f32.mrf.mxu1  ;;  %1517 = vmatpush.bf16.msrb.mxu1 %v2039_v53  ;;  %v1032_v21 = vmul.f32 0.5, %v1024_v61  ;;  %1530 = vmatpush.bf16.msrb.mxu2 %v2111_v27 }
 0x1c8   : > { %v994_v55 = vmul.f32 0.044715, %v986_v45  ;;  %v932_v56 = vadd.f32 %v931_v52, %v528_v16  ;;  %v2175_v45 = vor.u32 %v2344_v39, %v2172_v40 }
 0x1c9   : > { %v1005_v0 = vadd.f32 %v997_v49, %v3307_v58  ;;  %v3366_v1 = vadd.f32 %v971_v12, %v958_v51  ;;  %v1040_v30 = vmul.f32 %v1032_v21, %v3184_v5  ;;  %1543 = vmatpush.bf16.msrb.mxu3 %v2183_v33  ;;  %v2342_v5 = vld [vmem:[%s3456_s5 + $0x184] sm:$0xf] }
 0x1ca   : > { %v1002_v16 = vadd.f32 %v994_v55, %v3316_v26  ;;  %v3369_v4 = vadd.f32 %v945_v2, %v932_v56 }
 0x1cb   : > { %v2392_v9 = vpop.eup %2391  ;;  %v1013_v13 = vmul.f32 0.7978846, %v1005_v0  ;;  %v979_v50 = vmul.f32 %v3366_v1, %v3366_v1  ;;  %1531 = vmatpush.bf16.msrb.mxu2 %v2103_v38 }
 0x1cc   : > { %v2394_v18 = vpop.eup %2393  ;;  %v1010_v19 = vmul.f32 0.7978846, %v1002_v16  ;;  %v982_v14 = vmul.f32 %v3369_v4, %v3369_v4  ;;  %v1025_v7 = vadd.f32 1.0, %v2392_v9 }
 0x1cd   : > { %v1028_v22 = vadd.f32 1.0, %v2394_v18  ;;  %2395 = vtanh.f32 %v1013_v13  ;;  %v987_v10 = vmul.f32 %v979_v50, %v3366_v1  ;;  %1544 = vmatpush.bf16.msrb.mxu3 %v2175_v45 }
 0x1ce   : > { %v990_v24 = vmul.f32 %v982_v14, %v3369_v4  ;;  %v959_v25 = vpop.f32.mrf.mxu2  ;;  %2397 = vtanh.f32 %v1010_v19  ;;  %v973_v36 = vpop.f32.mrf.mxu3  ;;  %v1033_v48 = vmul.f32 0.5, %v1025_v7  ;;  %v1567_v7 = vld [vmem:[%s3457_s6] sm:$0x3] }
 0x1cf   : > { %v1036_v11 = vmul.f32 0.5, %v1028_v22  ;;  %v995_v29 = vmul.f32 0.044715, %v987_v10  ;;  %v960_v31 = vadd.f32 %v959_v25, %v529_v32  ;;  %v1569_v63 = vperm.slane %v1567_v7, 0 }
 0x1d0   : > { %v998_v35 = vmul.f32 0.044715, %v990_v24  ;;  %v1041_v57 = vmul.f32 %v1033_v48, %v3236_v37 }
 0x1d1   : > { %v1044_v32 = vmul.f32 %v1036_v11, %v3248_v43  ;;  %v1003_v41 = vadd.f32 %v995_v29, %v3366_v1  ;;  %v974_v42 = vadd.f32 %v973_v36, %v960_v31  ;;  %v2164_v43 = vld [vmem:[%s3456_s5 + $0x188] sm:$0xf0]  ;;  %v2405_v11 = vld [vmem:[%s2500_s9] sm:$0xff] }
 0x1d2   : > { %v1006_v44 = vadd.f32 %v998_v35, %v3369_v4  ;;  %v2167_v55 = vor.u32 %v2342_v5, %v2164_v43 }
 0x1d3   : > { %v2396_v46 = vpop.eup %2395  ;;  %v1011_v12 = vmul.f32 0.7978846, %v1003_v41  ;;  %v983_v15 = vmul.f32 %v974_v42, %v974_v42  ;;  %v1052_v47 = vpack.c.bf16 %v1044_v32, %v1040_v30  ;;  %v2406_v30 = vld [vmem:[%s2500_s9 + $0x10] sm:$0xff] }
 0x1d4   : > { %v1029_v49 = vadd.f32 1.0, %v2396_v46  ;;  %v1014_v51 = vmul.f32 0.7978846, %v1006_v44  ;;  %v2398_v53 = vpop.eup %2397  ;;  %1545 = vmatpush.bf16.msrb.mxu3 %v2167_v55  ;;  %v2408_v55 = vld [vmem:[%s2500_s9 + $0x18] sm:$0xff] }
 0x1d5   : > { %v991_v52 = vmul.f32 %v983_v15, %v974_v42  ;;  %1448 = vmatmul.bf16.vlgmr.msra.gmra.mxu0 %v1052_v47  ;;  %v1026_v60 = vadd.f32 1.0, %v2398_v53 }
 0x1d6   : > { %v1037_v54 = vmul.f32 0.5, %v1029_v49  ;;  %2399 = vtanh.f32 %v1014_v51 }
 0x1d7   : > { %2401 = vtanh.f32 %v1011_v12  ;;  %v999_v56 = vmul.f32 0.044715, %v991_v52  ;;  %v1034_v6 = vmul.f32 0.5, %v1026_v60  ;;  %v1570_v12 = vperm.slane %v1567_v7, 1 }
 0x1d8   : > { %v1045_v59 = vmul.f32 %v1037_v54, %v3307_v58 }
 0x1d9   : > { %v1007_v61 = vadd.f32 %v999_v56, %v974_v42  ;;  %v1042_v50 = vmul.f32 %v1034_v6, %v3316_v26 }
 0x1da   : > { %v1053_v0 = vpack.c.bf16 %v1045_v59, %v1041_v57 }
 0x1db   : > { %v1015_v2 = vmul.f32 0.7978846, %v1007_v61 }
 0x1dc   : > { %v2400_v3 = vpop.eup %2399  ;;  %1462 = vmatmul.bf16.vlgmr.msra.gmra.mxu1 %v1053_v0 }
 0x1dd   : > { %v2402_v16 = vpop.eup %2401  ;;  %v1030_v8 = vadd.f32 1.0, %v2400_v3  ;;  %2403 = vtanh.f32 %v1015_v2 }
 0x1de   : > { %v1027_v13 = vadd.f32 1.0, %v2402_v16 }
 0x1df   : > { %v1038_v9 = vmul.f32 0.5, %v1030_v8 }
 0x1e0   : > { %v1035_v58 = vmul.f32 0.5, %v1027_v13 }
 0x1e1   : > { %v1046_v17 = vmul.f32 %v1038_v9, %v3369_v4 }
 0x1e2   : > { %v1043_v20 = vmul.f32 %v1035_v58, %v3366_v1 }
 0x1e3   : > { %v2404_v37 = vpop.eup %2403  ;;  %v1054_v18 = vpack.c.bf16 %v1046_v17, %v1042_v50 }
 0x1e4   : > { %v1031_v19 = vadd.f32 1.0, %v2404_v37 }
 0x1e5   : > { %1476 = vmatmul.bf16.vlgmr.msra.gmra.mxu2 %v1054_v18  ;;  %1504 = vmatmul.bf16.vlgmr.msrb.gmra.mxu0 %v1052_v47  ;;  %v2407_v47 = vld [vmem:[%s2500_s9 + $0x8] sm:$0xff] }
 0x1e6   : > { %v1039_v14 = vmul.f32 0.5, %v1031_v19 }
 0x1e8   : > { %v1047_v21 = vmul.f32 %v1039_v14, %v974_v42 }
 0x1ea   : > { %v1055_v22 = vpack.c.bf16 %v1047_v21, %v1043_v20 }
 0x1ec   : > { %1490 = vmatmul.bf16.vlgmr.msra.gmra.mxu3 %v1055_v22  ;;  %1518 = vmatmul.bf16.vlgmr.msrb.gmra.mxu1 %v1053_v0 }
 0x1f5   : > { %1532 = vmatmul.bf16.vlgmr.msrb.gmra.mxu2 %v1054_v18 }
 0x1fc   : > { %1546 = vmatmul.bf16.vlgmr.msrb.gmra.mxu3 %v1055_v22 }
 0x252   : > { %v1449_v10 = vpop.f32.mrf.mxu0 }
 0x259   : > { %v1463_v26 = vpop.f32.mrf.mxu1 }
 0x25a   : > { %v1464_v23 = vadd.f32 %v1463_v26, %v1449_v10  ;;  %v1451_v25 = vpop.f32.mrf.mxu0 }
 0x261   : > { %v1465_v62 = vpop.f32.mrf.mxu1 }
 0x262   : > { %v1466_v31 = vadd.f32 %v1465_v62, %v1451_v25  ;;  %v1505_v39 = vpop.f32.mrf.mxu0 }
 0x268   : > { %v1477_v4 = vpop.f32.mrf.mxu2 }
 0x269   : > { %v1478_v24 = vadd.f32 %v1477_v4, %v1464_v23  ;;  %v1519_v35 = vpop.f32.mrf.mxu1 }
 0x26a   : > { %v1520_v41 = vadd.f32 %v1519_v35, %v1505_v39  ;;  %v1507_v49 = vpop.f32.mrf.mxu0 }
 0x26f   : > { %v1491_v1 = vpop.f32.mrf.mxu3 }
 0x270   : > { %v1492_v27 = vadd.f32 %v1491_v1, %v1478_v24  ;;  %v1479_v28 = vpop.f32.mrf.mxu2 }
 0x271   : > { %v1480_v34 = vadd.f32 %v1479_v28, %v1466_v31  ;;  %v1521_v15 = vpop.f32.mrf.mxu1 }
 0x272   : > { %v1552_v29 = vadd.f32 %v2405_v11, %v1492_v27  ;;  %v1522_v52 = vadd.f32 %v1521_v15, %v1507_v49 }
 0x274   : > { %v1573_v33 = vadd.f32 %v1569_v63, %v1552_v29 }
 0x276   : > { %1577 = vst [vmem:[%s3433_s22] sm:$0xff] %v1573_v33 }
 0x277   : > { %v1493_v36 = vpop.f32.mrf.mxu3 }
 0x278   : > { %v1494_v38 = vadd.f32 %v1493_v36, %v1480_v34  ;;  %v1533_v40 = vpop.f32.mrf.mxu2 }
 0x279   : > { %v1534_v44 = vadd.f32 %v1533_v40, %v1520_v41 }
 0x27a   : > { %v1554_v32 = vadd.f32 %v2406_v30, %v1494_v38 }
 0x27c   : > { %v1575_v42 = vadd.f32 %v1569_v63, %v1554_v32 }
 0x27e   : > { %1579 = vst [vmem:[%s3433_s22 + $0x10] sm:$0xff] %v1575_v42 }
 0x27f   : > { %v1547_v45 = vpop.f32.mrf.mxu3 }
 0x280   : > { %v1548_v46 = vadd.f32 %v1547_v45, %v1534_v44  ;;  %v1535_v51 = vpop.f32.mrf.mxu2 }
 0x281   : > { %v1536_v43 = vadd.f32 %v1535_v51, %v1522_v52 }
 0x282   : > { %v1553_v48 = vadd.f32 %v2407_v47, %v1548_v46 }
 0x284   : > { %v1574_v5 = vadd.f32 %v1570_v12, %v1553_v48 }
 0x286   : > { %1578 = vst [vmem:[%s3433_s22 + $0x8] sm:$0xff] %v1574_v5 }
 0x287   : > { %v1549_v53 = vpop.f32.mrf.mxu3 }
 0x288   : > { %v1550_v54 = vadd.f32 %v1549_v53, %v1536_v43 }
 0x28a   : > { %v1555_v56 = vadd.f32 %v2408_v55, %v1550_v54 }
 0x28c   : > { %v1576_v57 = vadd.f32 %v1570_v12, %v1555_v56 }
 0x28e   : > { %1580 = vst [vmem:[%s3433_s22 + $0x18] sm:$0xff] %v1576_v57 }
 0x28f PF: > { %s17_s26 = sadd.s32 1, %s2431_s26   ;;  %s3459_s24 = smov %s2427_s25 }
 0x290   : > { %p14_p5 = scmp.ge.s32.totalorder %s17_s26, 4   ;;  %s3460_s25 = smov %s3462_s27 }
 0x292   :  { %16 = sbr.rel (!%p14_p5) target bundleno = 2 (0x2), region = 95 }

// kernel: visualbert_resmlp_prediction.12
= control target key start
LH: loop header
LB: loop body
LE: loop exit
PB: predicated region body
PF: predicated region fallthrough
CT: control target
= control target key end

     0   :  { %12 = vsyncpa [#allocation5], 0  ;;  %s2526_s24 = smov 0   ;;  %s2528_s25 = smov 0   ;;  %s3123_s0 = inlined_call_operand.vmem [shape: f32[32,256], index: 0, kind: input, shape index: {}]   ;;  %s3124_s1 = inlined_call_operand.vmem [shape: f32[1,256], index: 1, kind: input, shape index: {}]   ;;  %s3125_s2 = inlined_call_operand.vmem [shape: f32[1,256], index: 2, kind: input, shape index: {}]   ;;  %s3126_s3 = inlined_call_operand.vmem [shape: bf16[256,512], index: 3, kind: input, shape index: {}]   ;;  %s3127_s4 = inlined_call_operand.vmem [shape: f32[1,512], index: 4, kind: input, shape index: {}]   ;;  %s3128_s5 = inlined_call_operand.hbm [shape: bf16[512,256], index: 5, kind: input, shape index: {}]   ;;  %s3129_s6 = inlined_call_operand.vmem [shape: f32[1,256], index: 6, kind: input, shape index: {}]   ;;  %s3130_s7 = inlined_call_operand.vmem [shape: f32[32,256], index: 7, kind: output, shape index: {}]  }
   0x1   :  { %s2530_s26 = smov 0  }
   0x2 LB: > { %s1691_s27 = sadd.s32 4294967295, %s2480_s26   ;;  %s30_s28 = sadd.s32 1, %s2476_s25  ;;  %s2480_s26 = sphi %s2530_s26, %s18_s26   ;;  %s2476_s25 = sphi %s2528_s25, %s3132_s25   ;;  %s2472_s24 = sphi %s2526_s24, %s3131_s24  }
   0x3   : > { %p32_p0 = scmp.ge.s32.totalorder %s30_s28, 2  ;;  %p1693_p1 = scmp.ge.s32.totalorder %s2480_s26, 1 }
   0x4   : > { %p228_p2 = scmp.lt.s32.totalorder %s2480_s26, 3  ;;  %p2368_p4 = scmp.eq.s32.totalorder %s1691_s27, 0 }
   0x5   : > { %s3134_s28 = smov (%p32_p0, %s30_s28), 0  ;;  %s266_s8 = sshll.u32 %s3128_s5, 4  ;;  %s267_s8 = int_to_ptr.hbm [resolvable:$true] %s266_s8 }
   0x6   : > { %p229_p3 = pnand %p1693_p1, %p228_p2  ;;  %s2482_s9 = smov [#allocation4]  }
   0x7   : > { %s268_s10 = sshll.u32 %s2482_s9, 4  ;;  %s2483_s11 = smov 128   ;;  %s269_s10 = int_to_ptr.vmem [resolvable:$true] %s268_s10 }
   0x8   : > { %p2364_p5 = pneg %p229_p3  ;;  %s2484_s12 = smov 8  }
   0x9   : > { %297 = sbr.rel (%p229_p3) target bundleno = 661 (0x295), region = 48 }
   0xa   : > { %p2365_p6 = pnand %p2368_p4, %p2364_p5 }
   0xc   : > { %2367 = dma.hbm_to_vmem [thread:$0]  (!%p2365_p6), %s267_s8, 8192, %s269_s10, [#allocation5], %s2483_s11, %s2483_s11, %s2484_s12  }
   0xe   : > { %2467 = dma.done.wait (%p2368_p4), [#allocation5], 8192  }
   0xf   : > { %2469 = vsyncadd (%p2368_p4), [#allocation5], 4294959104  ;;  %s1700_s13 = sshll.u32 %s2472_s24, 1  ;;  %v2485_v6 = vmov 256.0   ;;  %v1828_v27 = vld [vmem:[%s3126_s3 + $0xe0] sm:$0xf] }
  0x10   : > { %p342_p7 = scmp.lt.s32.totalorder %s1700_s13, 3  ;;  %2398 = vrcp.f32 %v2485_v6  ;;  %v2262_v28 = vld [vmem:[%s3126_s3 + $0xec] sm:$0xf0]  ;;  %v1956_v29 = vld [vmem:[%s3126_s3 + $0x1e0] sm:$0xf] }
  0x11   : > { %v1829_v30 = vor.u32 %v2262_v28, %v1828_v27  ;;  %v2294_v31 = vld [vmem:[%s3126_s3 + $0x1ec] sm:$0xf0]  ;;  %v2260_v32 = vld [vmem:[%s3126_s3 + $0xe4] sm:$0xf]  ;;  %v1830_v33 = vld [vmem:[%s3126_s3 + $0xf0] sm:$0xf0] }
  0x12   : > { %s3136_s13 = smov (!%p342_p7, %s1700_s13), 3  ;;  %v1957_v34 = vor.u32 %v2294_v31, %v1956_v29  ;;  %v1833_v35 = vor.u32 %v2260_v32, %v1830_v33  ;;  %v2292_v36 = vld [vmem:[%s3126_s3 + $0x1e4] sm:$0xf]  ;;  %v1958_v37 = vld [vmem:[%s3126_s3 + $0x1f0] sm:$0xf0] }
  0x13   : > { %s2228_s14 = sshll.u32 %s3136_s13, 4  ;;  %866 = vmatpush.bf16.msra.mxu0 %v1829_v30  ;;  %v1961_v38 = vor.u32 %v2292_v36, %v1958_v37  ;;  %v1812_v39 = vld [vmem:[%s3126_s3 + $0xc0] sm:$0xf]  ;;  %v2258_v40 = vld [vmem:[%s3126_s3 + $0xcc] sm:$0xf0] }
  0x14   : > { %s2556_s17 = scalar_lea.vmem %s3123_s0, %s2228_s14  ;;  %880 = vmatpush.bf16.msra.mxu1 %v1957_v34  ;;  %894 = vmatpush.bf16.msra.mxu2 %v1833_v35  ;;  %v1940_v41 = vld [vmem:[%s3126_s3 + $0x1c0] sm:$0xf]  ;;  %v1813_v42 = vor.u32 %v2258_v40, %v1812_v39  ;;  %v2290_v43 = vld [vmem:[%s3126_s3 + $0x1cc] sm:$0xf0]  ;;  %v2256_v44 = vld [vmem:[%s3126_s3 + $0xc4] sm:$0xf]  ;;  %s3105_s9 = scalar_lea.vmem %s3130_s7, %s2228_s14 }
  0x15   : > { %v371_v0 = vld [vmem:[%s2556_s17] sm:$0xff]  ;;  %v372_v1 = vld [vmem:[%s2556_s17 + $0x8] sm:$0xff]  ;;  %v373_v3 = vld [vmem:[%s2556_s17 + $0x10] sm:$0xff]  ;;  %908 = vmatpush.bf16.msra.mxu3 %v1961_v38  ;;  %v1941_v46 = vor.u32 %v2290_v43, %v1940_v41 }
  0x16   : > { %v375_v2 = vadd.f32 %v372_v1, %v371_v0  ;;  %v374_v4 = vld [vmem:[%s2556_s17 + $0x18] sm:$0xff]  ;;  %v2399_v7 = vpop.eup %2398  ;;  %v1814_v45 = vld [vmem:[%s3126_s3 + $0xd0] sm:$0xf0]  ;;  %v2288_v48 = vld [vmem:[%s3126_s3 + $0x1c4] sm:$0xf] }
  0x17   : > { %v378_v5 = vadd.f32 %v374_v4, %v373_v3  ;;  %v382_v8 = vmul.f32 256.0, %v2399_v7  ;;  %vm386_vm0 = vweird.f32 %v2399_v7  ;;  %v1817_v47 = vor.u32 %v2256_v44, %v1814_v45  ;;  %v1942_v49 = vld [vmem:[%s3126_s3 + $0x1d0] sm:$0xf0]  ;;  %867 = vmatpush.bf16.msra.mxu0 %v1813_v42  ;;  %v1796_v51 = vld [vmem:[%s3126_s3 + $0xa0] sm:$0xf] }
  0x18   : > { %376 = vadd.xlane.f32.xlu0 %v375_v2  ;;  %v1945_v50 = vor.u32 %v2288_v48, %v1942_v49  ;;  %881 = vmatpush.bf16.msra.mxu1 %v1941_v46  ;;  %v2254_v52 = vld [vmem:[%s3126_s3 + $0xac] sm:$0xf0]  ;;  %v1924_v53 = vld [vmem:[%s3126_s3 + $0x1a0] sm:$0xf]  ;;  %v2252_v56 = vld [vmem:[%s3126_s3 + $0xa4] sm:$0xf] }
  0x19   : > { %v383_v9 = vsub.f32 1.0, %v382_v8  ;;  %895 = vmatpush.bf16.msra.mxu2 %v1817_v47  ;;  %v1797_v54 = vor.u32 %v2254_v52, %v1796_v51  ;;  %v2286_v55 = vld [vmem:[%s3126_s3 + $0x1ac] sm:$0xf0]  ;;  %v1798_v57 = vld [vmem:[%s3126_s3 + $0xb0] sm:$0xf0] }
  0x1a   : > { %909 = vmatpush.bf16.msra.mxu3 %v1945_v50  ;;  %v1925_v58 = vor.u32 %v2286_v55, %v1924_v53  ;;  %v1801_v59 = vor.u32 %v2252_v56, %v1798_v57  ;;  %v2284_v60 = vld [vmem:[%s3126_s3 + $0x1a4] sm:$0xf]  ;;  %v1926_v61 = vld [vmem:[%s3126_s3 + $0x1b0] sm:$0xf0]  ;;  %v1780_v63 = vld [vmem:[%s3126_s3 + $0x80] sm:$0xf] }
  0x1b   : > { %v384_v10 = vmul.f32 %v2399_v7, %v383_v9  ;;  %868 = vmatpush.bf16.msra.mxu0 %v1797_v54  ;;  %v1929_v62 = vor.u32 %v2284_v60, %v1926_v61  ;;  %v2280_v8 = vld [vmem:[%s3126_s3 + $0x184] sm:$0xf]  ;;  %v1910_v9 = vld [vmem:[%s3126_s3 + $0x190] sm:$0xf0]  ;;  %v1748_v28 = vld [vmem:[%s3126_s3 + $0x40] sm:$0xf] }
  0x1c   : > { %882 = vmatpush.bf16.msra.mxu1 %v1925_v58  ;;  %v2242_v29 = vld [vmem:[%s3126_s3 + $0x4c] sm:$0xf0]  ;;  %v1876_v30 = vld [vmem:[%s3126_s3 + $0x140] sm:$0xf]  ;;  %v2240_v33 = vld [vmem:[%s3126_s3 + $0x44] sm:$0xf] }
  0x1d   : > { %v385_v11 = vadd.f32 %v2399_v7, %v384_v10  ;;  %896 = vmatpush.bf16.msra.mxu2 %v1801_v59  ;;  %v1913_v10 = vor.u32 %v2280_v8, %v1910_v9  ;;  %v1749_v31 = vor.u32 %v2242_v29, %v1748_v28  ;;  %v2274_v32 = vld [vmem:[%s3126_s3 + $0x14c] sm:$0xf0]  ;;  %v1750_v34 = vld [vmem:[%s3126_s3 + $0x50] sm:$0xf0]  ;;  %v2272_v37 = vld [vmem:[%s3126_s3 + $0x144] sm:$0xf] }
  0x1e   : > { %910 = vmatpush.bf16.msra.mxu3 %v1929_v62  ;;  %v1877_v35 = vor.u32 %v2274_v32, %v1876_v30  ;;  %v1753_v36 = vor.u32 %v2240_v33, %v1750_v34  ;;  %v1878_v38 = vld [vmem:[%s3126_s3 + $0x150] sm:$0xf0]  ;;  %v1732_v40 = vld [vmem:[%s3126_s3 + $0x20] sm:$0xf]  ;;  %v2238_v41 = vld [vmem:[%s3126_s3 + $0x2c] sm:$0xf0] }
  0x1f   : > { %v2562_v12 = vsel %vm386_vm0, %v2399_v7, %v385_v11  ;;  %v1764_v11 = vld [vmem:[%s3126_s3 + $0x60] sm:$0xf]  ;;  %v1881_v39 = vor.u32 %v2272_v37, %v1878_v38  ;;  %v1733_v43 = vor.u32 %v2238_v41, %v1732_v40  ;;  %v2270_v44 = vld [vmem:[%s3126_s3 + $0x12c] sm:$0xf0]  ;;  %v2236_v45 = vld [vmem:[%s3126_s3 + $0x24] sm:$0xf] }
  0x20   : > { %379 = vadd.xlane.f32.xlu0 %v378_v5  ;;  %v1782_v5 = vld [vmem:[%s3126_s3 + $0x90] sm:$0xf0]  ;;  %v1860_v42 = vld [vmem:[%s3126_s3 + $0x120] sm:$0xf]  ;;  %v2268_v49 = vld [vmem:[%s3126_s3 + $0x124] sm:$0xf] }
  0x21   : > { %v1734_v46 = vld [vmem:[%s3126_s3 + $0x30] sm:$0xf0]  ;;  %v1861_v47 = vor.u32 %v2270_v44, %v1860_v42  ;;  %v1716_v52 = vld [vmem:[%s3126_s3] sm:$0xf]  ;;  %v2234_v53 = vld [vmem:[%s3126_s3 + $0xc] sm:$0xf0] }
  0x22   : > { %911 = vmatpush.bf16.msra.mxu3 %v1913_v10  ;;  %v1737_v48 = vor.u32 %v2236_v45, %v1734_v46  ;;  %v1862_v50 = vld [vmem:[%s3126_s3 + $0x130] sm:$0xf0]  ;;  %v1844_v54 = vld [vmem:[%s3126_s3 + $0x100] sm:$0xf]  ;;  %v1717_v55 = vor.u32 %v2234_v53, %v1716_v52  ;;  %v2266_v56 = vld [vmem:[%s3126_s3 + $0x10c] sm:$0xf0] }
  0x23   : > { %v1865_v51 = vor.u32 %v2268_v49, %v1862_v50  ;;  %v2232_v57 = vld [vmem:[%s3126_s3 + $0x4] sm:$0xf]  ;;  %v1718_v58 = vld [vmem:[%s3126_s3 + $0x10] sm:$0xf0]  ;;  %v1845_v60 = vor.u32 %v2266_v56, %v1844_v54  ;;  %v2261_v8 = vld [vmem:[%s3126_s3 + $0xec] sm:$0xf] }
  0x24   : > { %v1721_v61 = vor.u32 %v2232_v57, %v1718_v58  ;;  %v2264_v62 = vld [vmem:[%s3126_s3 + $0x104] sm:$0xf]  ;;  %v1838_v9 = vld [vmem:[%s3126_s3 + $0xf8] sm:$0xf0]  ;;  %v2293_v10 = vld [vmem:[%s3126_s3 + $0x1ec] sm:$0xf] }
  0x25   : > { %v2289_v28 = vld [vmem:[%s3126_s3 + $0x1cc] sm:$0xf]  ;;  %v1950_v30 = vld [vmem:[%s3126_s3 + $0x1d8] sm:$0xf0]  ;;  %v1804_v32 = vld [vmem:[%s3126_s3 + $0xa8] sm:$0xf] }
  0x26   : > { %v2255_v33 = vld [vmem:[%s3126_s3 + $0xb4] sm:$0xf0]  ;;  %v1932_v34 = vld [vmem:[%s3126_s3 + $0x1a8] sm:$0xf]  ;;  %v2253_v38 = vld [vmem:[%s3126_s3 + $0xac] sm:$0xf] }
  0x27   : > { %v2287_v37 = vld [vmem:[%s3126_s3 + $0x1b4] sm:$0xf0]  ;;  %v1934_v44 = vld [vmem:[%s3126_s3 + $0x1b8] sm:$0xf0]  ;;  %v1788_v45 = vld [vmem:[%s3126_s3 + $0x88] sm:$0xf] }
  0x28   : > { %v1933_v41 = vor.u32 %v2287_v37, %v1932_v34  ;;  %v1790_v52 = vld [vmem:[%s3126_s3 + $0x98] sm:$0xf0]  ;;  %v2281_v56 = vld [vmem:[%s3126_s3 + $0x18c] sm:$0xf]  ;;  %v2881_v58 = vld [vmem:[%s3124_s1] sm:$0x3] }
  0x29   : > { %v1918_v57 = vld [vmem:[%s3126_s3 + $0x198] sm:$0xf0] }
  0x2a   : > { %v1886_v37 = vld [vmem:[%s3126_s3 + $0x158] sm:$0xf0] }
  0x8b   : > { %v377_v13 = vpop.xlane.xlu0 %376 }
  0x8c   : > { %v388_v14 = vmul.f32 %v2562_v12, %v377_v13  ;;  %v2246_v13 = vld [vmem:[%s3126_s3 + $0x6c] sm:$0xf0] }
  0x8e   : > { %v2565_v15 = vsub.f32 %v371_v0, %v388_v14  ;;  %v2567_v16 = vsub.f32 %v372_v1, %v388_v14  ;;  %v2250_v0 = vld [vmem:[%s3126_s3 + $0x8c] sm:$0xf0]  ;;  %v1908_v1 = vld [vmem:[%s3126_s3 + $0x180] sm:$0xf] }
  0x8f   : > { %v1781_v2 = vor.u32 %v2250_v0, %v1780_v63  ;;  %v1892_v14 = vld [vmem:[%s3126_s3 + $0x160] sm:$0xf]  ;;  %v1846_v63 = vld [vmem:[%s3126_s3 + $0x110] sm:$0xf0]  ;;  %v1836_v0 = vld [vmem:[%s3126_s3 + $0xe8] sm:$0xf] }
  0x90   : > { %v394_v17 = vmul.f32 %v2565_v15, %v2565_v15  ;;  %v395_v18 = vmul.f32 %v2567_v16, %v2567_v16 }
  0x91   : > { %869 = vmatpush.bf16.msra.mxu0 %v1781_v2  ;;  %v1849_v2 = vor.u32 %v2264_v62, %v1846_v63  ;;  %v434_v62 = vperm.slane %v2881_v58, 0  ;;  %v2888_v63 = vld [vmem:[%s3125_s2] sm:$0x3] }
  0x92   : > { %v398_v19 = vadd.f32 %v395_v18, %v394_v17  ;;  %v1765_v17 = vor.u32 %v2246_v13, %v1764_v11  ;;  %v2278_v18 = vld [vmem:[%s3126_s3 + $0x16c] sm:$0xf0]  ;;  %v1841_v13 = vor.u32 %v2261_v8, %v1838_v9 }
  0x93   : > { %v380_v20 = vpop.xlane.xlu0 %379 }
  0x94   : > { %v389_v21 = vmul.f32 %v2562_v12, %v380_v20  ;;  %399 = vadd.xlane.f32.xlu1 %v398_v19  ;;  %v2244_v19 = vld [vmem:[%s3126_s3 + $0x64] sm:$0xf]  ;;  %v1766_v20 = vld [vmem:[%s3126_s3 + $0x70] sm:$0xf0] }
  0x95   : > { %870 = vmatpush.bf16.msra.mxu0 %v1765_v17  ;;  %v1820_v17 = vld [vmem:[%s3126_s3 + $0xc8] sm:$0xf] }
  0x96   : > { %v2574_v22 = vsub.f32 %v373_v3, %v389_v21  ;;  %v2576_v23 = vsub.f32 %v374_v4, %v389_v21  ;;  %v2282_v3 = vld [vmem:[%s3126_s3 + $0x18c] sm:$0xf0]  ;;  %v2248_v4 = vld [vmem:[%s3126_s3 + $0x84] sm:$0xf]  ;;  %v1893_v21 = vor.u32 %v2278_v18, %v1892_v14  ;;  %v1966_v14 = vld [vmem:[%s3126_s3 + $0x1f8] sm:$0xf0] }
  0x97   : > { %v1909_v6 = vor.u32 %v2282_v3, %v1908_v1  ;;  %v1785_v7 = vor.u32 %v2248_v4, %v1782_v5  ;;  %v2263_v3 = vld [vmem:[%s3126_s3 + $0xf4] sm:$0xf0]  ;;  %v1964_v4 = vld [vmem:[%s3126_s3 + $0x1e8] sm:$0xf]  ;;  %v1969_v18 = vor.u32 %v2293_v10, %v1966_v14  ;;  %v1774_v10 = vld [vmem:[%s3126_s3 + $0x78] sm:$0xf0] }
  0x98   : > { %v396_v24 = vmul.f32 %v2574_v22, %v2574_v22  ;;  %v397_v25 = vmul.f32 %v2576_v23, %v2576_v23  ;;  %v2295_v5 = vld [vmem:[%s3126_s3 + $0x1f4] sm:$0xf0] }
  0x99   : > { %883 = vmatpush.bf16.msra.mxu1 %v1909_v6  ;;  %897 = vmatpush.bf16.msra.mxu2 %v1785_v7  ;;  %v1837_v6 = vor.u32 %v2263_v3, %v1836_v0  ;;  %v1965_v7 = vor.u32 %v2295_v5, %v1964_v4  ;;  %v1900_v4 = vld [vmem:[%s3126_s3 + $0x168] sm:$0xf]  ;;  %v2279_v5 = vld [vmem:[%s3126_s3 + $0x174] sm:$0xf0] }
  0x9a   : > { %v401_v26 = vadd.f32 %v397_v25, %v396_v24  ;;  %v1769_v24 = vor.u32 %v2244_v19, %v1766_v20  ;;  %v2276_v25 = vld [vmem:[%s3126_s3 + $0x164] sm:$0xf]  ;;  %871 = vmatpush.bf16.msra.mxu0 %v1749_v31  ;;  %v2259_v19 = vld [vmem:[%s3126_s3 + $0xd4] sm:$0xf0]  ;;  %v1948_v20 = vld [vmem:[%s3126_s3 + $0x1c8] sm:$0xf]  ;;  %v1953_v31 = vor.u32 %v2289_v28, %v1950_v30  ;;  %v1901_v9 = vor.u32 %v2279_v5, %v1900_v4 }
  0x9b   : > { %v2241_v28 = vld [vmem:[%s3126_s3 + $0x4c] sm:$0xf] }
  0x9c   : > { %402 = vadd.xlane.f32.xlu1 %v401_v26  ;;  %v1894_v26 = vld [vmem:[%s3126_s3 + $0x170] sm:$0xf0] }
  0x9d   : > { %v1897_v27 = vor.u32 %v2276_v25, %v1894_v26  ;;  %884 = vmatpush.bf16.msra.mxu1 %v1893_v21  ;;  %898 = vmatpush.bf16.msra.mxu2 %v1769_v24  ;;  %v2291_v21 = vld [vmem:[%s3126_s3 + $0x1d4] sm:$0xf0]  ;;  %v1821_v24 = vor.u32 %v2259_v19, %v1820_v17  ;;  %v2257_v26 = vld [vmem:[%s3126_s3 + $0xcc] sm:$0xf]  ;;  %v1756_v19 = vld [vmem:[%s3126_s3 + $0x48] sm:$0xf] }
  0x9e   : > { %872 = vmatpush.bf16.msra.mxu0 %v1733_v43  ;;  %v1949_v25 = vor.u32 %v2291_v21, %v1948_v20  ;;  %v2285_v43 = vld [vmem:[%s3126_s3 + $0x1ac] sm:$0xf]  ;;  %v2243_v20 = vld [vmem:[%s3126_s3 + $0x54] sm:$0xf0] }
  0x9f   : > { %912 = vmatpush.bf16.msra.mxu3 %v1897_v27  ;;  %v1822_v27 = vld [vmem:[%s3126_s3 + $0xd8] sm:$0xf0]  ;;  %v1937_v46 = vor.u32 %v2285_v43, %v1934_v44  ;;  %v1757_v30 = vor.u32 %v2243_v20, %v1756_v19  ;;  %v1868_v43 = vld [vmem:[%s3126_s3 + $0x128] sm:$0xf]  ;;  %v2271_v44 = vld [vmem:[%s3126_s3 + $0x134] sm:$0xf0] }
  0xa0   : > { %v1825_v29 = vor.u32 %v2257_v26, %v1822_v27  ;;  %v1884_v26 = vld [vmem:[%s3126_s3 + $0x148] sm:$0xf]  ;;  %v2275_v27 = vld [vmem:[%s3126_s3 + $0x154] sm:$0xf0] }
  0xa1   : > { %885 = vmatpush.bf16.msra.mxu1 %v1877_v35  ;;  %899 = vmatpush.bf16.msra.mxu2 %v1753_v36  ;;  %v1805_v36 = vor.u32 %v2255_v33, %v1804_v32  ;;  %v1758_v32 = vld [vmem:[%s3126_s3 + $0x58] sm:$0xf0]  ;;  %v2273_v33 = vld [vmem:[%s3126_s3 + $0x14c] sm:$0xf] }
  0xa2   : > { %873 = vmatpush.bf16.msra.mxu0 %v1717_v55 }
  0xa3   : > { %913 = vmatpush.bf16.msra.mxu3 %v1881_v39  ;;  %v1806_v39 = vld [vmem:[%s3126_s3 + $0xb8] sm:$0xf0] }
  0xa4   : > { %v1809_v42 = vor.u32 %v2253_v38, %v1806_v39  ;;  %v1740_v38 = vld [vmem:[%s3126_s3 + $0x28] sm:$0xf]  ;;  %v2239_v39 = vld [vmem:[%s3126_s3 + $0x34] sm:$0xf0] }
  0xa5   : > { %886 = vmatpush.bf16.msra.mxu1 %v1861_v47  ;;  %900 = vmatpush.bf16.msra.mxu2 %v1737_v48  ;;  %v1916_v47 = vld [vmem:[%s3126_s3 + $0x188] sm:$0xf]  ;;  %v2283_v48 = vld [vmem:[%s3126_s3 + $0x194] sm:$0xf0] }
  0xa6   : > { %922 = vmatpush.bf16.msrb.mxu0 %v1837_v6  ;;  %v1917_v55 = vor.u32 %v2283_v48, %v1916_v47  ;;  %v2245_v6 = vld [vmem:[%s3126_s3 + $0x6c] sm:$0xf] }
  0xa7   : > { %914 = vmatpush.bf16.msra.mxu3 %v1865_v51  ;;  %v2249_v51 = vld [vmem:[%s3126_s3 + $0x8c] sm:$0xf]  ;;  %v1777_v17 = vor.u32 %v2245_v6, %v1774_v10  ;;  %v1854_v6 = vld [vmem:[%s3126_s3 + $0x118] sm:$0xf0] }
  0xa8   : > { %v2269_v47 = vld [vmem:[%s3126_s3 + $0x12c] sm:$0xf] }
  0xa9   : > { %887 = vmatpush.bf16.msra.mxu1 %v1845_v60  ;;  %901 = vmatpush.bf16.msra.mxu2 %v1721_v61  ;;  %v1921_v61 = vor.u32 %v2281_v56, %v1918_v57  ;;  %v1852_v57 = vld [vmem:[%s3126_s3 + $0x108] sm:$0xf] }
  0xaa   : > { %923 = vmatpush.bf16.msrb.mxu0 %v1821_v24 }
  0xab   : > { %915 = vmatpush.bf16.msra.mxu3 %v1849_v2  ;;  %v2247_v2 = vld [vmem:[%s3126_s3 + $0x74] sm:$0xf0] }
  0xad   : > { %936 = vmatpush.bf16.msrb.mxu1 %v1965_v7  ;;  %950 = vmatpush.bf16.msrb.mxu2 %v1841_v13  ;;  %v435_v7 = vperm.slane %v2881_v58, 1  ;;  %v2277_v13 = vld [vmem:[%s3126_s3 + $0x16c] sm:$0xf] }
  0xae   : > { %924 = vmatpush.bf16.msrb.mxu0 %v1805_v36  ;;  %v1761_v36 = vor.u32 %v2241_v28, %v1758_v32  ;;  %v2012_v32 = vld [vmem:[#allocation4 + $0x50] sm:$0xf] }
  0xaf   : > { %964 = vmatpush.bf16.msrb.mxu3 %v1969_v18  ;;  %v1902_v18 = vld [vmem:[%s3126_s3 + $0x178] sm:$0xf0] }
  0xb1   : > { %937 = vmatpush.bf16.msrb.mxu1 %v1949_v25  ;;  %951 = vmatpush.bf16.msrb.mxu2 %v1825_v29  ;;  %v1905_v25 = vor.u32 %v2277_v13, %v1902_v18  ;;  %v445_v29 = vperm.slane %v2888_v63, 1 }
  0xb3   : > { %965 = vmatpush.bf16.msrb.mxu3 %v1953_v31  ;;  %v1885_v31 = vor.u32 %v2275_v27, %v1884_v26 }
  0xb5   : > { %938 = vmatpush.bf16.msrb.mxu1 %v1933_v41  ;;  %952 = vmatpush.bf16.msrb.mxu2 %v1809_v42  ;;  %v1889_v42 = vor.u32 %v2273_v33, %v1886_v37  ;;  %v2307_v33 = vld [vmem:[#allocation4 + $0x54] sm:$0xf0] }
  0xb7   : > { %966 = vmatpush.bf16.msrb.mxu3 %v1937_v46 }
  0xb9   : > { %939 = vmatpush.bf16.msrb.mxu1 %v1917_v55 }
  0xbb   : > { %967 = vmatpush.bf16.msrb.mxu3 %v1921_v61 }
  0xbd   : > { %940 = vmatpush.bf16.msrb.mxu1 %v1901_v9 }
  0xbf   : > { %968 = vmatpush.bf16.msrb.mxu3 %v1905_v25 }
  0xc1   : > { %941 = vmatpush.bf16.msrb.mxu1 %v1885_v31 }
  0xc3   : > { %969 = vmatpush.bf16.msrb.mxu3 %v1889_v42  ;;  %v2323_v42 = vld [vmem:[#allocation4 + $0xd4] sm:$0xf0] }
 0x107   : > { %v400_v59 = vpop.xlane.xlu1 %399 }
 0x108   : > { %v404_v1 = vmul.f32 %v400_v59, %v2562_v12  ;;  %v1793_v59 = vor.u32 %v2249_v51, %v1790_v52  ;;  %v1870_v52 = vld [vmem:[%s3126_s3 + $0x138] sm:$0xf0] }
 0x109   : > { %v1873_v56 = vor.u32 %v2269_v47, %v1870_v52  ;;  %v2068_v47 = vld [vmem:[#allocation4 + $0xc0] sm:$0xf]  ;;  %v2301_v52 = vld [vmem:[#allocation4 + $0x24] sm:$0xf0] }
 0x10a   : > { %v2796_v11 = vadd.f32 1e-12, %v404_v1  ;;  %v1772_v1 = vld [vmem:[%s3126_s3 + $0x68] sm:$0xf]  ;;  %953 = vmatpush.bf16.msrb.mxu2 %v1793_v59  ;;  %v2267_v59 = vld [vmem:[%s3126_s3 + $0x114] sm:$0xf0] }
 0x10b   : > { %v1773_v3 = vor.u32 %v2247_v2, %v1772_v1  ;;  %v1726_v1 = vld [vmem:[%s3126_s3 + $0x18] sm:$0xf0]  ;;  %v2265_v2 = vld [vmem:[%s3126_s3 + $0x10c] sm:$0xf]  ;;  %v1853_v5 = vor.u32 %v2267_v59, %v1852_v57  ;;  %970 = vmatpush.bf16.msrb.mxu3 %v1873_v56  ;;  %v2060_v57 = vld [vmem:[#allocation4 + $0xb0] sm:$0xf] }
 0x10c   : > { %2400 = vrsqrt.f32 %v2796_v11  ;;  %vm414_vm2 = vweird.f32 %v2796_v11  ;;  %v1857_v13 = vor.u32 %v2265_v2, %v1854_v6  ;;  %v2319_v59 = vld [vmem:[#allocation4 + $0xb4] sm:$0xf0]  ;;  %v1980_v2 = vld [vmem:[#allocation4 + $0x10] sm:$0xf] }
 0x10d   : > { %v2339_v6 = vld [vmem:[#allocation4 + $0x154] sm:$0xf0] }
 0x10e   : > { %954 = vmatpush.bf16.msrb.mxu2 %v1777_v17 }
 0x10f   : > { %v403_v35 = vpop.xlane.xlu1 %402  ;;  %971 = vmatpush.bf16.msrb.mxu3 %v1857_v13  ;;  %v2212_v13 = vld [vmem:[#allocation4 + $0x1e0] sm:$0xf] }
 0x110   : > { %v405_v40 = vmul.f32 %v403_v35, %v2562_v12  ;;  %v2251_v12 = vld [vmem:[%s3126_s3 + $0x94] sm:$0xf0] }
 0x111   : > { %v1789_v54 = vor.u32 %v2251_v12, %v1788_v45  ;;  %v2237_v45 = vld [vmem:[%s3126_s3 + $0x2c] sm:$0xf]  ;;  %v1741_v12 = vor.u32 %v2239_v39, %v1740_v38  ;;  %v2004_v38 = vld [vmem:[#allocation4 + $0x40] sm:$0xf]  ;;  %v2305_v39 = vld [vmem:[#allocation4 + $0x44] sm:$0xf0] }
 0x112   : > { %v2401_v49 = vpop.eup %2400  ;;  %v2863_v50 = vadd.f32 1e-12, %v405_v40  ;;  %955 = vmatpush.bf16.msrb.mxu2 %v1761_v36  ;;  %v2325_v36 = vld [vmem:[#allocation4 + $0xe4] sm:$0xf0] }
 0x113   : > { %v409_v53 = vmul.f32 %v2401_v49, %v2796_v11  ;;  %925 = vmatpush.bf16.msrb.mxu0 %v1789_v54  ;;  %vm415_vm1 = vweird.f32 %v2401_v49  ;;  %v444_v11 = vperm.slane %v2888_v63, 0  ;;  %v2235_v54 = vld [vmem:[%s3126_s3 + $0x14] sm:$0xf0] }
 0x114   : > { %2402 = vrsqrt.f32 %v2863_v50  ;;  %vm416_vm3 = vmor %vm414_vm2, %vm415_vm1  ;;  %vm424_vm5 = vweird.f32 %v2863_v50 }
 0x115   : > { %v410_v60 = vmul.f32 %v2401_v49, %v409_v53  ;;  %v1724_v53 = vld [vmem:[%s3126_s3 + $0x8] sm:$0xf] }
 0x116   : > { %v1725_v4 = vor.u32 %v2235_v54, %v1724_v53  ;;  %v2148_v53 = vld [vmem:[#allocation4 + $0x160] sm:$0xf] }
 0x117   : > { %v411_v0 = vmul.f32 0.5, %v410_v60  ;;  %926 = vmatpush.bf16.msrb.mxu0 %v1773_v3 }
 0x119   : > { %v412_v8 = vsub.f32 1.5, %v411_v0  ;;  %v2233_v0 = vld [vmem:[%s3126_s3 + $0xc] sm:$0xf] }
 0x11a   : > { %v2912_v14 = vpop.eup %2402  ;;  %v1729_v9 = vor.u32 %v2233_v0, %v1726_v1  ;;  %v2359_v0 = vld [vmem:[#allocation4 + $0x1f4] sm:$0xf0] }
 0x11b   : > { %v413_v21 = vmul.f32 %v2401_v49, %v412_v8  ;;  %v419_v24 = vmul.f32 %v2912_v14, %v2863_v50  ;;  %927 = vmatpush.bf16.msrb.mxu0 %v1757_v30  ;;  %vm425_vm4 = vweird.f32 %v2912_v14  ;;  %v2309_v30 = vld [vmem:[#allocation4 + $0x64] sm:$0xf0] }
 0x11c   : > { %vm426_vm6 = vmor %vm424_vm5, %vm425_vm4 }
 0x11d   : > { %v417_v34 = vsel %vm416_vm3, %v2401_v49, %v413_v21  ;;  %v420_v35 = vmul.f32 %v2912_v14, %v419_v24 }
 0x11e   : > { %v428_v40 = vmul.f32 %v417_v34, %v2565_v15  ;;  %v429_v41 = vmul.f32 %v417_v34, %v2567_v16  ;;  %v1869_v15 = vor.u32 %v2271_v44, %v1868_v43  ;;  %v1742_v16 = vld [vmem:[%s3126_s3 + $0x38] sm:$0xf0]  ;;  %v2013_v34 = vor.u32 %v2307_v33, %v2012_v32  ;;  %v1996_v44 = vld [vmem:[#allocation4 + $0x30] sm:$0xf]  ;;  %v2308_v32 = vld [vmem:[#allocation4 + $0x64] sm:$0xf] }
 0x11f   : > { %v421_v46 = vmul.f32 0.5, %v420_v35  ;;  %v1745_v51 = vor.u32 %v2237_v45, %v1742_v16  ;;  %928 = vmatpush.bf16.msrb.mxu0 %v1741_v12  ;;  %v2084_v35 = vld [vmem:[#allocation4 + $0xe0] sm:$0xf]  ;;  %v2303_v45 = vld [vmem:[#allocation4 + $0x34] sm:$0xf0] }
 0x120   : > { %v438_v48 = vmul.f32 %v434_v62, %v428_v40  ;;  %v439_v49 = vmul.f32 %v435_v7, %v429_v41  ;;  %942 = vmatpush.bf16.msrb.mxu1 %v1869_v15  ;;  %v2085_v37 = vor.u32 %v2325_v36, %v2084_v35  ;;  %v2005_v40 = vor.u32 %v2305_v39, %v2004_v38  ;;  %v2076_v41 = vld [vmem:[#allocation4 + $0xd0] sm:$0xf]  ;;  %v2343_v15 = vld [vmem:[#allocation4 + $0x174] sm:$0xf0]  ;;  %v2022_v33 = vld [vmem:[#allocation4 + $0x68] sm:$0xf0] }
 0x121   : > { %v422_v55 = vsub.f32 1.5, %v421_v46  ;;  %956 = vmatpush.bf16.msrb.mxu2 %v1745_v51  ;;  %v2077_v43 = vor.u32 %v2323_v42, %v2076_v41  ;;  %v2156_v46 = vld [vmem:[#allocation4 + $0x170] sm:$0xf]  ;;  %v1997_v12 = vor.u32 %v2303_v45, %v1996_v44  ;;  %v1988_v51 = vld [vmem:[#allocation4 + $0x20] sm:$0xf] }
 0x122   : > { %v448_v60 = vadd.f32 %v444_v11, %v438_v48  ;;  %v449_v61 = vadd.f32 %v445_v29, %v439_v49  ;;  %v2157_v16 = vor.u32 %v2343_v15, %v2156_v46  ;;  %v2321_v48 = vld [vmem:[#allocation4 + $0xc4] sm:$0xf0]  ;;  %v1989_v54 = vor.u32 %v2301_v52, %v1988_v51  ;;  %v2036_v35 = vld [vmem:[#allocation4 + $0x80] sm:$0xf]  ;;  %v2094_v41 = vld [vmem:[#allocation4 + $0xf8] sm:$0xf0] }
 0x123   : > { %v423_v3 = vmul.f32 %v2912_v14, %v422_v55  ;;  %929 = vmatpush.bf16.msrb.mxu0 %v1725_v4  ;;  %v2069_v49 = vor.u32 %v2321_v48, %v2068_v47  ;;  %v2341_v55 = vld [vmem:[#allocation4 + $0x164] sm:$0xf0]  ;;  %v2116_v44 = vld [vmem:[#allocation4 + $0x120] sm:$0xf]  ;;  %v2306_v15 = vld [vmem:[#allocation4 + $0x54] sm:$0xf] }
 0x124   : > { %v452_v8 = vpack.c.bf16 %v449_v61, %v448_v60  ;;  %943 = vmatpush.bf16.msrb.mxu1 %v1853_v5  ;;  %v2149_v56 = vor.u32 %v2341_v55, %v2148_v53  ;;  %v2220_v60 = vld [vmem:[#allocation4 + $0x1f0] sm:$0xf]  ;;  %v2061_v61 = vor.u32 %v2319_v59, %v2060_v57  ;;  %v2313_v36 = vld [vmem:[#allocation4 + $0x84] sm:$0xf0]  ;;  %v2324_v52 = vld [vmem:[#allocation4 + $0xe4] sm:$0xf] }
 0x125   : > { %v427_v10 = vsel %vm426_vm6, %v2912_v14, %v423_v3  ;;  %957 = vmatpush.bf16.msrb.mxu2 %v1729_v9  ;;  %v2221_v1 = vor.u32 %v2359_v0, %v2220_v60  ;;  %v2299_v3 = vld [vmem:[#allocation4 + $0x14] sm:$0xf0]  ;;  %v2140_v5 = vld [vmem:[#allocation4 + $0x150] sm:$0xf]  ;;  %v2052_v9 = vld [vmem:[#allocation4 + $0xa0] sm:$0xf]  ;;  %v2037_v38 = vor.u32 %v2313_v36, %v2036_v35 }
 0x126   : > { %454 = vst [vmem:[#allocation2] sm:$0xff] %v452_v8  ;;  %v430_v50 = vmul.f32 %v427_v10, %v2574_v22  ;;  %v431_v17 = vmul.f32 %v427_v10, %v2576_v23  ;;  %v2028_v22 = vld [vmem:[#allocation4 + $0x70] sm:$0xf]  ;;  %v2311_v23 = vld [vmem:[#allocation4 + $0x74] sm:$0xf0]  ;;  %v1981_v4 = vor.u32 %v2299_v3, %v1980_v2  ;;  %v2141_v8 = vor.u32 %v2339_v6, %v2140_v5 }
 0x127   : > { %v2029_v58 = vor.u32 %v2311_v23, %v2028_v22  ;;  %v2317_v10 = vld [vmem:[#allocation4 + $0xa4] sm:$0xf0]  ;;  %v2310_v23 = vld [vmem:[#allocation4 + $0x74] sm:$0xf]  ;;  %v2188_v48 = vld [vmem:[#allocation4 + $0x1b0] sm:$0xf] }
 0x128   : > { %v440_v18 = vmul.f32 %v434_v62, %v430_v50  ;;  %v441_v19 = vmul.f32 %v435_v7, %v431_v17  ;;  %v2020_v7 = vld [vmem:[#allocation4 + $0x60] sm:$0xf]  ;;  %v2053_v50 = vor.u32 %v2317_v10, %v2052_v9  ;;  %v2357_v17 = vld [vmem:[#allocation4 + $0x1e4] sm:$0xf0]  ;;  %v2086_v53 = vld [vmem:[#allocation4 + $0xe8] sm:$0xf0] }
 0x129   : > { %v2021_v63 = vor.u32 %v2309_v30, %v2020_v7  ;;  %v2337_v22 = vld [vmem:[#allocation4 + $0x144] sm:$0xf0]  ;;  %v2355_v7 = vld [vmem:[#allocation4 + $0x1d4] sm:$0xf0]  ;;  %v2108_v57 = vld [vmem:[#allocation4 + $0x110] sm:$0xf] }
 0x12a   : > { %v450_v14 = vadd.f32 %v444_v11, %v440_v18  ;;  %v451_v20 = vadd.f32 %v445_v29, %v441_v19  ;;  %v2092_v11 = vld [vmem:[#allocation4 + $0xf0] sm:$0xf]  ;;  %v2327_v29 = vld [vmem:[#allocation4 + $0xf4] sm:$0xf0]  ;;  %v2213_v18 = vor.u32 %v2357_v17, %v2212_v13  ;;  %v1972_v19 = vld [vmem:[#allocation4] sm:$0xf] }
 0x12b   : > { %v2093_v31 = vor.u32 %v2327_v29, %v2092_v11  ;;  %v2335_v11 = vld [vmem:[#allocation4 + $0x134] sm:$0xf0]  ;;  %v3025_v29 = vld [vmem:[%s3127_s4] sm:$0xf]  ;;  %v2353_v39 = vld [vmem:[#allocation4 + $0x1c4] sm:$0xf0] }
 0x12c   : > { %v453_v21 = vpack.c.bf16 %v451_v20, %v450_v14  ;;  %v2297_v14 = vld [vmem:[#allocation4 + $0x4] sm:$0xf0]  ;;  %v2132_v20 = vld [vmem:[#allocation4 + $0x140] sm:$0xf]  ;;  %v528_v46 = vperm.slane %v3025_v29, 0  ;;  %v529_v10 = vperm.slane %v3025_v29, 1 }
 0x12d   : > { %v1708_v24 = vld [vmem:[#allocation2] sm:$0xf]  ;;  %v2230_v26 = vld [vmem:[#allocation2 + $0x4] sm:$0xf]  ;;  %v2333_v45 = vld [vmem:[#allocation4 + $0x124] sm:$0xf0] }
 0x12e   : > { %455 = vst [vmem:[#allocation2 + $0x8] sm:$0xff] %v453_v21  ;;  %v1973_v21 = vor.u32 %v2297_v14, %v1972_v19  ;;  %v2331_v59 = vld [vmem:[#allocation4 + $0x114] sm:$0xf0]  ;;  %v2304_v0 = vld [vmem:[#allocation4 + $0x44] sm:$0xf] }
 0x12f   : > { %v2180_v3 = vld [vmem:[#allocation4 + $0x1a0] sm:$0xf]  ;;  %v2078_v9 = vld [vmem:[#allocation4 + $0xd8] sm:$0xf0]  ;;  %v2329_v17 = vld [vmem:[#allocation4 + $0x104] sm:$0xf0] }
 0x130   : > { %v2302_v14 = vld [vmem:[#allocation4 + $0x34] sm:$0xf]  ;;  %v2300_v35 = vld [vmem:[#allocation4 + $0x24] sm:$0xf]  ;;  %v1990_v36 = vld [vmem:[#allocation4 + $0x28] sm:$0xf0] }
 0x135   : > { %v2231_v25 = vld [vmem:[#allocation2 + $0x4] sm:$0xf0]  ;;  %v1710_v27 = vld [vmem:[#allocation2 + $0x8] sm:$0xf0] }
 0x136   : > { %v1709_v62 = vor.u32 %v2231_v25, %v1708_v24  ;;  %v1713_v28 = vor.u32 %v2230_v26, %v1710_v27  ;;  %v2030_v24 = vld [vmem:[#allocation4 + $0x78] sm:$0xf0]  ;;  %v2133_v25 = vor.u32 %v2337_v22, %v2132_v20  ;;  %v2044_v27 = vld [vmem:[#allocation4 + $0x90] sm:$0xf] }
 0x137   : > { %v2033_v26 = vor.u32 %v2310_v23, %v2030_v24  ;;  %v1998_v20 = vld [vmem:[#allocation4 + $0x38] sm:$0xf0]  ;;  %v2172_v24 = vld [vmem:[#allocation4 + $0x190] sm:$0xf] }
 0x138   : > { %874 = vmatmul.bf16.vlgmr.msra.gmra.mxu0 %v1709_v62  ;;  %888 = vmatmul.bf16.vlgmr.msra.gmra.mxu1 %v1713_v28  ;;  %v2001_v22 = vor.u32 %v2302_v14, %v1998_v20  ;;  %v2158_v23 = vld [vmem:[#allocation4 + $0x178] sm:$0xf0] }
 0x139   : > { %902 = vmatmul.bf16.vlgmr.msra.gmra.mxu2 %v1709_v62  ;;  %916 = vmatmul.bf16.vlgmr.msra.gmra.mxu3 %v1713_v28 }
 0x13a   : > { %1442 = vmatpush.bf16.msra.mxu0 %v2029_v58  ;;  %1456 = vmatpush.bf16.msra.mxu1 %v2093_v31  ;;  %v2204_v58 = vld [vmem:[#allocation4 + $0x1d0] sm:$0xf] }
 0x13b   : > { %1470 = vmatpush.bf16.msra.mxu2 %v2157_v16  ;;  %1484 = vmatpush.bf16.msra.mxu3 %v2221_v1  ;;  %v2205_v30 = vor.u32 %v2355_v7, %v2204_v58  ;;  %v2014_v16 = vld [vmem:[#allocation4 + $0x58] sm:$0xf0]  ;;  %v2006_v1 = vld [vmem:[#allocation4 + $0x48] sm:$0xf0]  ;;  %v2320_v7 = vld [vmem:[#allocation4 + $0xc4] sm:$0xf] }
 0x13c   : > { %v2017_v47 = vor.u32 %v2306_v15, %v2014_v16  ;;  %v2009_v2 = vor.u32 %v2304_v0, %v2006_v1  ;;  %v2062_v15 = vld [vmem:[#allocation4 + $0xb8] sm:$0xf0]  ;;  %v530_v16 = vperm.slane %v3025_v29, 2 }
 0x13e   : > { %1443 = vmatpush.bf16.msra.mxu0 %v2021_v63  ;;  %1457 = vmatpush.bf16.msra.mxu1 %v2085_v37  ;;  %v2124_v63 = vld [vmem:[#allocation4 + $0x130] sm:$0xf]  ;;  %v2196_v37 = vld [vmem:[#allocation4 + $0x1c0] sm:$0xf] }
 0x13f   : > { %1471 = vmatpush.bf16.msra.mxu2 %v2149_v56  ;;  %1485 = vmatpush.bf16.msra.mxu3 %v2213_v18  ;;  %v2125_v31 = vor.u32 %v2335_v11, %v2124_v63  ;;  %v2197_v42 = vor.u32 %v2353_v39, %v2196_v37  ;;  %v2089_v56 = vor.u32 %v2324_v52, %v2086_v53  ;;  %v2340_v39 = vld [vmem:[#allocation4 + $0x164] sm:$0xf] }
 0x142   : > { %1444 = vmatpush.bf16.msra.mxu0 %v2013_v34  ;;  %1458 = vmatpush.bf16.msra.mxu1 %v2077_v43  ;;  %v2025_v34 = vor.u32 %v2308_v32, %v2022_v33 }
 0x143   : > { %1472 = vmatpush.bf16.msra.mxu2 %v2141_v8  ;;  %1486 = vmatpush.bf16.msra.mxu3 %v2205_v30  ;;  %v2322_v8 = vld [vmem:[#allocation4 + $0xd4] sm:$0xf]  ;;  %v2070_v30 = vld [vmem:[#allocation4 + $0xc8] sm:$0xf0] }
 0x144   : > { %v2081_v13 = vor.u32 %v2322_v8, %v2078_v9  ;;  %v2073_v32 = vor.u32 %v2320_v7, %v2070_v30  ;;  %v2356_v8 = vld [vmem:[#allocation4 + $0x1e4] sm:$0xf]  ;;  %v2314_v7 = vld [vmem:[#allocation4 + $0x94] sm:$0xf]  ;;  %v2046_v30 = vld [vmem:[#allocation4 + $0x98] sm:$0xf0] }
 0x146   : > { %1445 = vmatpush.bf16.msra.mxu0 %v2005_v40  ;;  %1459 = vmatpush.bf16.msra.mxu1 %v2069_v49  ;;  %v2326_v40 = vld [vmem:[#allocation4 + $0xf4] sm:$0xf]  ;;  %v2351_v49 = vld [vmem:[#allocation4 + $0x1b4] sm:$0xf0] }
 0x147   : > { %1473 = vmatpush.bf16.msra.mxu2 %v2133_v25  ;;  %v2097_v43 = vor.u32 %v2326_v40, %v2094_v41  ;;  %1487 = vmatpush.bf16.msra.mxu3 %v2197_v42  ;;  %v2189_v51 = vor.u32 %v2351_v49, %v2188_v48  ;;  %v2347_v25 = vld [vmem:[#allocation4 + $0x194] sm:$0xf0]  ;;  %v2150_v40 = vld [vmem:[#allocation4 + $0x168] sm:$0xf0]  ;;  %v2164_v41 = vld [vmem:[#allocation4 + $0x180] sm:$0xf] }
 0x148   : > { %930 = vmatmul.bf16.vlgmr.msrb.gmra.mxu0 %v1709_v62  ;;  %944 = vmatmul.bf16.vlgmr.msrb.gmra.mxu1 %v1713_v28  ;;  %v2173_v58 = vor.u32 %v2347_v25, %v2172_v24  ;;  %v2358_v49 = vld [vmem:[#allocation4 + $0x1f4] sm:$0xf] }
 0x149   : > { %958 = vmatmul.bf16.vlgmr.msrb.gmra.mxu2 %v1709_v62  ;;  %972 = vmatmul.bf16.vlgmr.msrb.gmra.mxu3 %v1713_v28  ;;  %v2315_v62 = vld [vmem:[#allocation4 + $0x94] sm:$0xf0] }
 0x14a   : > { %1446 = vmatpush.bf16.msra.mxu0 %v1997_v12  ;;  %1460 = vmatpush.bf16.msra.mxu1 %v2061_v61  ;;  %v2045_v28 = vor.u32 %v2315_v62, %v2044_v27  ;;  %v2117_v12 = vor.u32 %v2333_v45, %v2116_v44  ;;  %v2109_v61 = vor.u32 %v2331_v59, %v2108_v57  ;;  %v2345_v45 = vld [vmem:[#allocation4 + $0x184] sm:$0xf0] }
 0x14b   : > { %1474 = vmatpush.bf16.msra.mxu2 %v2125_v31  ;;  %1488 = vmatpush.bf16.msra.mxu3 %v2189_v51  ;;  %v2153_v44 = vor.u32 %v2340_v39, %v2150_v40  ;;  %v2222_v51 = vld [vmem:[#allocation4 + $0x1f8] sm:$0xf0]  ;;  %v2334_v39 = vld [vmem:[#allocation4 + $0x134] sm:$0xf] }
 0x14c   : > { %v2126_v40 = vld [vmem:[#allocation4 + $0x138] sm:$0xf0] }
 0x14e   : > { %1447 = vmatpush.bf16.msra.mxu0 %v1989_v54  ;;  %1461 = vmatpush.bf16.msra.mxu1 %v2053_v50  ;;  %v2100_v50 = vld [vmem:[#allocation4 + $0x100] sm:$0xf] }
 0x14f   : > { %1475 = vmatpush.bf16.msra.mxu2 %v2117_v12  ;;  %v2101_v19 = vor.u32 %v2329_v17, %v2100_v50  ;;  %v2318_v12 = vld [vmem:[#allocation4 + $0xb4] sm:$0xf] }
 0x150   : > { %v2065_v48 = vor.u32 %v2318_v12, %v2062_v15 }
 0x152   : > { %1448 = vmatpush.bf16.msra.mxu0 %v1981_v4  ;;  %1462 = vmatpush.bf16.msra.mxu1 %v2045_v28  ;;  %v2349_v4 = vld [vmem:[#allocation4 + $0x1a4] sm:$0xf0] }
 0x153   : > { %v2181_v6 = vor.u32 %v2349_v4, %v2180_v3  ;;  %1476 = vmatpush.bf16.msra.mxu2 %v2109_v61  ;;  %v2142_v61 = vld [vmem:[#allocation4 + $0x158] sm:$0xf0]  ;;  %v2316_v4 = vld [vmem:[#allocation4 + $0xa4] sm:$0xf] }
 0x155   : > { %1489 = vmatpush.bf16.msra.mxu3 %v2181_v6  ;;  %v2054_v6 = vld [vmem:[#allocation4 + $0xa8] sm:$0xf0] }
 0x156   : > { %1449 = vmatpush.bf16.msra.mxu0 %v1973_v21  ;;  %1463 = vmatpush.bf16.msra.mxu1 %v2037_v38  ;;  %v2342_v21 = vld [vmem:[#allocation4 + $0x174] sm:$0xf]  ;;  %v1993_v38 = vor.u32 %v2300_v35, %v1990_v36 }
 0x157   : > { %v2161_v28 = vor.u32 %v2342_v21, %v2158_v23  ;;  %1477 = vmatpush.bf16.msra.mxu2 %v2101_v19  ;;  %v2214_v19 = vld [vmem:[#allocation4 + $0x1e8] sm:$0xf0] }
 0x158   : > { %v2217_v21 = vor.u32 %v2356_v8, %v2214_v19  ;;  %v1974_v23 = vld [vmem:[#allocation4 + $0x8] sm:$0xf0]  ;;  %v2350_v8 = vld [vmem:[#allocation4 + $0x1b4] sm:$0xf] }
 0x159   : > { %1490 = vmatpush.bf16.msra.mxu3 %v2173_v58 }
 0x15a   : > { %1498 = vmatpush.bf16.msrb.mxu0 %v2033_v26  ;;  %1512 = vmatpush.bf16.msrb.mxu1 %v2097_v43 }
 0x15b   : > { %1526 = vmatpush.bf16.msrb.mxu2 %v2161_v28 }
 0x15e   : > { %1499 = vmatpush.bf16.msrb.mxu0 %v2025_v34  ;;  %1513 = vmatpush.bf16.msrb.mxu1 %v2089_v56  ;;  %v1982_v56 = vld [vmem:[#allocation4 + $0x18] sm:$0xf0] }
 0x15f   : > { %1527 = vmatpush.bf16.msrb.mxu2 %v2153_v44 }
 0x162   : > { %1500 = vmatpush.bf16.msrb.mxu0 %v2017_v47  ;;  %1514 = vmatpush.bf16.msrb.mxu1 %v2081_v13  ;;  %v2165_v47 = vor.u32 %v2345_v45, %v2164_v41 }
 0x164   : > { %1491 = vmatpush.bf16.msra.mxu3 %v2165_v47  ;;  %v2038_v47 = vld [vmem:[#allocation4 + $0x88] sm:$0xf0] }
 0x166   : > { %1501 = vmatpush.bf16.msrb.mxu0 %v2009_v2  ;;  %1515 = vmatpush.bf16.msrb.mxu1 %v2073_v32  ;;  %v531_v32 = vperm.slane %v3025_v29, 3 }
 0x16a   : > { %1502 = vmatpush.bf16.msrb.mxu0 %v2001_v22  ;;  %1516 = vmatpush.bf16.msrb.mxu1 %v2065_v48  ;;  %v2296_v22 = vld [vmem:[#allocation4 + $0x4] sm:$0xf] }
 0x16b   : > { %v2352_v48 = vld [vmem:[#allocation4 + $0x1c4] sm:$0xf] }
 0x16e   : > { %1503 = vmatpush.bf16.msrb.mxu0 %v1993_v38 }
 0x1b5   : > { %v875_v54 = vpop.f32.mrf.mxu0  ;;  %v889_v55 = vpop.f32.mrf.mxu1 }
 0x1b6   : > { %v876_v60 = vadd.f32 %v875_v54, %v528_v46  ;;  %v2225_v54 = vor.u32 %v2358_v49, %v2222_v51 }
 0x1b8   : > { %v3030_v5 = vadd.f32 %v889_v55, %v876_v60  ;;  %v2298_v55 = vld [vmem:[#allocation4 + $0x14] sm:$0xf]  ;;  %1540 = vmatpush.bf16.msrb.mxu3 %v2225_v54  ;;  %v2198_v54 = vld [vmem:[#allocation4 + $0x1c8] sm:$0xf0] }
 0x1b9   : > { %v1985_v59 = vor.u32 %v2298_v55, %v1982_v56  ;;  %v2338_v60 = vld [vmem:[#allocation4 + $0x154] sm:$0xf] }
 0x1ba   : > { %v978_v18 = vmul.f32 %v3030_v5, %v3030_v5  ;;  %v2145_v3 = vor.u32 %v2338_v60, %v2142_v61  ;;  %v2118_v60 = vld [vmem:[#allocation4 + $0x128] sm:$0xf0] }
 0x1bb   : > { %1504 = vmatpush.bf16.msrb.mxu0 %v1985_v59  ;;  %v2332_v59 = vld [vmem:[#allocation4 + $0x124] sm:$0xf] }
 0x1bc   : > { %v986_v26 = vmul.f32 %v978_v18, %v3030_v5  ;;  %v903_v27 = vpop.f32.mrf.mxu2  ;;  %v917_v62 = vpop.f32.mrf.mxu3  ;;  %v2057_v18 = vor.u32 %v2316_v4, %v2054_v6  ;;  %1528 = vmatpush.bf16.msrb.mxu2 %v2145_v3  ;;  %1541 = vmatpush.bf16.msrb.mxu3 %v2217_v21  ;;  %v2121_v3 = vor.u32 %v2332_v59, %v2118_v60 }
 0x1bd   : > { %v904_v63 = vadd.f32 %v903_v27, %v529_v10  ;;  %v877_v11 = vpop.f32.mrf.mxu0  ;;  %v891_v31 = vpop.f32.mrf.mxu1  ;;  %v2134_v27 = vld [vmem:[#allocation4 + $0x148] sm:$0xf0] }
 0x1be   : > { %v994_v33 = vmul.f32 0.044715, %v986_v26  ;;  %v878_v34 = vadd.f32 %v877_v11, %v528_v46  ;;  %1517 = vmatpush.bf16.msrb.mxu1 %v2057_v18  ;;  %v2336_v26 = vld [vmem:[#allocation4 + $0x144] sm:$0xf] }
 0x1bf   : > { %v3040_v37 = vadd.f32 %v917_v62, %v904_v63  ;;  %v2137_v58 = vor.u32 %v2336_v26, %v2134_v27  ;;  %v2354_v63 = vld [vmem:[#allocation4 + $0x1d4] sm:$0xf] }
 0x1c0   : > { %v1002_v42 = vadd.f32 %v994_v33, %v3030_v5  ;;  %v3043_v43 = vadd.f32 %v891_v31, %v878_v34  ;;  %v2049_v33 = vor.u32 %v2314_v7, %v2046_v30  ;;  %v2206_v34 = vld [vmem:[#allocation4 + $0x1d8] sm:$0xf0]  ;;  %v2182_v7 = vld [vmem:[#allocation4 + $0x1a8] sm:$0xf0]  ;;  %v2328_v30 = vld [vmem:[#allocation4 + $0x104] sm:$0xf] }
 0x1c1   : > { %v979_v46 = vmul.f32 %v3040_v37, %v3040_v37  ;;  %1529 = vmatpush.bf16.msrb.mxu2 %v2137_v58  ;;  %v2209_v38 = vor.u32 %v2354_v63, %v2206_v34  ;;  %v2102_v34 = vld [vmem:[#allocation4 + $0x108] sm:$0xf0] }
 0x1c2   : > { %v1010_v52 = vmul.f32 0.7978846, %v1002_v42  ;;  %v982_v53 = vmul.f32 %v3043_v43, %v3043_v43  ;;  %1518 = vmatpush.bf16.msrb.mxu1 %v2049_v33  ;;  %v2129_v42 = vor.u32 %v2334_v39, %v2126_v40  ;;  %v2346_v39 = vld [vmem:[#allocation4 + $0x194] sm:$0xf]  ;;  %v2174_v40 = vld [vmem:[#allocation4 + $0x198] sm:$0xf0] }
 0x1c3   : > { %v987_v57 = vmul.f32 %v979_v46, %v3040_v37  ;;  %1542 = vmatpush.bf16.msrb.mxu3 %v2209_v38  ;;  %v2312_v46 = vld [vmem:[#allocation4 + $0x84] sm:$0xf]  ;;  %v2105_v38 = vor.u32 %v2328_v30, %v2102_v34  ;;  %v2177_v29 = vor.u32 %v2346_v39, %v2174_v40 }
 0x1c4   : > { %v990_v0 = vmul.f32 %v982_v53, %v3043_v43  ;;  %v905_v1 = vpop.f32.mrf.mxu2  ;;  %v919_v2 = vpop.f32.mrf.mxu3  ;;  %2404 = vtanh.f32 %v1010_v52  ;;  %v2041_v53 = vor.u32 %v2312_v46, %v2038_v47 }
 0x1c5   : > { %v995_v9 = vmul.f32 0.044715, %v987_v57  ;;  %v906_v13 = vadd.f32 %v905_v1, %v529_v10  ;;  %v931_v50 = vpop.f32.mrf.mxu0  ;;  %v945_v17 = vpop.f32.mrf.mxu1  ;;  %v1977_v10 = vor.u32 %v2296_v22, %v1974_v23  ;;  %1530 = vmatpush.bf16.msrb.mxu2 %v2129_v42  ;;  %v2201_v57 = vor.u32 %v2352_v48, %v2198_v54 }
 0x1c6   : > { %v998_v14 = vmul.f32 0.044715, %v990_v0  ;;  %v932_v20 = vadd.f32 %v931_v50, %v530_v16  ;;  %1519 = vmatpush.bf16.msrb.mxu1 %v2041_v53  ;;  %v2166_v53 = vld [vmem:[#allocation4 + $0x188] sm:$0xf0] }
 0x1c7   : > { %v1003_v24 = vadd.f32 %v995_v9, %v3040_v37  ;;  %v3057_v25 = vadd.f32 %v919_v2, %v906_v13  ;;  %1505 = vmatpush.bf16.msrb.mxu0 %v1977_v10  ;;  %1543 = vmatpush.bf16.msrb.mxu3 %v2201_v57  ;;  %v2190_v9 = vld [vmem:[#allocation4 + $0x1b8] sm:$0xf0]  ;;  %v2348_v10 = vld [vmem:[#allocation4 + $0x1a4] sm:$0xf] }
 0x1c8   : > { %v1006_v62 = vadd.f32 %v998_v14, %v3043_v43  ;;  %v3060_v28 = vadd.f32 %v945_v17, %v932_v20  ;;  %v2193_v17 = vor.u32 %v2350_v8, %v2190_v9  ;;  %v2330_v20 = vld [vmem:[#allocation4 + $0x114] sm:$0xf]  ;;  %v2185_v33 = vor.u32 %v2348_v10, %v2182_v7 }
 0x1c9   : > { %v1011_v11 = vmul.f32 0.7978846, %v1003_v24  ;;  %v983_v31 = vmul.f32 %v3057_v25, %v3057_v25  ;;  %1531 = vmatpush.bf16.msrb.mxu2 %v2121_v3  ;;  %v2110_v24 = vld [vmem:[#allocation4 + $0x118] sm:$0xf0] }
 0x1ca   : > { %v1014_v35 = vmul.f32 0.7978846, %v1006_v62  ;;  %v980_v36 = vmul.f32 %v3060_v28, %v3060_v28  ;;  %v2405_v44 = vpop.eup %2404  ;;  %v2113_v58 = vor.u32 %v2330_v20, %v2110_v24 }
 0x1cb   : > { %2406 = vtanh.f32 %v1011_v11  ;;  %v991_v41 = vmul.f32 %v983_v31, %v3057_v25  ;;  %v1026_v61 = vadd.f32 1.0, %v2405_v44  ;;  %1544 = vmatpush.bf16.msrb.mxu3 %v2193_v17 }
 0x1cc   : > { %2408 = vtanh.f32 %v1014_v35  ;;  %v988_v45 = vmul.f32 %v980_v36, %v3060_v28  ;;  %v959_v12 = vpop.f32.mrf.mxu2  ;;  %v973_v15 = vpop.f32.mrf.mxu3 }
 0x1cd   : > { %v999_v49 = vmul.f32 0.044715, %v991_v41  ;;  %v960_v51 = vadd.f32 %v959_v12, %v531_v32  ;;  %v933_v52 = vpop.f32.mrf.mxu0  ;;  %v947_v2 = vpop.f32.mrf.mxu1  ;;  %v1034_v21 = vmul.f32 0.5, %v1026_v61  ;;  %1532 = vmatpush.bf16.msrb.mxu2 %v2113_v58 }
 0x1ce   : > { %v996_v55 = vmul.f32 0.044715, %v988_v45  ;;  %v934_v56 = vadd.f32 %v933_v52, %v530_v16 }
 0x1cf   : > { %v1007_v0 = vadd.f32 %v999_v49, %v3057_v25  ;;  %v3074_v1 = vadd.f32 %v973_v15, %v960_v51  ;;  %v1042_v41 = vmul.f32 %v1034_v21, %v3030_v5  ;;  %1545 = vmatpush.bf16.msrb.mxu3 %v2185_v33  ;;  %v2344_v5 = vld [vmem:[#allocation4 + $0x184] sm:$0xf] }
 0x1d0   : > { %v1004_v4 = vadd.f32 %v996_v55, %v3060_v28  ;;  %v3077_v6 = vadd.f32 %v947_v2, %v934_v56  ;;  %v2169_v55 = vor.u32 %v2344_v5, %v2166_v53 }
 0x1d1   : > { %v2407_v16 = vpop.eup %2406  ;;  %v1015_v13 = vmul.f32 0.7978846, %v1007_v0  ;;  %v981_v50 = vmul.f32 %v3074_v1, %v3074_v1  ;;  %1533 = vmatpush.bf16.msrb.mxu2 %v2105_v38 }
 0x1d2   : > { %v2409_v18 = vpop.eup %2408  ;;  %v1012_v19 = vmul.f32 0.7978846, %v1004_v4  ;;  %v984_v14 = vmul.f32 %v3077_v6, %v3077_v6  ;;  %v1027_v26 = vadd.f32 1.0, %v2407_v16 }
 0x1d3   : > { %v1030_v22 = vadd.f32 1.0, %v2409_v18  ;;  %2410 = vtanh.f32 %v1015_v13  ;;  %v989_v23 = vmul.f32 %v981_v50, %v3074_v1  ;;  %1546 = vmatpush.bf16.msrb.mxu3 %v2177_v29 }
 0x1d4   : > { %v992_v27 = vmul.f32 %v984_v14, %v3077_v6  ;;  %v961_v62 = vpop.f32.mrf.mxu2  ;;  %2412 = vtanh.f32 %v1012_v19  ;;  %v975_v36 = vpop.f32.mrf.mxu3  ;;  %v1035_v48 = vmul.f32 0.5, %v1027_v26  ;;  %v1569_v26 = vld [vmem:[%s3129_s6] sm:$0x3] }
 0x1d5   : > { %v1038_v63 = vmul.f32 0.5, %v1030_v22  ;;  %v997_v11 = vmul.f32 0.044715, %v989_v23  ;;  %v962_v31 = vadd.f32 %v961_v62, %v531_v32  ;;  %v1571_v7 = vperm.slane %v1569_v26, 0 }
 0x1d6   : > { %v1000_v35 = vmul.f32 0.044715, %v992_v27  ;;  %v1043_v57 = vmul.f32 %v1035_v48, %v3040_v37 }
 0x1d7   : > { %v1046_v42 = vmul.f32 %v1038_v63, %v3043_v43  ;;  %v1005_v44 = vadd.f32 %v997_v11, %v3074_v1  ;;  %v976_v45 = vadd.f32 %v975_v36, %v962_v31  ;;  %1547 = vmatpush.bf16.msrb.mxu3 %v2169_v55  ;;  %v2420_v63 = vld [vmem:[%s2556_s17] sm:$0xff]  ;;  %v2423_v55 = vld [vmem:[%s2556_s17 + $0x18] sm:$0xff] }
 0x1d8   : > { %v1008_v12 = vadd.f32 %v1000_v35, %v3077_v6 }
 0x1d9   : > { %v2411_v32 = vpop.eup %2410  ;;  %v1013_v15 = vmul.f32 0.7978846, %v1005_v44  ;;  %v985_v46 = vmul.f32 %v976_v45, %v976_v45  ;;  %v1054_v47 = vpack.c.bf16 %v1046_v42, %v1042_v41  ;;  %v2421_v41 = vld [vmem:[%s2556_s17 + $0x10] sm:$0xff] }
 0x1da   : > { %v1031_v49 = vadd.f32 1.0, %v2411_v32  ;;  %v1016_v51 = vmul.f32 0.7978846, %v1008_v12  ;;  %v2413_v43 = vpop.eup %2412 }
 0x1db   : > { %v993_v52 = vmul.f32 %v985_v46, %v976_v45  ;;  %1450 = vmatmul.bf16.vlgmr.msra.gmra.mxu0 %v1054_v47  ;;  %v1028_v60 = vadd.f32 1.0, %v2413_v43 }
 0x1dc   : > { %v1039_v54 = vmul.f32 0.5, %v1031_v49  ;;  %2414 = vtanh.f32 %v1016_v51 }
 0x1dd   : > { %2416 = vtanh.f32 %v1013_v15  ;;  %v1001_v56 = vmul.f32 0.044715, %v993_v52  ;;  %v1036_v8 = vmul.f32 0.5, %v1028_v60  ;;  %v1572_v15 = vperm.slane %v1569_v26, 1 }
 0x1de   : > { %v1047_v59 = vmul.f32 %v1039_v54, %v3057_v25 }
 0x1df   : > { %v1009_v61 = vadd.f32 %v1001_v56, %v976_v45  ;;  %v1044_v50 = vmul.f32 %v1036_v8, %v3060_v28 }
 0x1e0   : > { %v1055_v0 = vpack.c.bf16 %v1047_v59, %v1043_v57 }
 0x1e1   : > { %v1017_v2 = vmul.f32 0.7978846, %v1009_v61 }
 0x1e2   : > { %v2415_v3 = vpop.eup %2414  ;;  %1464 = vmatmul.bf16.vlgmr.msra.gmra.mxu1 %v1055_v0 }
 0x1e3   : > { %v2417_v4 = vpop.eup %2416  ;;  %v1032_v9 = vadd.f32 1.0, %v2415_v3  ;;  %2418 = vtanh.f32 %v1017_v2 }
 0x1e4   : > { %v1029_v13 = vadd.f32 1.0, %v2417_v4 }
 0x1e5   : > { %v1040_v16 = vmul.f32 0.5, %v1032_v9 }
 0x1e6   : > { %v1037_v25 = vmul.f32 0.5, %v1029_v13 }
 0x1e7   : > { %v1048_v17 = vmul.f32 %v1040_v16, %v3077_v6 }
 0x1e8   : > { %v1045_v20 = vmul.f32 %v1037_v25, %v3074_v1 }
 0x1e9   : > { %v2419_v37 = vpop.eup %2418  ;;  %v1056_v18 = vpack.c.bf16 %v1048_v17, %v1044_v50 }
 0x1ea   : > { %v1033_v19 = vadd.f32 1.0, %v2419_v37 }
 0x1eb   : > { %1478 = vmatmul.bf16.vlgmr.msra.gmra.mxu2 %v1056_v18  ;;  %1506 = vmatmul.bf16.vlgmr.msrb.gmra.mxu0 %v1054_v47  ;;  %v2422_v47 = vld [vmem:[%s2556_s17 + $0x8] sm:$0xff] }
 0x1ec   : > { %v1041_v14 = vmul.f32 0.5, %v1033_v19 }
 0x1ee   : > { %v1049_v21 = vmul.f32 %v1041_v14, %v976_v45 }
 0x1f0   : > { %v1057_v22 = vpack.c.bf16 %v1049_v21, %v1045_v20 }
 0x1f2   : > { %1492 = vmatmul.bf16.vlgmr.msra.gmra.mxu3 %v1057_v22  ;;  %1520 = vmatmul.bf16.vlgmr.msrb.gmra.mxu1 %v1055_v0 }
 0x1fb   : > { %1534 = vmatmul.bf16.vlgmr.msrb.gmra.mxu2 %v1056_v18 }
 0x202   : > { %1548 = vmatmul.bf16.vlgmr.msrb.gmra.mxu3 %v1057_v22 }
 0x258   : > { %v1451_v23 = vpop.f32.mrf.mxu0 }
 0x25f   : > { %v1465_v28 = vpop.f32.mrf.mxu1 }
 0x260   : > { %v1466_v24 = vadd.f32 %v1465_v28, %v1451_v23  ;;  %v1453_v62 = vpop.f32.mrf.mxu0 }
 0x267   : > { %v1467_v10 = vpop.f32.mrf.mxu1 }
 0x268   : > { %v1468_v31 = vadd.f32 %v1467_v10, %v1453_v62  ;;  %v1507_v39 = vpop.f32.mrf.mxu0 }
 0x26e   : > { %v1479_v6 = vpop.f32.mrf.mxu2 }
 0x26f   : > { %v1480_v27 = vadd.f32 %v1479_v6, %v1466_v24  ;;  %v1521_v35 = vpop.f32.mrf.mxu1 }
 0x270   : > { %v1522_v44 = vadd.f32 %v1521_v35, %v1507_v39  ;;  %v1509_v49 = vpop.f32.mrf.mxu0 }
 0x275   : > { %v1493_v1 = vpop.f32.mrf.mxu3 }
 0x276   : > { %v1494_v58 = vadd.f32 %v1493_v1, %v1480_v27  ;;  %v1481_v30 = vpop.f32.mrf.mxu2 }
 0x277   : > { %v1482_v34 = vadd.f32 %v1481_v30, %v1468_v31  ;;  %v1523_v46 = vpop.f32.mrf.mxu1 }
 0x278   : > { %v1554_v11 = vadd.f32 %v2420_v63, %v1494_v58  ;;  %v1524_v52 = vadd.f32 %v1523_v46, %v1509_v49 }
 0x27a   : > { %v1575_v33 = vadd.f32 %v1571_v7, %v1554_v11 }
 0x27c   : > { %1579 = vst [vmem:[%s3105_s9] sm:$0xff] %v1575_v33 }
 0x27d   : > { %v1495_v36 = vpop.f32.mrf.mxu3 }
 0x27e   : > { %v1496_v38 = vadd.f32 %v1495_v36, %v1482_v34  ;;  %v1535_v40 = vpop.f32.mrf.mxu2 }
 0x27f   : > { %v1536_v12 = vadd.f32 %v1535_v40, %v1522_v44 }
 0x280   : > { %v1556_v42 = vadd.f32 %v2421_v41, %v1496_v38 }
 0x282   : > { %v1577_v45 = vadd.f32 %v1571_v7, %v1556_v42 }
 0x284   : > { %1581 = vst [vmem:[%s3105_s9 + $0x10] sm:$0xff] %v1577_v45 }
 0x285   : > { %v1549_v29 = vpop.f32.mrf.mxu3 }
 0x286   : > { %v1550_v32 = vadd.f32 %v1549_v29, %v1536_v12  ;;  %v1537_v51 = vpop.f32.mrf.mxu2 }
 0x287   : > { %v1538_v53 = vadd.f32 %v1537_v51, %v1524_v52 }
 0x288   : > { %v1555_v48 = vadd.f32 %v2422_v47, %v1550_v32 }
 0x28a   : > { %v1576_v5 = vadd.f32 %v1572_v15, %v1555_v48 }
 0x28c   : > { %1580 = vst [vmem:[%s3105_s9 + $0x8] sm:$0xff] %v1576_v5 }
 0x28d   : > { %v1551_v43 = vpop.f32.mrf.mxu3 }
 0x28e   : > { %v1552_v54 = vadd.f32 %v1551_v43, %v1538_v53 }
 0x290   : > { %v1557_v56 = vadd.f32 %v2423_v55, %v1552_v54 }
 0x292   : > { %v1578_v57 = vadd.f32 %v1572_v15, %v1557_v56 }
 0x294   : > { %1582 = vst [vmem:[%s3105_s9 + $0x18] sm:$0xff] %v1578_v57 }
 0x295 PF: > { %s18_s26 = sadd.s32 1, %s2480_s26   ;;  %s3131_s24 = smov %s2476_s25 }
 0x296   : > { %p15_p8 = scmp.ge.s32.totalorder %s18_s26, 4   ;;  %s3132_s25 = smov %s3134_s28 }
 0x298   :  { %17 = sbr.rel (!%p15_p8) target bundleno = 2 (0x2), region = 98 }
 0x29d   :  { %1607 = vsyncpa [#allocation5], 1 }
 0x29e   :  { %1609 = vsyncpa [#allocation5 + $0x1], 1 }

// kernel: visualbert_resmlp_prediction.13
= control target key start
LH: loop header
LB: loop body
LE: loop exit
PB: predicated region body
PF: predicated region fallthrough
CT: control target
= control target key end

     0   :  { %18 = vsyncpa [#allocation3], 0  ;;  %s2512_s0 = inlined_call_operand.vmem [shape: f32[2,256], index: 0, kind: input, shape index: {}]   ;;  %s2513_s1 = inlined_call_operand.vmem [shape: bf16[256,256], index: 1, kind: input, shape index: {}]   ;;  %s2514_s2 = inlined_call_operand.vmem [shape: f32[1,256], index: 2, kind: input, shape index: {}]   ;;  %s2515_s3 = inlined_call_operand.vmem [shape: bf16[256,10], index: 3, kind: input, shape index: {}]   ;;  %s2516_s4 = inlined_call_operand.vmem [shape: f32[1,10], index: 4, kind: input, shape index: {}]   ;;  %s2517_s5 = inlined_call_operand.vmem [shape: bf16[256,256], index: 5, kind: input, shape index: {}]   ;;  %s2518_s6 = inlined_call_operand.vmem [shape: f32[1,256], index: 6, kind: input, shape index: {}]   ;;  %s2519_s7 = inlined_call_operand.hbm [shape: bf16[256,256], index: 7, kind: input, shape index: {}]   ;;  %s2520_s8 = inlined_call_operand.vmem [shape: f32[1,256], index: 8, kind: input, shape index: {}]   ;;  %s2521_s9 = inlined_call_operand.vmem [shape: bf16[256,4], index: 9, kind: input, shape index: {}]   ;;  %s2522_s10 = inlined_call_operand.vmem [shape: f32[1,4], index: 10, kind: input, shape index: {}]   ;;  %s2523_s11 = inlined_call_operand.hbm [shape: f32[2,10], index: 11, kind: output, shape index: {0}]   ;;  %s2524_s12 = inlined_call_operand.hbm [shape: f32[2,4], index: 12, kind: output, shape index: {1}]  }
   0x1   :  { %19 = vsyncpa [#allocation4], 0 }
   0x2   :  { %20 = vsyncpa [#allocation7], 0  ;;  %s39_s23 = sshll.u32 %s2519_s7, 4  ;;  %s1935_s24 = smov [#allocation2]   ;;  %s40_s23 = int_to_ptr.hbm [resolvable:$true] %s39_s23 }
   0x3   :  { %s41_s25 = sshll.u32 %s1935_s24, 4  ;;  %s1936_s26 = smov 128   ;;  %s42_s25 = int_to_ptr.vmem [resolvable:$true] %s41_s25 }
   0x4   :  { %s1937_s27 = smov 8  }
   0x5   :  { %47 = dma.hbm_to_vmem [thread:$0]  %s40_s23, 4096, %s42_s25, [#allocation3], %s1936_s26, %s1936_s26, %s1937_s27  }
   0x6   :  { %1929 = dma.done.wait [#allocation3], 4096  }
   0x7   :  { %1930 = vsyncadd [#allocation3], 4294963200  ;;  %v1259_v0 = vld [vmem:[%s2513_s1 + $0x70] sm:$0xf]  ;;  %v1729_v1 = vld [vmem:[%s2513_s1 + $0x74] sm:$0xf0] }
   0x8   :  { %v1323_v2 = vld [vmem:[%s2513_s1 + $0xf0] sm:$0xf]  ;;  %v1260_v3 = vor.u32 %v1729_v1, %v1259_v0  ;;  %v1745_v4 = vld [vmem:[%s2513_s1 + $0xf4] sm:$0xf0]  ;;  %v1728_v5 = vld [vmem:[%s2513_s1 + $0x74] sm:$0xf] }
   0x9   :  { %v1261_v6 = vld [vmem:[%s2513_s1 + $0x78] sm:$0xf0]  ;;  %v1324_v7 = vor.u32 %v1745_v4, %v1323_v2  ;;  %v1744_v9 = vld [vmem:[%s2513_s1 + $0xf4] sm:$0xf]  ;;  %v1251_v11 = vld [vmem:[%s2513_s1 + $0x60] sm:$0xf] }
   0xa   :  { %v1264_v8 = vor.u32 %v1728_v5, %v1261_v6  ;;  %v1325_v10 = vld [vmem:[%s2513_s1 + $0xf8] sm:$0xf0]  ;;  %265 = vmatpush.bf16.msra.mxu0 %v1260_v3  ;;  %v1727_v13 = vld [vmem:[%s2513_s1 + $0x64] sm:$0xf0]  ;;  %v1315_v14 = vld [vmem:[%s2513_s1 + $0xe0] sm:$0xf] }
   0xb   :  { %v1328_v12 = vor.u32 %v1744_v9, %v1325_v10  ;;  %v1743_v15 = vld [vmem:[%s2513_s1 + $0xe4] sm:$0xf0]  ;;  %278 = vmatpush.bf16.msra.mxu1 %v1324_v7  ;;  %v1252_v16 = vor.u32 %v1727_v13, %v1251_v11  ;;  %v1726_v18 = vld [vmem:[%s2513_s1 + $0x64] sm:$0xf]  ;;  %v1253_v19 = vld [vmem:[%s2513_s1 + $0x68] sm:$0xf0] }
   0xc   :  { %291 = vmatpush.bf16.msra.mxu2 %v1264_v8  ;;  %v1316_v17 = vor.u32 %v1743_v15, %v1315_v14  ;;  %v1742_v20 = vld [vmem:[%s2513_s1 + $0xe4] sm:$0xf]  ;;  %v1256_v21 = vor.u32 %v1726_v18, %v1253_v19  ;;  %v1317_v22 = vld [vmem:[%s2513_s1 + $0xe8] sm:$0xf0]  ;;  %v1243_v23 = vld [vmem:[%s2513_s1 + $0x50] sm:$0xf] }
   0xd   :  { %304 = vmatpush.bf16.msra.mxu3 %v1328_v12  ;;  %v1725_v24 = vld [vmem:[%s2513_s1 + $0x54] sm:$0xf0]  ;;  %v1320_v25 = vor.u32 %v1742_v20, %v1317_v22  ;;  %v1307_v26 = vld [vmem:[%s2513_s1 + $0xd0] sm:$0xf]  ;;  %v1724_v28 = vld [vmem:[%s2513_s1 + $0x54] sm:$0xf] }
   0xe   :  { %v1741_v27 = vld [vmem:[%s2513_s1 + $0xd4] sm:$0xf0]  ;;  %266 = vmatpush.bf16.msra.mxu0 %v1252_v16  ;;  %v1244_v29 = vor.u32 %v1725_v24, %v1243_v23  ;;  %v1245_v30 = vld [vmem:[%s2513_s1 + $0x58] sm:$0xf0]  ;;  %v1740_v31 = vld [vmem:[%s2513_s1 + $0xd4] sm:$0xf] }
   0xf   :  { %v1309_v32 = vld [vmem:[%s2513_s1 + $0xd8] sm:$0xf0]  ;;  %279 = vmatpush.bf16.msra.mxu1 %v1316_v17  ;;  %v1308_v33 = vor.u32 %v1741_v27, %v1307_v26  ;;  %v1248_v34 = vor.u32 %v1724_v28, %v1245_v30  ;;  %v1235_v35 = vld [vmem:[%s2513_s1 + $0x40] sm:$0xf]  ;;  %v1723_v36 = vld [vmem:[%s2513_s1 + $0x44] sm:$0xf0] }
  0x10   :  { %292 = vmatpush.bf16.msra.mxu2 %v1256_v21  ;;  %v1299_v37 = vld [vmem:[%s2513_s1 + $0xc0] sm:$0xf]  ;;  %v1312_v38 = vor.u32 %v1740_v31, %v1309_v32  ;;  %v1739_v39 = vld [vmem:[%s2513_s1 + $0xc4] sm:$0xf0]  ;;  %v1722_v40 = vld [vmem:[%s2513_s1 + $0x44] sm:$0xf]  ;;  %v1236_v44 = vor.u32 %v1723_v36, %v1235_v35 }
  0x11   :  { %305 = vmatpush.bf16.msra.mxu3 %v1320_v25  ;;  %v1237_v41 = vld [vmem:[%s2513_s1 + $0x48] sm:$0xf0]  ;;  %v1738_v42 = vld [vmem:[%s2513_s1 + $0xc4] sm:$0xf]  ;;  %v1300_v45 = vor.u32 %v1739_v39, %v1299_v37  ;;  %v1227_v47 = vld [vmem:[%s2513_s1 + $0x30] sm:$0xf] }
  0x12   :  { %v1301_v43 = vld [vmem:[%s2513_s1 + $0xc8] sm:$0xf0]  ;;  %267 = vmatpush.bf16.msra.mxu0 %v1244_v29  ;;  %v1240_v46 = vor.u32 %v1722_v40, %v1237_v41  ;;  %v1721_v48 = vld [vmem:[%s2513_s1 + $0x34] sm:$0xf0]  ;;  %v1291_v49 = vld [vmem:[%s2513_s1 + $0xb0] sm:$0xf] }
  0x13   :  { %280 = vmatpush.bf16.msra.mxu1 %v1308_v33  ;;  %v1304_v50 = vor.u32 %v1738_v42, %v1301_v43  ;;  %v1737_v51 = vld [vmem:[%s2513_s1 + $0xb4] sm:$0xf0]  ;;  %v1720_v52 = vld [vmem:[%s2513_s1 + $0x34] sm:$0xf]  ;;  %v1229_v53 = vld [vmem:[%s2513_s1 + $0x38] sm:$0xf0]  ;;  %v1228_v56 = vor.u32 %v1721_v48, %v1227_v47 }
  0x14   :  { %293 = vmatpush.bf16.msra.mxu2 %v1248_v34  ;;  %v1736_v54 = vld [vmem:[%s2513_s1 + $0xb4] sm:$0xf]  ;;  %v1293_v55 = vld [vmem:[%s2513_s1 + $0xb8] sm:$0xf0]  ;;  %v1292_v57 = vor.u32 %v1737_v51, %v1291_v49  ;;  %v1232_v58 = vor.u32 %v1720_v52, %v1229_v53  ;;  %v1219_v59 = vld [vmem:[%s2513_s1 + $0x20] sm:$0xf] }
  0x15   :  { %306 = vmatpush.bf16.msra.mxu3 %v1312_v38  ;;  %v1719_v60 = vld [vmem:[%s2513_s1 + $0x24] sm:$0xf0]  ;;  %v1283_v61 = vld [vmem:[%s2513_s1 + $0xa0] sm:$0xf]  ;;  %v1296_v62 = vor.u32 %v1736_v54, %v1293_v55  ;;  %v1718_v0 = vld [vmem:[%s2513_s1 + $0x24] sm:$0xf] }
  0x16   :  { %268 = vmatpush.bf16.msra.mxu0 %v1236_v44  ;;  %v1735_v63 = vld [vmem:[%s2513_s1 + $0xa4] sm:$0xf0]  ;;  %v1221_v1 = vld [vmem:[%s2513_s1 + $0x28] sm:$0xf0]  ;;  %v1734_v2 = vld [vmem:[%s2513_s1 + $0xa4] sm:$0xf]  ;;  %v1220_v4 = vor.u32 %v1719_v60, %v1219_v59 }
  0x17   :  { %281 = vmatpush.bf16.msra.mxu1 %v1300_v45  ;;  %v1285_v3 = vld [vmem:[%s2513_s1 + $0xa8] sm:$0xf0]  ;;  %v1211_v5 = vld [vmem:[%s2513_s1 + $0x10] sm:$0xf]  ;;  %v1284_v6 = vor.u32 %v1735_v63, %v1283_v61  ;;  %v1224_v7 = vor.u32 %v1718_v0, %v1221_v1  ;;  %v1717_v8 = vld [vmem:[%s2513_s1 + $0x14] sm:$0xf0] }
  0x18   :  { %294 = vmatpush.bf16.msra.mxu2 %v1240_v46  ;;  %v1275_v9 = vld [vmem:[%s2513_s1 + $0x90] sm:$0xf]  ;;  %v1733_v10 = vld [vmem:[%s2513_s1 + $0x94] sm:$0xf0]  ;;  %v1288_v11 = vor.u32 %v1734_v2, %v1285_v3  ;;  %v1716_v12 = vld [vmem:[%s2513_s1 + $0x14] sm:$0xf]  ;;  %v1212_v17 = vor.u32 %v1717_v8, %v1211_v5 }
  0x19   :  { %307 = vmatpush.bf16.msra.mxu3 %v1304_v50  ;;  %v1213_v13 = vld [vmem:[%s2513_s1 + $0x18] sm:$0xf0]  ;;  %v58_v14 = vld [vmem:[%s2512_s0] sm:$0xf]  ;;  %v1732_v15 = vld [vmem:[%s2513_s1 + $0x94] sm:$0xf]  ;;  %v1276_v18 = vor.u32 %v1733_v10, %v1275_v9 }
  0x1a   :  { %269 = vmatpush.bf16.msra.mxu0 %v1228_v56  ;;  %v1277_v16 = vld [vmem:[%s2513_s1 + $0x98] sm:$0xf0]  ;;  %60 = vst [vmem:[#allocation1] ss:$4 sm:$0xff] %v58_v14  ;;  %v1216_v19 = vor.u32 %v1716_v12, %v1213_v13  ;;  %v1203_v20 = vld [vmem:[%s2513_s1] sm:$0xf] }
  0x1b   :  { %282 = vmatpush.bf16.msra.mxu1 %v1292_v57  ;;  %v1715_v21 = vld [vmem:[%s2513_s1 + $0x4] sm:$0xf0]  ;;  %v1267_v22 = vld [vmem:[%s2513_s1 + $0x80] sm:$0xf]  ;;  %v1280_v23 = vor.u32 %v1732_v15, %v1277_v16  ;;  %v1714_v25 = vld [vmem:[%s2513_s1 + $0x4] sm:$0xf] }
  0x1c   :  { %295 = vmatpush.bf16.msra.mxu2 %v1232_v58  ;;  %v1731_v24 = vld [vmem:[%s2513_s1 + $0x84] sm:$0xf0]  ;;  %v1205_v26 = vld [vmem:[%s2513_s1 + $0x8] sm:$0xf0]  ;;  %v1730_v27 = vld [vmem:[%s2513_s1 + $0x84] sm:$0xf]  ;;  %v1204_v29 = vor.u32 %v1715_v21, %v1203_v20 }
  0x1d   :  { %308 = vmatpush.bf16.msra.mxu3 %v1296_v62  ;;  %v1269_v28 = vld [vmem:[%s2513_s1 + $0x88] sm:$0xf0]  ;;  %v1268_v30 = vor.u32 %v1731_v24, %v1267_v22  ;;  %v1208_v31 = vor.u32 %v1714_v25, %v1205_v26  ;;  %v1753_v32 = vld [vmem:[%s2515_s3 + $0x38] sm:$0xff]  ;;  %v1451_v33 = vld [vmem:[%s2517_s5 + $0x70] sm:$0xf]  ;;  %vm479_vm0 = vcmask 74752  }
  0x1e   :  { %270 = vmatpush.bf16.msra.mxu0 %v1220_v4  ;;  %v1777_v34 = vld [vmem:[%s2517_s5 + $0x74] sm:$0xf0]  ;;  %v1272_v35 = vor.u32 %v1730_v27, %v1269_v28  ;;  %v1515_v40 = vld [vmem:[%s2517_s5 + $0xf0] sm:$0xf]  ;;  %v1443_v46 = vld [vmem:[%s2517_s5 + $0x60] sm:$0xf] }
  0x1f   :  { %283 = vmatpush.bf16.msra.mxu1 %v1284_v6  ;;  %v1761_v39 = vld [vmem:[%s2515_s3 + $0x78] sm:$0xff]  ;;  %v1752_v43 = vld [vmem:[%s2515_s3 + $0x30] sm:$0xff]  ;;  %v1452_v45 = vor.u32 %v1777_v34, %v1451_v33  ;;  %v1775_v47 = vld [vmem:[%s2517_s5 + $0x64] sm:$0xf0]  ;;  %s1175_s24 = sshll.u32 %s2523_s11, 4  ;;  %s1938_s25 = smov [#allocation5]   ;;  %s1176_s24 = int_to_ptr.hbm [resolvable:$true] %s1175_s24 }
  0x20   :  { %296 = vmatpush.bf16.msra.mxu2 %v1224_v7  ;;  %v1793_v41 = vld [vmem:[%s2517_s5 + $0xf4] sm:$0xf0]  ;;  %v1760_v44 = vld [vmem:[%s2515_s3 + $0x70] sm:$0xff]  ;;  %v1507_v49 = vld [vmem:[%s2517_s5 + $0xe0] sm:$0xf]  ;;  %v1444_v51 = vor.u32 %v1775_v47, %v1443_v46  ;;  %s1939_s11 = smov [#allocation6]  }
  0x21   :  { %309 = vmatpush.bf16.msra.mxu3 %v1288_v11  ;;  %v61_v36 = vld.sshfl [vmem:[#allocation1] sm:$0xff pattern:$0x73625140]  ;;  %v62_v37 = vld.sshfl [vmem:[#allocation1 + $0x8] sm:$0xff pattern:$0x73625140]  ;;  %v1516_v48 = vor.u32 %v1793_v41, %v1515_v40 }
  0x22   :  { %271 = vmatpush.bf16.msra.mxu0 %v1212_v17  ;;  %v65_v38 = vpack.c.bf16 %v61_v36, %v61_v36  ;;  %v66_v42 = vpack.c.bf16 %v62_v37, %v62_v37  ;;  %v1791_v50 = vld [vmem:[%s2517_s5 + $0xe4] sm:$0xf0]  ;;  %v1435_v53 = vld [vmem:[%s2517_s5 + $0x50] sm:$0xf]  ;;  %v1773_v54 = vld [vmem:[%s2517_s5 + $0x54] sm:$0xf0] }
  0x23   :  { %284 = vmatpush.bf16.msra.mxu1 %v1276_v18  ;;  %v1751_v52 = vld [vmem:[%s2515_s3 + $0x28] sm:$0xff]  ;;  %v1508_v55 = vor.u32 %v1791_v50, %v1507_v49  ;;  %v1499_v57 = vld [vmem:[%s2517_s5 + $0xd0] sm:$0xf]  ;;  %v1789_v58 = vld [vmem:[%s2517_s5 + $0xd4] sm:$0xf0]  ;;  %v1436_v59 = vor.u32 %v1773_v54, %v1435_v53  ;;  %s1184_s27 = sshll.u32 %s1939_s11, 4  ;;  %s1185_s27 = int_to_ptr.vmem [resolvable:$true] %s1184_s27 }
  0x24   :  { %297 = vmatpush.bf16.msra.mxu2 %v1216_v19  ;;  %v1759_v56 = vld [vmem:[%s2515_s3 + $0x68] sm:$0xff]  ;;  %v1750_v60 = vld [vmem:[%s2515_s3 + $0x20] sm:$0xff]  ;;  %v1500_v63 = vor.u32 %v1789_v58, %v1499_v57  ;;  %v1749_v2 = vld [vmem:[%s2515_s3 + $0x18] sm:$0xff]  ;;  %s1186_s28 = sshll.u32 %s2524_s12, 4  ;;  %vm1166_vm4 = vcmask 25600   ;;  %s1187_s28 = int_to_ptr.hbm [resolvable:$true] %s1186_s28 }
  0x25   :  { %310 = vmatpush.bf16.msra.mxu3 %v1280_v23  ;;  %v1427_v61 = vld [vmem:[%s2517_s5 + $0x40] sm:$0xf]  ;;  %v1771_v62 = vld [vmem:[%s2517_s5 + $0x44] sm:$0xf0]  ;;  %v1419_v3 = vld [vmem:[%s2517_s5 + $0x30] sm:$0xf] }
  0x26   :  { %272 = vmatpush.bf16.msra.mxu0 %v1204_v29  ;;  %v1758_v0 = vld [vmem:[%s2515_s3 + $0x60] sm:$0xff]  ;;  %v1428_v1 = vor.u32 %v1771_v62, %v1427_v61  ;;  %v1769_v4 = vld [vmem:[%s2517_s5 + $0x34] sm:$0xf0]  ;;  %v1748_v7 = vld [vmem:[%s2515_s3 + $0x10] sm:$0xff] }
  0x27   :  { %285 = vmatpush.bf16.msra.mxu1 %v1268_v30  ;;  %v1757_v5 = vld [vmem:[%s2515_s3 + $0x58] sm:$0xff]  ;;  %v1420_v6 = vor.u32 %v1769_v4, %v1419_v3  ;;  %v1756_v8 = vld [vmem:[%s2515_s3 + $0x50] sm:$0xff]  ;;  %v1747_v9 = vld [vmem:[%s2515_s3 + $0x8] sm:$0xff] }
  0x28   :  { %298 = vmatpush.bf16.msra.mxu2 %v1208_v31  ;;  %v1776_v10 = vld [vmem:[%s2517_s5 + $0x74] sm:$0xf]  ;;  %v1453_v11 = vld [vmem:[%s2517_s5 + $0x78] sm:$0xf0]  ;;  %v1746_v12 = vld [vmem:[%s2515_s3] sm:$0xff] }
  0x29   :  { %311 = vmatpush.bf16.msra.mxu3 %v1272_v35  ;;  %273 = vmatmul.bf16.vlgmr.msra.gmra.mxu0 %v65_v38  ;;  %v1456_v13 = vor.u32 %v1776_v10, %v1453_v11  ;;  %v1755_v14 = vld [vmem:[%s2515_s3 + $0x48] sm:$0xff]  ;;  %v1491_v15 = vld [vmem:[%s2517_s5 + $0xc0] sm:$0xf]  ;;  %v1774_v20 = vld [vmem:[%s2517_s5 + $0x64] sm:$0xf] }
  0x2a   :  { %453 = vmatpush.bf16.msrb.mxu0 %v1753_v32  ;;  %286 = vmatmul.bf16.vlgmr.msra.gmra.mxu1 %v66_v42  ;;  %v1787_v16 = vld [vmem:[%s2517_s5 + $0xc4] sm:$0xf0]  ;;  %v1411_v18 = vld [vmem:[%s2517_s5 + $0x20] sm:$0xf]  ;;  %v1445_v22 = vld [vmem:[%s2517_s5 + $0x68] sm:$0xf0] }
  0x2b   :  { %466 = vmatpush.bf16.msrb.mxu1 %v1761_v39  ;;  %299 = vmatmul.bf16.vlgmr.msra.gmra.mxu2 %v65_v38  ;;  %v1492_v17 = vor.u32 %v1787_v16, %v1491_v15  ;;  %v1767_v19 = vld [vmem:[%s2517_s5 + $0x24] sm:$0xf0]  ;;  %v1448_v23 = vor.u32 %v1774_v20, %v1445_v22  ;;  %v1754_v24 = vld [vmem:[%s2515_s3 + $0x40] sm:$0xff]  ;;  %v1483_v25 = vld [vmem:[%s2517_s5 + $0xb0] sm:$0xf] }
  0x2c   :  { %312 = vmatmul.bf16.vlgmr.msra.gmra.mxu3 %v66_v42  ;;  %679 = vmatpush.bf16.msrb.mxu2 %v1452_v45  ;;  %v1412_v21 = vor.u32 %v1767_v19, %v1411_v18  ;;  %v1785_v26 = vld [vmem:[%s2517_s5 + $0xb4] sm:$0xf0]  ;;  %v1792_v28 = vld [vmem:[%s2517_s5 + $0xf4] sm:$0xf]  ;;  %v1517_v29 = vld [vmem:[%s2517_s5 + $0xf8] sm:$0xf0] }
  0x2d   :  { %692 = vmatpush.bf16.msrb.mxu3 %v1516_v48  ;;  %v1484_v27 = vor.u32 %v1785_v26, %v1483_v25  ;;  %v1520_v30 = vor.u32 %v1792_v28, %v1517_v29  ;;  %v1403_v31 = vld [vmem:[%s2517_s5 + $0x10] sm:$0xf]  ;;  %v1765_v32 = vld [vmem:[%s2517_s5 + $0x14] sm:$0xf0]  ;;  %v1772_v33 = vld [vmem:[%s2517_s5 + $0x54] sm:$0xf] }
  0x2e   :  { %454 = vmatpush.bf16.msrb.mxu0 %v1752_v43  ;;  %v1404_v34 = vor.u32 %v1765_v32, %v1403_v31  ;;  %v1437_v35 = vld [vmem:[%s2517_s5 + $0x58] sm:$0xf0]  ;;  %v1475_v37 = vld [vmem:[%s2517_s5 + $0xa0] sm:$0xf]  ;;  %v1783_v38 = vld [vmem:[%s2517_s5 + $0xa4] sm:$0xf0] }
  0x2f   :  { %467 = vmatpush.bf16.msrb.mxu1 %v1760_v44  ;;  %v1440_v36 = vor.u32 %v1772_v33, %v1437_v35  ;;  %v1790_v39 = vld [vmem:[%s2517_s5 + $0xe4] sm:$0xf]  ;;  %v1476_v40 = vor.u32 %v1783_v38, %v1475_v37  ;;  %v1509_v41 = vld [vmem:[%s2517_s5 + $0xe8] sm:$0xf0]  ;;  %v1395_v43 = vld [vmem:[%s2517_s5] sm:$0xf] }
  0x30   :  { %680 = vmatpush.bf16.msrb.mxu2 %v1444_v51  ;;  %v1512_v42 = vor.u32 %v1790_v39, %v1509_v41  ;;  %v1763_v44 = vld [vmem:[%s2517_s5 + $0x4] sm:$0xf0]  ;;  %v1770_v45 = vld [vmem:[%s2517_s5 + $0x44] sm:$0xf]  ;;  %v1429_v47 = vld [vmem:[%s2517_s5 + $0x48] sm:$0xf0] }
  0x31   :  { %693 = vmatpush.bf16.msrb.mxu3 %v1508_v55  ;;  %v1396_v46 = vor.u32 %v1763_v44, %v1395_v43  ;;  %v1432_v48 = vor.u32 %v1770_v45, %v1429_v47  ;;  %v1467_v49 = vld [vmem:[%s2517_s5 + $0x90] sm:$0xf]  ;;  %v1781_v50 = vld [vmem:[%s2517_s5 + $0x94] sm:$0xf0]  ;;  %v1788_v51 = vld [vmem:[%s2517_s5 + $0xd4] sm:$0xf] }
  0x32   :  { %455 = vmatpush.bf16.msrb.mxu0 %v1751_v52  ;;  %v1468_v52 = vor.u32 %v1781_v50, %v1467_v49  ;;  %v1501_v53 = vld [vmem:[%s2517_s5 + $0xd8] sm:$0xf0]  ;;  %v1768_v55 = vld [vmem:[%s2517_s5 + $0x34] sm:$0xf]  ;;  %v1459_v58 = vld [vmem:[%s2517_s5 + $0x80] sm:$0xf] }
  0x33   :  { %468 = vmatpush.bf16.msrb.mxu1 %v1759_v56  ;;  %v1504_v54 = vor.u32 %v1788_v51, %v1501_v53  ;;  %v1421_v56 = vld [vmem:[%s2517_s5 + $0x38] sm:$0xf0]  ;;  %v1493_v62 = vld [vmem:[%s2517_s5 + $0xc8] sm:$0xf0]  ;;  %v1784_v3 = vld [vmem:[%s2517_s5 + $0xb4] sm:$0xf] }
  0x34   :  { %681 = vmatpush.bf16.msrb.mxu2 %v1436_v59  ;;  %v1424_v57 = vor.u32 %v1768_v55, %v1421_v56  ;;  %v1779_v59 = vld [vmem:[%s2517_s5 + $0x84] sm:$0xf0]  ;;  %v1485_v4 = vld [vmem:[%s2517_s5 + $0xb8] sm:$0xf0]  ;;  %v1477_v10 = vld [vmem:[%s2517_s5 + $0xa8] sm:$0xf0] }
  0x35   :  { %694 = vmatpush.bf16.msrb.mxu3 %v1500_v63  ;;  %v1460_v61 = vor.u32 %v1779_v59, %v1459_v58  ;;  %v1762_v11 = vld [vmem:[%s2517_s5 + $0x4] sm:$0xf]  ;;  %v1469_v15 = vld [vmem:[%s2517_s5 + $0x98] sm:$0xf0]  ;;  %v99_v16 = vld [vmem:[%s2514_s2] sm:$0x3] }
  0x36   :  { %456 = vmatpush.bf16.msrb.mxu0 %v1750_v60  ;;  %v1786_v60 = vld [vmem:[%s2517_s5 + $0xc4] sm:$0xf]  ;;  %v101_v19 = vperm.slane %v99_v16, 0  ;;  %v1579_v28 = vld [vmem:[#allocation2 + $0x70] sm:$0xf] }
  0x37   :  { %469 = vmatpush.bf16.msrb.mxu1 %v1758_v0  ;;  %v1496_v63 = vor.u32 %v1786_v60, %v1493_v62  ;;  %v1766_v0 = vld [vmem:[%s2517_s5 + $0x24] sm:$0xf]  ;;  %v1809_v29 = vld [vmem:[#allocation2 + $0x74] sm:$0xf0]  ;;  %v1571_v31 = vld [vmem:[#allocation2 + $0x60] sm:$0xf] }
  0x38   :  { %682 = vmatpush.bf16.msrb.mxu2 %v1428_v1  ;;  %v1413_v1 = vld [vmem:[%s2517_s5 + $0x28] sm:$0xf0]  ;;  %v1778_v20 = vld [vmem:[%s2517_s5 + $0x84] sm:$0xf]  ;;  %v1807_v32 = vld [vmem:[#allocation2 + $0x64] sm:$0xf0] }
  0x39   :  { %695 = vmatpush.bf16.msrb.mxu3 %v1492_v17  ;;  %v1808_v37 = vld [vmem:[#allocation2 + $0x74] sm:$0xf]  ;;  %v1581_v38 = vld [vmem:[#allocation2 + $0x78] sm:$0xf0]  ;;  %v1572_v39 = vor.u32 %v1807_v32, %v1571_v31  ;;  %v1643_v43 = vld [vmem:[#allocation2 + $0xf0] sm:$0xf] }
  0x3a   :  { %457 = vmatpush.bf16.msrb.mxu0 %v1749_v2  ;;  %v1416_v2 = vor.u32 %v1766_v0, %v1413_v1  ;;  %v1825_v44 = vld [vmem:[#allocation2 + $0xf4] sm:$0xf0]  ;;  %v1806_v50 = vld [vmem:[#allocation2 + $0x64] sm:$0xf]  ;;  %v1573_v51 = vld [vmem:[#allocation2 + $0x68] sm:$0xf0] }
  0x3b   :  { %470 = vmatpush.bf16.msrb.mxu1 %v1757_v5  ;;  %v1488_v5 = vor.u32 %v1784_v3, %v1485_v4  ;;  %v1824_v55 = vld [vmem:[#allocation2 + $0xf4] sm:$0xf]  ;;  %v1645_v56 = vld [vmem:[#allocation2 + $0xf8] sm:$0xf0]  ;;  %v1555_v0 = vld [vmem:[#allocation2 + $0x40] sm:$0xf] }
  0x3c   :  { %683 = vmatpush.bf16.msrb.mxu2 %v1420_v6  ;;  %v1764_v6 = vld [vmem:[%s2517_s5 + $0x14] sm:$0xf]  ;;  %v1804_v58 = vld [vmem:[#allocation2 + $0x54] sm:$0xf]  ;;  %v1565_v59 = vld [vmem:[#allocation2 + $0x58] sm:$0xf0] }
  0x3d   :  { %696 = vmatpush.bf16.msrb.mxu3 %v1484_v27  ;;  %v102_v27 = vperm.slane %v99_v16, 1  ;;  %v1803_v1 = vld [vmem:[#allocation2 + $0x44] sm:$0xf0]  ;;  %v1557_v4 = vld [vmem:[#allocation2 + $0x48] sm:$0xf0] }
  0x3e   :  { %458 = vmatpush.bf16.msrb.mxu0 %v1748_v7  ;;  %v1405_v7 = vld [vmem:[%s2517_s5 + $0x18] sm:$0xf0]  ;;  %v1556_v3 = vor.u32 %v1803_v1, %v1555_v0  ;;  %v1549_v16 = vld [vmem:[#allocation2 + $0x38] sm:$0xf0]  ;;  %v1819_v31 = vld [vmem:[#allocation2 + $0xc4] sm:$0xf0] }
  0x3f   :  { %471 = vmatpush.bf16.msrb.mxu1 %v1756_v8  ;;  %v1782_v8 = vld [vmem:[%s2517_s5 + $0xa4] sm:$0xf]  ;;  %v1818_v32 = vld [vmem:[#allocation2 + $0xc4] sm:$0xf] }
  0x40   :  { %684 = vmatpush.bf16.msrb.mxu2 %v1412_v21  ;;  %v1461_v21 = vld [vmem:[%s2517_s5 + $0x88] sm:$0xf0]  ;;  %v1597_v0 = vld [vmem:[#allocation2 + $0x98] sm:$0xf0] }
  0x41   :  { %697 = vmatpush.bf16.msrb.mxu3 %v1476_v40  ;;  %v1563_v40 = vld [vmem:[#allocation2 + $0x50] sm:$0xf] }
  0x42   :  { %459 = vmatpush.bf16.msrb.mxu0 %v1747_v9  ;;  %v1408_v9 = vor.u32 %v1764_v6, %v1405_v7  ;;  %v1635_v6 = vld [vmem:[#allocation2 + $0xe0] sm:$0xf]  ;;  %v1823_v7 = vld [vmem:[#allocation2 + $0xe4] sm:$0xf0] }
  0x43   :  { %472 = vmatpush.bf16.msrb.mxu1 %v1755_v14  ;;  %v1780_v14 = vld [vmem:[%s2517_s5 + $0x94] sm:$0xf] }
  0x44   :  { %685 = vmatpush.bf16.msrb.mxu2 %v1404_v34  ;;  %v1472_v18 = vor.u32 %v1780_v14, %v1469_v15  ;;  %v1800_v15 = vld [vmem:[#allocation2 + $0x34] sm:$0xf] }
  0x45   :  { %698 = vmatpush.bf16.msrb.mxu3 %v1468_v52 }
  0x46   :  { %460 = vmatpush.bf16.msrb.mxu0 %v1746_v12  ;;  %v1397_v12 = vld [vmem:[%s2517_s5 + $0x8] sm:$0xf0] }
  0x47   :  { %473 = vmatpush.bf16.msrb.mxu1 %v1754_v24  ;;  %v1400_v17 = vor.u32 %v1762_v11, %v1397_v12  ;;  %v1547_v11 = vld [vmem:[#allocation2 + $0x30] sm:$0xf]  ;;  %v1801_v12 = vld [vmem:[#allocation2 + $0x34] sm:$0xf0] }
  0x48   :  { %686 = vmatpush.bf16.msrb.mxu2 %v1396_v46  ;;  %v1644_v46 = vor.u32 %v1825_v44, %v1643_v43  ;;  %v1548_v14 = vor.u32 %v1801_v12, %v1547_v11  ;;  %v1817_v43 = vld [vmem:[#allocation2 + $0xb4] sm:$0xf0]  ;;  %v1816_v44 = vld [vmem:[#allocation2 + $0xb4] sm:$0xf]  ;;  %v1840_v12 = vld [vmem:[%s2521_s9 + $0x70] sm:$0xff] }
  0x49   :  { %699 = vmatpush.bf16.msrb.mxu3 %v1460_v61  ;;  %v1648_v61 = vor.u32 %v1824_v55, %v1645_v56  ;;  %v1815_v55 = vld [vmem:[#allocation2 + $0xa4] sm:$0xf0] }
  0x4a   :  { %705 = vmatpush.bf16.msra.mxu0 %v1456_v13  ;;  %v1480_v13 = vor.u32 %v1782_v8, %v1477_v10  ;;  %v1822_v8 = vld [vmem:[#allocation2 + $0xe4] sm:$0xf]  ;;  %v1637_v10 = vld [vmem:[#allocation2 + $0xe8] sm:$0xf0] }
  0x4b   :  { %718 = vmatpush.bf16.msra.mxu1 %v1520_v30  ;;  %v1580_v30 = vor.u32 %v1809_v29, %v1579_v28  ;;  %v1541_v28 = vld [vmem:[#allocation2 + $0x28] sm:$0xf0]  ;;  %v1619_v29 = vld [vmem:[#allocation2 + $0xc0] sm:$0xf] }
  0x4d   :  { %933 = vmatpush.bf16.msra.mxu2 %v1580_v30  ;;  %946 = vmatpush.bf16.msra.mxu3 %v1644_v46  ;;  %v1613_v46 = vld [vmem:[#allocation2 + $0xb8] sm:$0xf0] }
  0x4e   :  { %706 = vmatpush.bf16.msra.mxu0 %v1448_v23  ;;  %v1464_v23 = vor.u32 %v1778_v20, %v1461_v21  ;;  %v1820_v20 = vld [vmem:[#allocation2 + $0xd4] sm:$0xf] }
  0x4f   :  { %719 = vmatpush.bf16.msra.mxu1 %v1512_v42  ;;  %v1805_v42 = vld [vmem:[#allocation2 + $0x54] sm:$0xf0] }
  0x50   :  { %v1564_v52 = vor.u32 %v1805_v42, %v1563_v40  ;;  %v1533_v40 = vld [vmem:[#allocation2 + $0x18] sm:$0xf0]  ;;  %v1611_v42 = vld [vmem:[#allocation2 + $0xb0] sm:$0xf] }
  0x51   :  { %934 = vmatpush.bf16.msra.mxu2 %v1572_v39 }
  0x52   :  { %707 = vmatpush.bf16.msra.mxu0 %v1440_v36 }
  0x53   :  { %720 = vmatpush.bf16.msra.mxu1 %v1504_v54  ;;  %v1576_v54 = vor.u32 %v1806_v50, %v1573_v51  ;;  %v1794_v50 = vld [vmem:[#allocation2 + $0x4] sm:$0xf] }
  0x55   :  { %935 = vmatpush.bf16.msra.mxu2 %v1564_v52  ;;  %v1525_v52 = vld [vmem:[#allocation2 + $0x8] sm:$0xf0] }
  0x56   :  { %708 = vmatpush.bf16.msra.mxu0 %v1432_v48  ;;  %v1584_v48 = vor.u32 %v1808_v37, %v1581_v38  ;;  %v1797_v37 = vld [vmem:[#allocation2 + $0x14] sm:$0xf0]  ;;  %v1796_v38 = vld [vmem:[#allocation2 + $0x14] sm:$0xf] }
  0x57   :  { %721 = vmatpush.bf16.msra.mxu1 %v1496_v63  ;;  %v1568_v63 = vor.u32 %v1804_v58, %v1565_v59  ;;  %v1605_v58 = vld [vmem:[#allocation2 + $0xa8] sm:$0xf0] }
  0x59   :  { %936 = vmatpush.bf16.msra.mxu2 %v1556_v3  ;;  %v1811_v3 = vld [vmem:[#allocation2 + $0x84] sm:$0xf0] }
  0x5a   :  { %709 = vmatpush.bf16.msra.mxu0 %v1424_v57 }
  0x5b   :  { %722 = vmatpush.bf16.msra.mxu1 %v1488_v5 }
  0x5d   :  { %937 = vmatpush.bf16.msra.mxu2 %v1548_v14  ;;  %v513_v14 = vld [vmem:[%s2518_s6] sm:$0x3] }
  0x5e   :  { %710 = vmatpush.bf16.msra.mxu0 %v1416_v2  ;;  %v1802_v2 = vld [vmem:[#allocation2 + $0x44] sm:$0xf] }
  0x5f   :  { %723 = vmatpush.bf16.msra.mxu1 %v1480_v13  ;;  %v1560_v5 = vor.u32 %v1802_v2, %v1557_v4  ;;  %v1640_v13 = vor.u32 %v1822_v8, %v1637_v10  ;;  %v1587_v2 = vld [vmem:[#allocation2 + $0x80] sm:$0xf]  ;;  %v1810_v4 = vld [vmem:[#allocation2 + $0x84] sm:$0xf]  ;;  %v1841_v8 = vld [vmem:[%s2521_s9 + $0x78] sm:$0xff] }
  0x60   :  { %v1847_v10 = vld [vmem:[%s2516_s4] ss:$0 sm:$0xff]  ;;  %s1173_s4 = sshll.u32 %s1938_s25, 4  ;;  %s1174_s4 = int_to_ptr.vmem [resolvable:$true] %s1173_s4 }
  0x62   :  { %711 = vmatpush.bf16.msra.mxu0 %v1408_v9  ;;  %v1636_v9 = vor.u32 %v1823_v7, %v1635_v6  ;;  %v1589_v6 = vld [vmem:[#allocation2 + $0x88] sm:$0xf0] }
  0x63   :  { %724 = vmatpush.bf16.msra.mxu1 %v1472_v18  ;;  %v1627_v18 = vld [vmem:[#allocation2 + $0xd0] sm:$0xf]  ;;  %v1592_v7 = vor.u32 %v1810_v4, %v1589_v6  ;;  %v1848_v6 = vld [vmem:[%s2522_s10] ss:$0 sm:$0xff] }
  0x64   :  { %947 = vmatpush.bf16.msra.mxu3 %v1636_v9  ;;  %v1833_v9 = vld [vmem:[%s2521_s9 + $0x38] sm:$0xff] }
  0x66   :  { %712 = vmatpush.bf16.msra.mxu0 %v1400_v17  ;;  %v1552_v17 = vor.u32 %v1800_v15, %v1549_v16  ;;  %v1839_v16 = vld [vmem:[%s2521_s9 + $0x68] sm:$0xff] }
  0x67   :  { %725 = vmatpush.bf16.msra.mxu1 %v1464_v23 }
  0xa6   :  { %v274_v22 = vpop.f32.mrf.mxu0 }
  0xa7   :  { %v275_v24 = vadd.f32 %v274_v22, %v101_v19  ;;  %v287_v25 = vpop.f32.mrf.mxu1  ;;  %v1821_v19 = vld [vmem:[#allocation2 + $0xd4] sm:$0xf0]  ;;  %v1629_v22 = vld [vmem:[#allocation2 + $0xd8] sm:$0xf0] }
  0xa8   :  { %v1628_v21 = vor.u32 %v1821_v19, %v1627_v18  ;;  %v1632_v23 = vor.u32 %v1820_v20, %v1629_v22  ;;  %v1838_v22 = vld [vmem:[%s2521_s9 + $0x60] sm:$0xff] }
  0xa9   :  { %v288_v26 = vadd.f32 %v287_v25, %v275_v24  ;;  %v1539_v24 = vld [vmem:[#allocation2 + $0x20] sm:$0xf]  ;;  %v1799_v25 = vld [vmem:[#allocation2 + $0x24] sm:$0xf0] }
  0xaa   :  { %948 = vmatpush.bf16.msra.mxu3 %v1628_v21 }
  0xab   :  { %1849 = vtanh.f32 %v288_v26  ;;  %v1798_v26 = vld [vmem:[#allocation2 + $0x24] sm:$0xf] }
  0xac   :  { %v1544_v30 = vor.u32 %v1798_v26, %v1541_v28 }
  0xae   :  { %v300_v33 = vpop.f32.mrf.mxu2  ;;  %v276_v36 = vpop.f32.mrf.mxu0 }
  0xaf   :  { %v301_v34 = vadd.f32 %v300_v33, %v102_v27  ;;  %v313_v35 = vpop.f32.mrf.mxu3  ;;  %v289_v41 = vpop.f32.mrf.mxu1  ;;  %v1540_v27 = vor.u32 %v1799_v25, %v1539_v24  ;;  %v1620_v33 = vor.u32 %v1819_v31, %v1619_v29  ;;  %v1531_v36 = vld [vmem:[#allocation2 + $0x10] sm:$0xf]  ;;  %v516_v31 = vperm.slane %v513_v14, 1 }
  0xb0   :  { %v1532_v39 = vor.u32 %v1797_v37, %v1531_v36  ;;  %v1536_v41 = vor.u32 %v1796_v38, %v1533_v40  ;;  %v1831_v40 = vld [vmem:[%s2521_s9 + $0x28] sm:$0xff] }
  0xb1   :  { %v314_v45 = vadd.f32 %v313_v35, %v301_v34  ;;  %v1850_v47 = vpop.eup %1849  ;;  %938 = vmatpush.bf16.msra.mxu2 %v1540_v27  ;;  %v1621_v34 = vld [vmem:[#allocation2 + $0xc8] sm:$0xf0]  ;;  %949 = vmatpush.bf16.msra.mxu3 %v1620_v33 }
  0xb2   :  { %v319_v49 = vpack.c.bf16 %v1850_v47, %v1850_v47  ;;  %v1624_v35 = vor.u32 %v1818_v32, %v1621_v34  ;;  %v1616_v47 = vor.u32 %v1816_v44, %v1613_v46  ;;  %v1829_v44 = vld [vmem:[%s2521_s9 + $0x18] sm:$0xff]  ;;  %v1828_v46 = vld [vmem:[%s2521_s9 + $0x10] sm:$0xff] }
  0xb3   :  { %1851 = vtanh.f32 %v314_v45  ;;  %v1612_v45 = vor.u32 %v1817_v43, %v1611_v42  ;;  %v1830_v42 = vld [vmem:[%s2521_s9 + $0x20] sm:$0xff]  ;;  %v1836_v43 = vld [vmem:[%s2521_s9 + $0x50] sm:$0xff] }
  0xb4   :  { %461 = vmatmul.bf16.vlgmr.msrb.gmra.mxu0 %v319_v49  ;;  %687 = vmatmul.bf16.vlgmr.msrb.gmra.mxu2 %v319_v49 }
  0xb5   :  { %959 = vmatpush.bf16.msrb.mxu0 %v1584_v48  ;;  %939 = vmatpush.bf16.msra.mxu2 %v1532_v39  ;;  %v1523_v48 = vld [vmem:[#allocation2] sm:$0xf] }
  0xb6   :  { %v302_v53 = vpop.f32.mrf.mxu2  ;;  %950 = vmatpush.bf16.msra.mxu3 %v1612_v45  ;;  %v1835_v45 = vld [vmem:[%s2521_s9 + $0x48] sm:$0xff] }
  0xb7   :  { %v315_v57 = vpop.f32.mrf.mxu3  ;;  %v1528_v53 = vor.u32 %v1794_v50, %v1525_v52 }
  0xb8   :  { %v1814_v57 = vld [vmem:[#allocation2 + $0xa4] sm:$0xf] }
  0xb9   :  { %v1852_v60 = vpop.eup %1851  ;;  %960 = vmatpush.bf16.msrb.mxu0 %v1576_v54  ;;  %v1603_v54 = vld [vmem:[#allocation2 + $0xa0] sm:$0xf]  ;;  %v1608_v59 = vor.u32 %v1814_v57, %v1605_v58 }
  0xba   :  { %v320_v62 = vpack.c.bf16 %v1852_v60, %v1852_v60  ;;  %v1604_v56 = vor.u32 %v1815_v55, %v1603_v54  ;;  %v1595_v60 = vld [vmem:[#allocation2 + $0x90] sm:$0xf] }
  0xbc   :  { %474 = vmatmul.bf16.vlgmr.msrb.gmra.mxu1 %v320_v62  ;;  %700 = vmatmul.bf16.vlgmr.msrb.gmra.mxu3 %v320_v62 }
  0xbd   :  { %972 = vmatpush.bf16.msrb.mxu1 %v1648_v61  ;;  %961 = vmatpush.bf16.msrb.mxu0 %v1568_v63  ;;  %v1813_v61 = vld [vmem:[#allocation2 + $0x94] sm:$0xf0] }
  0xbe   :  { %951 = vmatpush.bf16.msra.mxu3 %v1604_v56  ;;  %v1596_v63 = vor.u32 %v1813_v61, %v1595_v60 }
  0xc1   :  { %962 = vmatpush.bf16.msrb.mxu0 %v1560_v5  ;;  %973 = vmatpush.bf16.msrb.mxu1 %v1640_v13  ;;  %v1588_v5 = vor.u32 %v1811_v3, %v1587_v2  ;;  %v1832_v13 = vld [vmem:[%s2521_s9 + $0x30] sm:$0xff] }
  0xc2   :  { %952 = vmatpush.bf16.msra.mxu3 %v1596_v63 }
  0xc4   :  { %713 = vmatmul.bf16.vlgmr.msra.gmra.mxu0 %v319_v49  ;;  %v1795_v49 = vld [vmem:[#allocation2 + $0x4] sm:$0xf0] }
  0xc5   :  { %963 = vmatpush.bf16.msrb.mxu0 %v1552_v17  ;;  %974 = vmatpush.bf16.msrb.mxu1 %v1632_v23  ;;  %v1524_v51 = vor.u32 %v1795_v49, %v1523_v48  ;;  %v515_v17 = vperm.slane %v513_v14, 0  ;;  %v1827_v48 = vld [vmem:[%s2521_s9 + $0x8] sm:$0xff]  ;;  %v1826_v49 = vld [vmem:[%s2521_s9] sm:$0xff] }
  0xc6   :  { %953 = vmatpush.bf16.msra.mxu3 %v1588_v5 }
  0xc7   :  { %940 = vmatpush.bf16.msra.mxu2 %v1524_v51  ;;  %v767_v51 = vld [vmem:[%s2520_s8] sm:$0x3] }
  0xc8   :  { %v770_v52 = vperm.slane %v767_v51, 1  ;;  %v769_v57 = vperm.slane %v767_v51, 0 }
  0xc9   :  { %964 = vmatpush.bf16.msrb.mxu0 %v1544_v30  ;;  %975 = vmatpush.bf16.msrb.mxu1 %v1624_v35 }
  0xca   :  { %1134 = vmatpush.bf16.msrb.mxu3 %v1841_v8 }
  0xcb   :  { %1121 = vmatpush.bf16.msrb.mxu2 %v1833_v9 }
  0xcc   :  { %726 = vmatmul.bf16.vlgmr.msra.gmra.mxu1 %v320_v62  ;;  %v1812_v62 = vld [vmem:[#allocation2 + $0x94] sm:$0xf] }
  0xcd   :  { %965 = vmatpush.bf16.msrb.mxu0 %v1536_v41  ;;  %976 = vmatpush.bf16.msrb.mxu1 %v1616_v47  ;;  %v1600_v1 = vor.u32 %v1812_v62, %v1597_v0  ;;  %v1837_v41 = vld [vmem:[%s2521_s9 + $0x58] sm:$0xff]  ;;  %v1834_v47 = vld [vmem:[%s2521_s9 + $0x40] sm:$0xff] }
  0xce   :  { %1135 = vmatpush.bf16.msrb.mxu3 %v1840_v12 }
  0xcf   :  { %1122 = vmatpush.bf16.msrb.mxu2 %v1832_v13 }
  0xd1   :  { %966 = vmatpush.bf16.msrb.mxu0 %v1528_v53  ;;  %977 = vmatpush.bf16.msrb.mxu1 %v1608_v59 }
  0xd2   :  { %1136 = vmatpush.bf16.msrb.mxu3 %v1839_v16 }
  0xd3   :  { %1123 = vmatpush.bf16.msrb.mxu2 %v1831_v40 }
  0xd5   :  { %978 = vmatpush.bf16.msrb.mxu1 %v1600_v1 }
  0xd6   :  { %1137 = vmatpush.bf16.msrb.mxu3 %v1838_v22 }
  0xd7   :  { %1124 = vmatpush.bf16.msrb.mxu2 %v1830_v42 }
  0xd9   :  { %979 = vmatpush.bf16.msrb.mxu1 %v1592_v7 }
  0xda   :  { %1138 = vmatpush.bf16.msrb.mxu3 %v1837_v41 }
  0xdb   :  { %1125 = vmatpush.bf16.msrb.mxu2 %v1829_v44 }
  0xde   :  { %1139 = vmatpush.bf16.msrb.mxu3 %v1836_v43 }
  0xdf   :  { %1126 = vmatpush.bf16.msrb.mxu2 %v1828_v46 }
  0xe2   :  { %1140 = vmatpush.bf16.msrb.mxu3 %v1835_v45 }
  0xe3   :  { %1127 = vmatpush.bf16.msrb.mxu2 %v1827_v48 }
  0xe6   :  { %1141 = vmatpush.bf16.msrb.mxu3 %v1834_v47 }
  0xe7   :  { %1128 = vmatpush.bf16.msrb.mxu2 %v1826_v49 }
 0x131   :  { %v462_v11 = vpop.f32.mrf.mxu0 }
 0x132   :  { %v463_v15 = vadd.f32 %v1847_v10, %v462_v11 }
 0x137   :  { %v688_v18 = vpop.f32.mrf.mxu2 }
 0x138   :  { %v689_v23 = vadd.f32 %v688_v18, %v515_v17 }
 0x139   :  { %v475_v19 = vpop.f32.mrf.mxu1  ;;  %v464_v21 = vpop.f32.mrf.mxu0 }
 0x13a   :  { %v476_v20 = vadd.f32 %v475_v19, %v463_v15 }
 0x13c   :  { %480 = vst.msk [vmem:[#allocation5] sm:$0x3] %vm479_vm0, %v476_v20 }
 0x13d   :  { %1178 = dma.vmem_to_hbm [thread:$0]  %s1174_s4, 32, %s1176_s24, [#allocation4]  }
 0x13f   :  { %v701_v24 = vpop.f32.mrf.mxu3  ;;  %v690_v26 = vpop.f32.mrf.mxu2 }
 0x140   :  { %v702_v25 = vadd.f32 %v701_v24, %v689_v23 }
 0x141   :  { %v477_v27 = vpop.f32.mrf.mxu1  ;;  %v714_v29 = vpop.f32.mrf.mxu0 }
 0x142   :  { %v731_v28 = vmax.f32 %v702_v25, 0.0  ;;  %v715_v33 = vadd.f32 %v714_v29, %v516_v31 }
 0x144   :  { %v733_v30 = vpack.c.bf16 %v731_v28, %v731_v28 }
 0x146   :  { %941 = vmatmul.bf16.vlgmr.msra.gmra.mxu2 %v733_v30  ;;  %967 = vmatmul.bf16.vlgmr.msrb.gmra.mxu0 %v733_v30 }
 0x147   :  { %v703_v32 = vpop.f32.mrf.mxu3 }
 0x149   :  { %v727_v34 = vpop.f32.mrf.mxu1  ;;  %v716_v36 = vpop.f32.mrf.mxu0 }
 0x14a   :  { %v728_v35 = vadd.f32 %v727_v34, %v715_v33 }
 0x14c   :  { %v732_v37 = vmax.f32 %v728_v35, 0.0 }
 0x14e   :  { %v734_v38 = vpack.c.bf16 %v732_v37, %v732_v37 }
 0x150   :  { %954 = vmatmul.bf16.vlgmr.msra.gmra.mxu3 %v734_v38  ;;  %980 = vmatmul.bf16.vlgmr.msrb.gmra.mxu1 %v734_v38 }
 0x151   :  { %v729_v39 = vpop.f32.mrf.mxu1 }
 0x1c3   :  { %v968_v50 = vpop.f32.mrf.mxu0 }
 0x1c4   :  { %v969_v55 = vadd.f32 %v968_v50, %v770_v52 }
 0x1c9   :  { %v942_v53 = vpop.f32.mrf.mxu2 }
 0x1ca   :  { %v943_v61 = vadd.f32 %v942_v53, %v769_v57 }
 0x1cb   :  { %v970_v54 = vpop.f32.mrf.mxu0 }
 0x1cd   :  { %v981_v56 = vpop.f32.mrf.mxu1 }
 0x1ce   :  { %v982_v58 = vadd.f32 %v981_v56, %v969_v55 }
 0x1d0   :  { %v986_v59 = vmax.f32 %v982_v58, 0.0 }
 0x1d1   :  { %v944_v60 = vpop.f32.mrf.mxu2 }
 0x1d2   :  { %v988_v62 = vpack.c.bf16 %v986_v59, %v986_v59 }
 0x1d3   :  { %v955_v63 = vpop.f32.mrf.mxu3 }
 0x1d4   :  { %v956_v0 = vadd.f32 %v955_v63, %v943_v61  ;;  %1142 = vmatmul.bf16.vlgmr.msrb.gmra.mxu3 %v988_v62 }
 0x1d5   :  { %v983_v1 = vpop.f32.mrf.mxu1 }
 0x1d6   :  { %v985_v2 = vmax.f32 %v956_v0, 0.0 }
 0x1d8   :  { %v987_v3 = vpack.c.bf16 %v985_v2, %v985_v2 }
 0x1da   :  { %1129 = vmatmul.bf16.vlgmr.msrb.gmra.mxu2 %v987_v3 }
 0x1db   :  { %v957_v4 = vpop.f32.mrf.mxu3 }
 0x257   :  { %v1143_v5 = vpop.f32.mrf.mxu3 }
 0x25d   :  { %v1130_v7 = vpop.f32.mrf.mxu2 }
 0x25e   :  { %v1131_v8 = vadd.f32 %v1848_v6, %v1130_v7 }
 0x25f   :  { %v1145_v9 = vpop.f32.mrf.mxu3 }
 0x260   :  { %v1144_v10 = vadd.f32 %v1143_v5, %v1131_v8 }
 0x262   :  { %v1713_v11 = vmul.f32 -1.442695, %v1144_v10 }
 0x264   :  { %1853 = vpow2.f32 %v1713_v11 }
 0x265   :  { %v1132_v12 = vpop.f32.mrf.mxu2 }
 0x26a   :  { %v1854_v13 = vpop.eup %1853 }
 0x26b   :  { %v1150_v14 = vadd.f32 1.0, %v1854_v13 }
 0x26d   :  { %1855 = vrcp.f32 %v1150_v14  ;;  %v1162_v18 = vand.u32 2147483648, %v1150_v14  ;;  %v1160_v20 = vand.u32 2147483647, %v1150_v14  ;;  %vm1156_vm2 = vweird.f32 %v1150_v14 }
 0x26f   :  { %v1163_v22 = vor.u32 1.1754944e-38, %v1162_v18  ;;  %vm1161_vm5 = vcmp.eq.f32.partialorder %v1160_v20, 8.507059e+37 }
 0x273   :  { %v1856_v15 = vpop.eup %1855 }
 0x274   :  { %v1152_v16 = vmul.f32 %v1856_v15, %v1150_v14  ;;  %vm1157_vm1 = vweird.f32 %v1856_v15 }
 0x275   :  { %vm1158_vm3 = vmor %vm1156_vm2, %vm1157_vm1 }
 0x276   :  { %v1153_v17 = vsub.f32 1.0, %v1152_v16 }
 0x278   :  { %v1154_v19 = vmul.f32 %v1856_v15, %v1153_v17 }
 0x27a   :  { %v1155_v21 = vadd.f32 %v1856_v15, %v1154_v19 }
 0x27c   :  { %v1159_v23 = vsel %vm1158_vm3, %v1856_v15, %v1155_v21 }
 0x27d   :  { %v1164_v24 = vsel %vm1161_vm5, %v1163_v22, %v1159_v23 }
 0x27e   :  { %1167 = vst.msk [vmem:[#allocation6] sm:$0x3] %vm1166_vm4, %v1164_v24 }
 0x27f   :  { %1189 = dma.vmem_to_hbm [thread:$0]  %s1185_s27, 32, %s1187_s28, [#allocation7]  }
 0x280   :  { %1931 = dma.done.wait [#allocation4], 32  }
 0x281   :  { %1932 = vsyncadd [#allocation4], 4294967264 }
 0x282   :  { %1933 = dma.done.wait [#allocation7], 32  }
 0x283   :  { %1934 = vsyncadd [#allocation7], 4294967264 }
 0x284   :  { %1198 = vsyncpa [#allocation3], 1 }
 0x285   :  { %1199 = vsyncpa [#allocation4], 1 }
 0x286   :  { %1200 = vsyncpa [#allocation7], 1 }

</bundles_post_ra>
